<compile_context>
chip_gen: v7x
topology: tpu7x:2x2x1
jax: 0.10.0
libtpu: 0.0.40
codegen_flags: <defaults>
</compile_context>

<pallas_src>
import itertools

import jax
import jax.numpy as jnp
from jax.experimental import pallas as pl
from jax.experimental.pallas import tpu as pltpu

VMEM = pltpu.MemorySpace.VMEM
NUM_EXPERT = 5


def _vspecs(n):
    return [pl.BlockSpec(memory_space=VMEM) for _ in range(n)]


def _out_vspec():
    return pl.BlockSpec(memory_space=VMEM)


# ----------------------------- Pallas kernels ------------------------------ #

def _make_mlp_kernel(n_hidden):
    # Fused: [Linear -> BatchNorm1d(eval, folded) -> ReLU]*n_hidden -> Linear
    def kernel(*refs):
        x_ref = refs[0]
        o_ref = refs[-1]
        h = x_ref[...]
        i = 1
        for _ in range(n_hidden):
            w, b, s, t = refs[i], refs[i + 1], refs[i + 2], refs[i + 3]
            i += 4
            h = jnp.dot(h, w[...], preferred_element_type=jnp.float32) + b[...]
            h = h * s[...] + t[...]          # folded BN; dropout = eval no-op
            h = jnp.maximum(h, 0.0)
        wo, bo = refs[i], refs[i + 1]
        o_ref[...] = jnp.dot(h, wo[...], preferred_element_type=jnp.float32) + bo[...]
    return kernel


def _gate_kernel(x_ref, w1_ref, b1_ref, w2_ref, b2_ref, o_ref):
    # Linear -> ReLU -> Linear -> Softmax(dim=1), fused.
    h = jnp.dot(x_ref[...], w1_ref[...], preferred_element_type=jnp.float32) + b1_ref[...]
    h = jnp.maximum(h, 0.0)
    logits = jnp.dot(h, w2_ref[...], preferred_element_type=jnp.float32) + b2_ref[...]
    logits = logits - jnp.max(logits, axis=-1, keepdims=True)
    e = jnp.exp(logits)
    o_ref[...] = e / jnp.sum(e, axis=-1, keepdims=True)


def _embed_ln_kernel(we_ref, pe_ref, te_ref, g_ref, b_ref, o_ref):
    # word + position + token-type embeddings, then LayerNorm (eps = 1e-12).
    x = we_ref[...] + pe_ref[...] + te_ref[...]
    mu = jnp.mean(x, axis=-1, keepdims=True)
    d = x - mu
    var = jnp.mean(d * d, axis=-1, keepdims=True)
    o_ref[...] = d * jax.lax.rsqrt(var + 1e-12) * g_ref[...] + b_ref[...]


def _mask_attn_kernel(x_ref, m_ref, w_ref, b_ref, o_ref):
    # x: (B, L, D); m: (B, L, 1) float; w: (1, 1, D); b: (1, 1); o: (B, D)
    x = x_ref[...]
    s = jnp.sum(x * w_ref[...], axis=-1, keepdims=True) + b_ref[0, 0]   # (B, L, 1)
    s = jnp.where(m_ref[...] > 0.0, s, -1e30)
    s = s - jnp.max(s, axis=1, keepdims=True)
    p = jnp.exp(s)
    p = p / jnp.sum(p, axis=1, keepdims=True)
    o_ref[...] = jnp.sum(p * x, axis=1)


def _make_conv_kernel(B, L):
    # Fused conv bank + global max-pool for one kernel width, all (entity +
    # expert) output channels at once.  Matmuls are batch-dense over B*L rows;
    # the (B, C) result is stored in one lane-dense write (C = 384 = 3*128).
    def kernel(x_ref, w_ref, b_ref, o_ref):
        # x: (B*L, E); w: (k, E, C); b: (1, C); o: (B, C)
        k = w_ref.shape[0]
        Lo = L - k + 1
        x2d = x_ref[...]
        accs = [None] * B
        for j in range(k):
            yj = jnp.dot(x2d, w_ref[j], preferred_element_type=jnp.float32)  # (B*L, C)
            for bi in range(B):
                sl = yj[bi * L + j: bi * L + j + Lo, :]
                accs[bi] = sl if accs[bi] is None else accs[bi] + sl
        rows = [jnp.max(a, axis=0, keepdims=True) for a in accs]
        o_ref[...] = jnp.concatenate(rows, axis=0) + b_ref[...]
    return kernel


def _bigru_recurrence_kernel(xp_ref, whh_ref, bhh_ref, o_ref, h_scr):
    # Serial recurrence only.  The input projection (x @ W_ih + b_ih) for all
    # timesteps is precomputed outside (hoisted), fused over the r|z|n gates.
    # xp: (T, B, 3H); whh: (H, 3H); bhh: (1, 3H); o: (T, B, H); h_scr: (B, H)
    # Gate order matches PyTorch GRU: r, z, n.
    T = xp_ref.shape[0]
    H = whh_ref.shape[0]
    d = pl.program_id(0)                 # 0 = forward direction, 1 = backward
    whh = whh_ref[...]                   # hoisted loop-invariant loads
    bhh = bhh_ref[...]
    h_scr[...] = jnp.zeros_like(h_scr)

    def step(t, carry):
        tt = jnp.where(d == 0, t, T - 1 - t)
        xg = xp_ref[tt]                  # (B, 3H)
        h = h_scr[...]                   # (B, H)
        hg = jnp.dot(h, whh, preferred_element_type=jnp.float32) + bhh
        r = jax.nn.sigmoid(xg[:, :H] + hg[:, :H])
        z = jax.nn.sigmoid(xg[:, H:2 * H] + hg[:, H:2 * H])
        n = jnp.tanh(xg[:, 2 * H:] + r * hg[:, 2 * H:])
        h_new = (1.0 - z) * n + z * h
        h_scr[...] = h_new
        o_ref[tt] = h_new
        return carry

    jax.lax.fori_loop(0, T, step, 0)


# ----------------------------- kernel wrappers ------------------------------ #

def mlp_forward(x, p):
    args = [x]
    for layer in p['hidden']:
        args.extend(layer)
    args.extend(p['out'])
    return pl.pallas_call(
        _make_mlp_kernel(len(p['hidden'])),
        out_shape=jax.ShapeDtypeStruct((x.shape[0], 1), jnp.float32),
        in_specs=_vspecs(len(args)), out_specs=_out_vspec())(*args)


def gate_forward(x, p):
    w1, b1, w2, b2 = p
    return pl.pallas_call(
        _gate_kernel,
        out_shape=jax.ShapeDtypeStruct((x.shape[0], w2.shape[1]), jnp.float32),
        in_specs=_vspecs(5), out_specs=_out_vspec())(x, w1, b1, w2, b2)


def mask_attention(x, mask, p):
    w, b = p
    m3 = mask.astype(jnp.float32)[:, :, None]
    return pl.pallas_call(
        _mask_attn_kernel,
        out_shape=jax.ShapeDtypeStruct((x.shape[0], x.shape[2]), jnp.float32),
        in_specs=_vspecs(4), out_specs=_out_vspec())(x, m3, w, b)


def conv_bank(x2d, w, b, B, L):
    return pl.pallas_call(
        _make_conv_kernel(B, L),
        out_shape=jax.ShapeDtypeStruct((B, w.shape[2]), jnp.float32),
        in_specs=_vspecs(3), out_specs=_out_vspec())(x2d, w, b)


def gru_bidir(x_tm, lyr):
    # x_tm: (T, B, Din) time-major; returns (T, B, 2H).
    T, B, _ = x_tm.shape
    H = lyr['whh'].shape[1]
    G = 3 * H
    # Hoisted input projection for both directions and all timesteps: one matmul.
    xp = jnp.einsum('tbd,xdg->xtbg', x_tm, lyr['wih'],
                    preferred_element_type=jnp.float32) + lyr['bih'][:, None, :, :]
    out = pl.pallas_call(
        _bigru_recurrence_kernel,
        out_shape=jax.ShapeDtypeStruct((2, T, B, H), jnp.float32),
        grid=(2,),
        in_specs=[
            pl.BlockSpec((None, T, B, G), lambda d: (d, 0, 0, 0)),
            pl.BlockSpec((None, H, G), lambda d: (d, 0, 0)),
            pl.BlockSpec((None, 1, G), lambda d: (d, 0, 0)),
        ],
        out_specs=pl.BlockSpec((None, T, B, H), lambda d: (d, 0, 0, 0)),
        scratch_shapes=[pltpu.VMEM((B, H), jnp.float32)],
        compiler_params=pltpu.CompilerParams(
            dimension_semantics=("parallel",)),   # fwd/bwd shard across TCs on v7x
    )(xp, lyr['whh'], lyr['bhh'])
    return jnp.concatenate([out[0], out[1]], axis=-1)


# ----------------------------- model pieces -------------------------------- #

def bert_embed(ids, p, time_major):
    # TODO(synk): real chinese-bert-wwm-ext embedding tables are replaced by
    # deterministic random tables (no checkpoint load); dropout is eval no-op.
    L = ids.shape[1]
    if time_major:
        we = jnp.take(p['word_emb'], ids.T, axis=0)          # (L, B, E)
        pe = p['pos_emb'][:L][:, None, :]                     # (L, 1, E)
    else:
        we = jnp.take(p['word_emb'], ids, axis=0)             # (B, L, E)
        pe = p['pos_emb'][:L][None, :, :]                     # (1, L, E)
    te = p['type_emb'][0][None, None, :]                      # (1, 1, E)
    return pl.pallas_call(
        _embed_ln_kernel,
        out_shape=jax.ShapeDtypeStruct(we.shape, jnp.float32),
        in_specs=_vspecs(5), out_specs=_out_vspec())(we, pe, te, p['ln_g'], p['ln_b'])


def bigru_forward(x_tm, layers):
    h = x_tm                                                  # (T, B, Din)
    for lyr in layers:
        h = gru_bidir(h, lyr)                                 # (T, B, 2H)
    return h


def model_forward(params, content, content_masks, soc_feat, soc_feat_masks,
                  kernel_features, event, event_masks):
    del soc_feat_masks  # unused in the reference forward as well
    B = content.shape[0]

    # --- social branch (identical in train/eval in the reference code) ---
    combined_soc = jnp.concatenate(
        [soc_feat[:, 0, :], soc_feat[:, 1, :], kernel_features], axis=1)
    soc_prob = mlp_forward(combined_soc, params['soc_mlp'])[:, 0]

    # --- content branch (time-major through the GRU stack) ---
    emb_tm = bert_embed(content, params['emb'], time_major=True)     # (L, B, E)
    feat_tm = bigru_forward(emb_tm, params['gru'])                    # (L, B, 2H)
    feat = jnp.transpose(feat_tm, (1, 0, 2))                          # (B, L, 2H)
    soc_token = jnp.concatenate(
        [soc_feat[:, 0, :], soc_feat[:, 1, :]], axis=1)[:, None, :]   # (B, 1, 2H)
    feat = jnp.concatenate([feat, soc_token], axis=1)                 # (B, L+1, 2H)
    exp_masks = jnp.concatenate(
        [content_masks, jnp.ones((B, 1), content_masks.dtype)], axis=1)
    att = mask_attention(feat, exp_masks, params['attention'])        # (B, 2H)
    att = jnp.concatenate([att, kernel_features], axis=1)
    bias_pred = mlp_forward(att, params['mlp_w_soc'])[:, 0]

    # --- event branch (eval-mode mixing: 0.8 entity convs + 0.2 gated experts) ---
    ev_emb = bert_embed(event, params['emb'], time_major=False)       # (B, Le, E)
    gate_feat = mask_attention(ev_emb, event_masks, params['attention_gate'])
    gate_value = gate_forward(gate_feat, params['gate'])              # (B, 5)

    Le, E = ev_emb.shape[1], ev_emb.shape[2]
    ev2d = ev_emb.reshape(B * Le, E)
    outs = [conv_bank(ev2d, w, b, B, Le) for (w, b) in params['fused_convs']]
    nw = len(outs)
    cnn_ch = outs[0].shape[1] // (1 + NUM_EXPERT)
    all_feat = jnp.stack(outs, axis=1).reshape(B, nw, 1 + NUM_EXPERT, cnn_ch)
    entity_feat = all_feat[:, :, 0, :].reshape(B, nw * cnn_ch)        # (B, 320)
    expert_feat = all_feat[:, :, 1:, :]                               # (B, nw, 5, 64)
    shared = jnp.einsum('bwec,be->bwc', expert_feat, gate_value).reshape(B, nw * cnn_ch)
    event_feature = 0.8 * entity_feat + 0.2 * shared
    event_prob = mlp_forward(event_feature, params['entity_mlp'])[:, 0]

    main = jax.nn.sigmoid(0.83 * bias_pred + 0.15 * event_prob + 0.02 * soc_prob)
    return (main, jax.nn.sigmoid(event_prob), jax.nn.sigmoid(soc_prob),
            jax.nn.sigmoid(bias_pred))


# ----------------------------- parameter init ------------------------------ #

def make_params(key, emb_dim, mlp_dims, num_layers, vocab_size, max_pos,
                kernel_dim=22, feature_kernel=(1, 2, 3, 5, 10), cnn_ch=64,
                num_expert=NUM_EXPERT):
    cnt = itertools.count()

    def nk():
        return jax.random.fold_in(key, next(cnt))

    def rnd(shape, scale=0.05):
        return scale * jax.random.normal(nk(), shape, jnp.float32)

    def dense(din, dout):
        return rnd((din, dout)), rnd((1, dout))

    def mlp(din, dims):
        hidden = []
        d = din
        for hdim in dims:
            w, b = dense(d, hdim)
            # BatchNorm1d eval: scale = gamma/sqrt(var+eps), shift = beta - mean*scale
            s = jnp.full((1, hdim), 1.0 / jnp.sqrt(1.0 + 1e-5), jnp.float32)
            t = jnp.zeros((1, hdim), jnp.float32)
            hidden.append((w, b, s, t))
            d = hdim
        return {'hidden': hidden, 'out': dense(d, 1)}

    def gru_layer(din, H):
        def direction():
            # fused r|z|n gate weights: (din, 3H), (H, 3H), biases (1, 3H)
            return (rnd((din, 3 * H)), rnd((H, 3 * H)),
                    rnd((1, 3 * H)), rnd((1, 3 * H)))
        f = direction()
        b = direction()
        return {'wih': jnp.stack([f[0], b[0]]),
                'whh': jnp.stack([f[1], b[1]]),
                'bih': jnp.stack([f[2], b[2]]),
                'bhh': jnp.stack([f[3], b[3]])}

    E = emb_dim
    H = E                              # fea_size = emb_dim
    fused = 2 * E
    kf_dim = 2 * kernel_dim
    cnn_out = cnn_ch * len(feature_kernel)
    banks = 1 + num_expert             # [entity, expert0..expert4] fused per width

    return {
        'emb': {
            'word_emb': rnd((vocab_size, E), 0.5),
            'pos_emb': rnd((max_pos, E), 0.5),
            'type_emb': rnd((2, E), 0.5),
            'ln_g': jnp.ones((1, 1, E), jnp.float32),
            'ln_b': jnp.zeros((1, 1, E), jnp.float32),
        },
        'gru': [gru_layer(E if l == 0 else 2 * H, H) for l in range(num_layers)],
        'attention': (rnd((1, 1, fused)), rnd((1, 1))),
        'attention_gate': (rnd((1, 1, E)), rnd((1, 1))),
        'soc_mlp': mlp(2 * E + kf_dim, list(mlp_dims)),
        'mlp_w_soc': mlp(fused + kf_dim, list(mlp_dims)),
        'entity_mlp': mlp(cnn_out, list(mlp_dims)),
        # per kernel width k: all conv banks fused along output channels -> (k, E, 384)
        'fused_convs': [(rnd((k, E, banks * cnn_ch)), rnd((1, banks * cnn_ch)))
                        for k in feature_kernel],
        'gate': (rnd((E, mlp_dims[-1])), rnd((1, mlp_dims[-1])),
                 rnd((mlp_dims[-1], num_expert)), rnd((1, num_expert))),
    }


# ----------------------------------- main ----------------------------------- #

if __name__ == "__main__":
    B, L, Le = 2, 16, 16
    EMB = 32
    MLP_DIMS = [32]
    NUM_LAYERS = 1
    VOCAB, MAXPOS = 100, 64
    KF = 2 * 22

    key = jax.random.PRNGKey(0)
    params = make_params(key, EMB, MLP_DIMS, NUM_LAYERS, VOCAB, MAXPOS)

    dk = jax.random.fold_in(key, 10_000)
    content = jax.random.randint(jax.random.fold_in(dk, 0), (B, L), 0, VOCAB, jnp.int32)
    content_masks = jnp.concatenate(
        [jnp.ones((B, L - 3), jnp.int32), jnp.zeros((B, 3), jnp.int32)], axis=1)
    soc_feat = jax.random.normal(jax.random.fold_in(dk, 1), (B, 2, EMB), jnp.float32)
    soc_feat_masks = jnp.ones((B, 2), jnp.int32)
    kernel_features = jax.random.normal(jax.random.fold_in(dk, 2), (B, KF), jnp.float32)
    event = jax.random.randint(jax.random.fold_in(dk, 3), (B, Le), 0, VOCAB, jnp.int32)
    event_masks = jnp.concatenate(
        [jnp.ones((B, Le - 2), jnp.int32), jnp.zeros((B, 2), jnp.int32)], axis=1)

    fwd = jax.jit(model_forward)
    out = fwd(params, content, content_masks, soc_feat, soc_feat_masks,
              kernel_features, event, event_masks)
    for o in out:
        jax.block_until_ready(o)
    assert all(o.shape == (B,) for o in out)
    assert all(bool(jnp.all(jnp.isfinite(o))) for o in out)
    print("KERNEL_OK")
</pallas_src>

<mosaic_0001>
module attributes {stable_mosaic.version = 11 : i64} {
  func.func @_embed_ln_kernel(%arg0: memref<16x2x32xf32, #tpu.memory_space<vmem>>, %arg1: memref<16x1x32xf32, #tpu.memory_space<vmem>>, %arg2: memref<1x1x32xf32, #tpu.memory_space<vmem>>, %arg3: memref<1x1x32xf32, #tpu.memory_space<vmem>>, %arg4: memref<1x1x32xf32, #tpu.memory_space<vmem>>, %arg5: memref<16x2x32xf32, #tpu.memory_space<vmem>>) attributes {dimension_semantics = [], scalar_prefetch = 0 : i64, scratch_operands = 0 : i64, tpu.core_type = #tpu.core_type<tc>} {
    %c0 = arith.constant 0 : index
    %c0_0 = arith.constant 0 : index
    %c0_1 = arith.constant 0 : index
    %0 = vector.load %arg0[%c0, %c0_0, %c0_1] : memref<16x2x32xf32, #tpu.memory_space<vmem>>, vector<16x2x32xf32>
    %c0_2 = arith.constant 0 : index
    %c0_3 = arith.constant 0 : index
    %c0_4 = arith.constant 0 : index
    %1 = vector.load %arg1[%c0_2, %c0_3, %c0_4] : memref<16x1x32xf32, #tpu.memory_space<vmem>>, vector<16x1x32xf32>
    %2 = vector.broadcast %1 : vector<16x1x32xf32> to vector<16x2x32xf32>
    %3 = arith.addf %0, %2 : vector<16x2x32xf32>
    %c0_5 = arith.constant 0 : index
    %c0_6 = arith.constant 0 : index
    %c0_7 = arith.constant 0 : index
    %4 = vector.load %arg2[%c0_5, %c0_6, %c0_7] : memref<1x1x32xf32, #tpu.memory_space<vmem>>, vector<1x1x32xf32>
    %5 = vector.broadcast %4 : vector<1x1x32xf32> to vector<16x2x32xf32>
    %6 = arith.addf %3, %5 : vector<16x2x32xf32>
    %cst = arith.constant dense<0.000000e+00> : vector<16x2xf32>
    %7 = vector.multi_reduction <add>, %6, %cst [2] : vector<16x2x32xf32> to vector<16x2xf32>
    %8 = vector.shape_cast %7 : vector<16x2xf32> to vector<16x2x1xf32>
    %cst_8 = arith.constant 3.200000e+01 : f32
    %9 = vector.broadcast %cst_8 : f32 to vector<16x2x1xf32>
    %10 = arith.divf %8, %9 : vector<16x2x1xf32>
    %11 = vector.broadcast %10 : vector<16x2x1xf32> to vector<16x2x32xf32>
    %12 = arith.subf %6, %11 : vector<16x2x32xf32>
    %13 = arith.mulf %12, %12 : vector<16x2x32xf32>
    %cst_9 = arith.constant dense<0.000000e+00> : vector<16x2xf32>
    %14 = vector.multi_reduction <add>, %13, %cst_9 [2] : vector<16x2x32xf32> to vector<16x2xf32>
    %15 = vector.shape_cast %14 : vector<16x2xf32> to vector<16x2x1xf32>
    %cst_10 = arith.constant 3.200000e+01 : f32
    %16 = vector.broadcast %cst_10 : f32 to vector<16x2x1xf32>
    %17 = arith.divf %15, %16 : vector<16x2x1xf32>
    %cst_11 = arith.constant 9.99999996E-13 : f32
    %18 = vector.broadcast %cst_11 : f32 to vector<16x2x1xf32>
    %19 = arith.addf %17, %18 : vector<16x2x1xf32>
    %20 = math.rsqrt %19 : vector<16x2x1xf32>
    %21 = vector.broadcast %20 : vector<16x2x1xf32> to vector<16x2x32xf32>
    %22 = arith.mulf %12, %21 : vector<16x2x32xf32>
    %c0_12 = arith.constant 0 : index
    %c0_13 = arith.constant 0 : index
    %c0_14 = arith.constant 0 : index
    %23 = vector.load %arg3[%c0_12, %c0_13, %c0_14] : memref<1x1x32xf32, #tpu.memory_space<vmem>>, vector<1x1x32xf32>
    %24 = vector.broadcast %23 : vector<1x1x32xf32> to vector<16x2x32xf32>
    %25 = arith.mulf %22, %24 : vector<16x2x32xf32>
    %c0_15 = arith.constant 0 : index
    %c0_16 = arith.constant 0 : index
    %c0_17 = arith.constant 0 : index
    %26 = vector.load %arg4[%c0_15, %c0_16, %c0_17] : memref<1x1x32xf32, #tpu.memory_space<vmem>>, vector<1x1x32xf32>
    %27 = vector.broadcast %26 : vector<1x1x32xf32> to vector<16x2x32xf32>
    %28 = arith.addf %25, %27 : vector<16x2x32xf32>
    %c0_18 = arith.constant 0 : index
    %c0_19 = arith.constant 0 : index
    %c0_20 = arith.constant 0 : index
    %29 = vector.load %arg5[%c0_18, %c0_19, %c0_20] : memref<16x2x32xf32, #tpu.memory_space<vmem>>, vector<16x2x32xf32>
    tpu.vector_store %arg5[%c0_18, %c0_19, %c0_20], %28 {strides = array<i32>} : memref<16x2x32xf32, #tpu.memory_space<vmem>>, vector<16x2x32xf32>,
    return
  }
}

module attributes {stable_mosaic.version = 11 : i64} {
  func.func @_bigru_recurrence_kernel(%arg0: i32, %arg1: memref<1x16x2x96xf32, #tpu.memory_space<vmem>>, %arg2: memref<1x32x96xf32, #tpu.memory_space<vmem>>, %arg3: memref<1x1x96xf32, #tpu.memory_space<vmem>>, %arg4: memref<1x16x2x32xf32, #tpu.memory_space<vmem>>, %arg5: memref<2x32xf32, #tpu.memory_space<vmem>>) attributes {dimension_semantics = [#tpu.dimension_semantics<parallel>], iteration_bounds = array<i64: 2>, scalar_prefetch = 0 : i64, scratch_operands = 1 : i64, tpu.core_type = #tpu.core_type<tc>, window_params = [{transform_indices = @transform_0, window_bounds = array<i64: 1, 16, 2, 96>}, {transform_indices = @transform_1, window_bounds = array<i64: 1, 32, 96>}, {transform_indices = @transform_2, window_bounds = array<i64: 1, 1, 96>}, {transform_indices = @transform_3, window_bounds = array<i64: 1, 16, 2, 32>}]} {
    %c0 = arith.constant 0 : index
    %c0_0 = arith.constant 0 : index
    %c0_1 = arith.constant 0 : index
    %0 = vector.load %arg2[%c0, %c0_0, %c0_1] : memref<1x32x96xf32, #tpu.memory_space<vmem>>, vector<1x32x96xf32>
    %1 = vector.shape_cast %0 : vector<1x32x96xf32> to vector<32x96xf32>
    %c0_2 = arith.constant 0 : index
    %c0_3 = arith.constant 0 : index
    %c0_4 = arith.constant 0 : index
    %2 = vector.load %arg3[%c0_2, %c0_3, %c0_4] : memref<1x1x96xf32, #tpu.memory_space<vmem>>, vector<1x1x96xf32>
    %3 = vector.shape_cast %2 : vector<1x1x96xf32> to vector<1x96xf32>
    %cst = arith.constant 0.000000e+00 : f32
    %4 = vector.broadcast %cst : f32 to vector<2x32xf32>
    %c0_5 = arith.constant 0 : index
    %c0_6 = arith.constant 0 : index
    %5 = vector.load %arg5[%c0_5, %c0_6] : memref<2x32xf32, #tpu.memory_space<vmem>>, vector<2x32xf32>
    tpu.vector_store %arg5[%c0_5, %c0_6], %4 {strides = array<i32>} : memref<2x32xf32, #tpu.memory_space<vmem>>, vector<2x32xf32>,
    %c0_i32 = arith.constant 0 : i32
    %c16_i32 = arith.constant 16 : i32
    %6 = arith.addi %c0_i32, %c16_i32 : i32
    %c1_i32 = arith.constant 1 : i32
    scf.for %arg6 = %c0_i32 to %6 step %c1_i32  : i32 {
      %c0_i32_8 = arith.constant 0 : i32
      %7 = arith.cmpi eq, %arg0, %c0_i32_8 : i32
      %c15_i32 = arith.constant 15 : i32
      %8 = arith.subi %c15_i32, %arg6 : i32
      %9 = arith.select %7, %arg6, %8 : i32
      %c0_9 = arith.constant 0 : index
      %10 = arith.index_cast %9 : i32 to index
      %c0_10 = arith.constant 0 : index
      %c0_11 = arith.constant 0 : index
      %11 = vector.load %arg1[%c0_9, %10, %c0_10, %c0_11] : memref<1x16x2x96xf32, #tpu.memory_space<vmem>>, vector<1x1x2x96xf32>
      %12 = vector.shape_cast %11 : vector<1x1x2x96xf32> to vector<2x96xf32>
      %c0_12 = arith.constant 0 : index
      %c0_13 = arith.constant 0 : index
      %13 = vector.load %arg5[%c0_12, %c0_13] : memref<2x32xf32, #tpu.memory_space<vmem>>, vector<2x32xf32>
      %cst_14 = arith.constant dense<0.000000e+00> : vector<2x96xf32>
      %14 = tpu.matmul %13, %1, %cst_14 {dimension_numbers = #tpu.dot_dimension_numbers<[1], [0], [0], [1], [0, 0, 1, 1], [], []>} : vector<2x32xf32>, vector<32x96xf32>, vector<2x96xf32> -> vector<2x96xf32>
      %15 = vector.broadcast %3 : vector<1x96xf32> to vector<2x96xf32>
      %16 = arith.addf %14, %15 : vector<2x96xf32>
      %17 = vector.extract_strided_slice %12 {offsets = [0, 0], sizes = [2, 32], strides = [1, 1]} : vector<2x96xf32> to vector<2x32xf32>
      %18 = vector.extract_strided_slice %16 {offsets = [0, 0], sizes = [2, 32], strides = [1, 1]} : vector<2x96xf32> to vector<2x32xf32>
      %19 = arith.addf %17, %18 : vector<2x32xf32>
      %20 = arith.negf %19 : vector<2x32xf32>
      %21 = math.exp %20 : vector<2x32xf32>
      %cst_15 = arith.constant 1.000000e+00 : f32
      %22 = vector.broadcast %cst_15 : f32 to vector<2x32xf32>
      %23 = arith.addf %22, %21 : vector<2x32xf32>
      %24 = arith.divf %22, %23 : vector<2x32xf32>
      %25 = vector.extract_strided_slice %12 {offsets = [0, 32], sizes = [2, 32], strides = [1, 1]} : vector<2x96xf32> to vector<2x32xf32>
      %26 = vector.extract_strided_slice %16 {offsets = [0, 32], sizes = [2, 32], strides = [1, 1]} : vector<2x96xf32> to vector<2x32xf32>
      %27 = arith.addf %25, %26 : vector<2x32xf32>
      %28 = arith.negf %27 : vector<2x32xf32>
      %29 = math.exp %28 : vector<2x32xf32>
      %cst_16 = arith.constant 1.000000e+00 : f32
      %30 = vector.broadcast %cst_16 : f32 to vector<2x32xf32>
      %31 = arith.addf %30, %29 : vector<2x32xf32>
      %32 = arith.divf %30, %31 : vector<2x32xf32>
      %33 = vector.extract_strided_slice %12 {offsets = [0, 64], sizes = [2, 32], strides = [1, 1]} : vector<2x96xf32> to vector<2x32xf32>
      %34 = vector.extract_strided_slice %16 {offsets = [0, 64], sizes = [2, 32], strides = [1, 1]} : vector<2x96xf32> to vector<2x32xf32>
      %35 = arith.mulf %24, %34 : vector<2x32xf32>
      %36 = arith.addf %33, %35 : vector<2x32xf32>
      %37 = math.tanh %36 : vector<2x32xf32>
      %cst_17 = arith.constant 1.000000e+00 : f32
      %38 = vector.broadcast %cst_17 : f32 to vector<2x32xf32>
      %39 = arith.subf %38, %32 : vector<2x32xf32>
      %40 = arith.mulf %39, %37 : vector<2x32xf32>
      %41 = arith.mulf %32, %13 : vector<2x32xf32>
      %42 = arith.addf %40, %41 : vector<2x32xf32>
      %c0_18 = arith.constant 0 : index
      %c0_19 = arith.constant 0 : index
      %43 = vector.load %arg5[%c0_18, %c0_19] : memref<2x32xf32, #tpu.memory_space<vmem>>, vector<2x32xf32>
      tpu.vector_store %arg5[%c0_18, %c0_19], %42 {strides = array<i32>} : memref<2x32xf32, #tpu.memory_space<vmem>>, vector<2x32xf32>,
      %c0_20 = arith.constant 0 : index
      %44 = arith.index_cast %9 : i32 to index
      %c0_21 = arith.constant 0 : index
      %c0_22 = arith.constant 0 : index
      %45 = vector.load %arg4[%c0_20, %44, %c0_21, %c0_22] : memref<1x16x2x32xf32, #tpu.memory_space<vmem>>, vector<1x1x2x32xf32>
      %46 = vector.shape_cast %45 : vector<1x1x2x32xf32> to vector<2x32xf32>
      %47 = vector.shape_cast %42 : vector<2x32xf32> to vector<1x1x2x32xf32>
      tpu.vector_store %arg4[%c0_20, %44, %c0_21, %c0_22], %47 {strides = array<i32>} : memref<1x16x2x32xf32, #tpu.memory_space<vmem>>, vector<1x1x2x32xf32>,
    }
    %c16_i32_7 = arith.constant 16 : i32
    return
  }
  func.func @transform_0(%arg0: i32) -> (i32, i32, i32, i32) {
    %c0_i32 = arith.constant 0 : i32
    %c0_i32_0 = arith.constant 0 : i32
    %c0_i32_1 = arith.constant 0 : i32
    %c0_i32_2 = arith.constant 0 : i32
    return %arg0, %c0_i32, %c0_i32_0, %c0_i32_1 : i32, i32, i32, i32
  }
  func.func @transform_1(%arg0: i32) -> (i32, i32, i32) {
    %c0_i32 = arith.constant 0 : i32
    %c0_i32_0 = arith.constant 0 : i32
    %c0_i32_1 = arith.constant 0 : i32
    return %arg0, %c0_i32, %c0_i32_0 : i32, i32, i32
  }
  func.func @transform_2(%arg0: i32) -> (i32, i32, i32) {
    %c0_i32 = arith.constant 0 : i32
    %c0_i32_0 = arith.constant 0 : i32
    %c0_i32_1 = arith.constant 0 : i32
    return %arg0, %c0_i32, %c0_i32_0 : i32, i32, i32
  }
  func.func @transform_3(%arg0: i32) -> (i32, i32, i32, i32) {
    %c0_i32 = arith.constant 0 : i32
    %c0_i32_0 = arith.constant 0 : i32
    %c0_i32_1 = arith.constant 0 : i32
    %c0_i32_2 = arith.constant 0 : i32
    return %arg0, %c0_i32, %c0_i32_0, %c0_i32_1 : i32, i32, i32, i32
  }
}

module attributes {stable_mosaic.version = 11 : i64} {
  func.func @_mask_attn_kernel(%arg0: memref<2x17x64xf32, #tpu.memory_space<vmem>>, %arg1: memref<2x17x1xf32, #tpu.memory_space<vmem>>, %arg2: memref<1x1x64xf32, #tpu.memory_space<vmem>>, %arg3: memref<1x1xf32, #tpu.memory_space<vmem>>, %arg4: memref<2x64xf32, #tpu.memory_space<vmem>>) attributes {dimension_semantics = [], scalar_prefetch = 0 : i64, scratch_operands = 0 : i64, tpu.core_type = #tpu.core_type<tc>} {
    %c0 = arith.constant 0 : index
    %c0_0 = arith.constant 0 : index
    %c0_1 = arith.constant 0 : index
    %0 = vector.load %arg0[%c0, %c0_0, %c0_1] : memref<2x17x64xf32, #tpu.memory_space<vmem>>, vector<2x17x64xf32>
    %c0_2 = arith.constant 0 : index
    %c0_3 = arith.constant 0 : index
    %c0_4 = arith.constant 0 : index
    %1 = vector.load %arg2[%c0_2, %c0_3, %c0_4] : memref<1x1x64xf32, #tpu.memory_space<vmem>>, vector<1x1x64xf32>
    %2 = vector.broadcast %1 : vector<1x1x64xf32> to vector<2x17x64xf32>
    %3 = arith.mulf %0, %2 : vector<2x17x64xf32>
    %cst = arith.constant dense<0.000000e+00> : vector<2x17xf32>
    %4 = vector.multi_reduction <add>, %3, %cst [2] : vector<2x17x64xf32> to vector<2x17xf32>
    %5 = vector.shape_cast %4 : vector<2x17xf32> to vector<2x17x1xf32>
    %c0_5 = arith.constant 0 : index
    %c0_6 = arith.constant 0 : index
    %6 = vector.load %arg3[%c0_5, %c0_6] : memref<1x1xf32, #tpu.memory_space<vmem>>, vector<1x1xf32>
    %7 = vector.extract %6[0, 0] : f32 from vector<1x1xf32>
    %8 = vector.broadcast %7 : f32 to vector<2x17x1xf32>
    %9 = arith.addf %5, %8 : vector<2x17x1xf32>
    %c0_7 = arith.constant 0 : index
    %c0_8 = arith.constant 0 : index
    %c0_9 = arith.constant 0 : index
    %10 = vector.load %arg1[%c0_7, %c0_8, %c0_9] : memref<2x17x1xf32, #tpu.memory_space<vmem>>, vector<2x17x1xf32>
    %cst_10 = arith.constant 0.000000e+00 : f32
    %11 = vector.broadcast %cst_10 : f32 to vector<2x17x1xf32>
    %12 = arith.cmpf ogt, %10, %11 : vector<2x17x1xf32>
    %cst_11 = arith.constant -1.000000e+30 : f32
    %13 = vector.broadcast %cst_11 : f32 to vector<2x17x1xf32>
    %14 = arith.select %12, %9, %13 : vector<2x17x1xi1>, vector<2x17x1xf32>
    %cst_12 = arith.constant dense<0xFF800000> : vector<2x1xf32>
    %15 = vector.multi_reduction <maximumf>, %14, %cst_12 [1] : vector<2x17x1xf32> to vector<2x1xf32>
    %16 = vector.shape_cast %15 : vector<2x1xf32> to vector<2x1x1xf32>
    %17 = vector.broadcast %16 : vector<2x1x1xf32> to vector<2x17x1xf32>
    %18 = arith.subf %14, %17 : vector<2x17x1xf32>
    %19 = math.exp %18 : vector<2x17x1xf32>
    %cst_13 = arith.constant dense<0.000000e+00> : vector<2x1xf32>
    %20 = vector.multi_reduction <add>, %19, %cst_13 [1] : vector<2x17x1xf32> to vector<2x1xf32>
    %21 = vector.shape_cast %20 : vector<2x1xf32> to vector<2x1x1xf32>
    %22 = vector.broadcast %21 : vector<2x1x1xf32> to vector<2x17x1xf32>
    %23 = arith.divf %19, %22 : vector<2x17x1xf32>
    %24 = vector.broadcast %23 : vector<2x17x1xf32> to vector<2x17x64xf32>
    %25 = arith.mulf %24, %0 : vector<2x17x64xf32>
    %cst_14 = arith.constant dense<0.000000e+00> : vector<2x64xf32>
    %26 = vector.multi_reduction <add>, %25, %cst_14 [1] : vector<2x17x64xf32> to vector<2x64xf32>
    %c0_15 = arith.constant 0 : index
    %c0_16 = arith.constant 0 : index
    %27 = vector.load %arg4[%c0_15, %c0_16] : memref<2x64xf32, #tpu.memory_space<vmem>>, vector<2x64xf32>
    tpu.vector_store %arg4[%c0_15, %c0_16], %26 {strides = array<i32>} : memref<2x64xf32, #tpu.memory_space<vmem>>, vector<2x64xf32>,
    return
  }
}

module attributes {stable_mosaic.version = 11 : i64} {
  func.func @kernel(%arg0: memref<2x108xf32, #tpu.memory_space<vmem>>, %arg1: memref<108x32xf32, #tpu.memory_space<vmem>>, %arg2: memref<1x32xf32, #tpu.memory_space<vmem>>, %arg3: memref<1x32xf32, #tpu.memory_space<vmem>>, %arg4: memref<1x32xf32, #tpu.memory_space<vmem>>, %arg5: memref<32x1xf32, #tpu.memory_space<vmem>>, %arg6: memref<1x1xf32, #tpu.memory_space<vmem>>, %arg7: memref<2x1xf32, #tpu.memory_space<vmem>>) attributes {dimension_semantics = [], scalar_prefetch = 0 : i64, scratch_operands = 0 : i64, tpu.core_type = #tpu.core_type<tc>} {
    %c0 = arith.constant 0 : index
    %c0_0 = arith.constant 0 : index
    %0 = vector.load %arg0[%c0, %c0_0] : memref<2x108xf32, #tpu.memory_space<vmem>>, vector<2x108xf32>
    %c0_1 = arith.constant 0 : index
    %c0_2 = arith.constant 0 : index
    %1 = vector.load %arg1[%c0_1, %c0_2] : memref<108x32xf32, #tpu.memory_space<vmem>>, vector<108x32xf32>
    %cst = arith.constant dense<0.000000e+00> : vector<2x32xf32>
    %2 = tpu.matmul %0, %1, %cst {dimension_numbers = #tpu.dot_dimension_numbers<[1], [0], [0], [1], [0, 0, 1, 1], [], []>} : vector<2x108xf32>, vector<108x32xf32>, vector<2x32xf32> -> vector<2x32xf32>
    %c0_3 = arith.constant 0 : index
    %c0_4 = arith.constant 0 : index
    %3 = vector.load %arg2[%c0_3, %c0_4] : memref<1x32xf32, #tpu.memory_space<vmem>>, vector<1x32xf32>
    %4 = vector.broadcast %3 : vector<1x32xf32> to vector<2x32xf32>
    %5 = arith.addf %2, %4 : vector<2x32xf32>
    %c0_5 = arith.constant 0 : index
    %c0_6 = arith.constant 0 : index
    %6 = vector.load %arg3[%c0_5, %c0_6] : memref<1x32xf32, #tpu.memory_space<vmem>>, vector<1x32xf32>
    %7 = vector.broadcast %6 : vector<1x32xf32> to vector<2x32xf32>
    %8 = arith.mulf %5, %7 : vector<2x32xf32>
    %c0_7 = arith.constant 0 : index
    %c0_8 = arith.constant 0 : index
    %9 = vector.load %arg4[%c0_7, %c0_8] : memref<1x32xf32, #tpu.memory_space<vmem>>, vector<1x32xf32>
    %10 = vector.broadcast %9 : vector<1x32xf32> to vector<2x32xf32>
    %11 = arith.addf %8, %10 : vector<2x32xf32>
    %cst_9 = arith.constant 0.000000e+00 : f32
    %12 = vector.broadcast %cst_9 : f32 to vector<2x32xf32>
    %13 = arith.maximumf %11, %12 : vector<2x32xf32>
    %c0_10 = arith.constant 0 : index
    %c0_11 = arith.constant 0 : index
    %14 = vector.load %arg5[%c0_10, %c0_11] : memref<32x1xf32, #tpu.memory_space<vmem>>, vector<32x1xf32>
    %cst_12 = arith.constant dense<0.000000e+00> : vector<2x1xf32>
    %15 = tpu.matmul %13, %14, %cst_12 {dimension_numbers = #tpu.dot_dimension_numbers<[1], [0], [0], [1], [0, 0, 1, 1], [], []>} : vector<2x32xf32>, vector<32x1xf32>, vector<2x1xf32> -> vector<2x1xf32>
    %c0_13 = arith.constant 0 : index
    %c0_14 = arith.constant 0 : index
    %16 = vector.load %arg6[%c0_13, %c0_14] : memref<1x1xf32, #tpu.memory_space<vmem>>, vector<1x1xf32>
    %17 = vector.broadcast %16 : vector<1x1xf32> to vector<2x1xf32>
    %18 = arith.addf %15, %17 : vector<2x1xf32>
    %c0_15 = arith.constant 0 : index
    %c0_16 = arith.constant 0 : index
    %19 = vector.load %arg7[%c0_15, %c0_16] : memref<2x1xf32, #tpu.memory_space<vmem>>, vector<2x1xf32>
    tpu.vector_store %arg7[%c0_15, %c0_16], %18 {strides = array<i32>} : memref<2x1xf32, #tpu.memory_space<vmem>>, vector<2x1xf32>,
    return
  }
}

module attributes {stable_mosaic.version = 11 : i64} {
  func.func @_embed_ln_kernel(%arg0: memref<2x16x32xf32, #tpu.memory_space<vmem>>, %arg1: memref<1x16x32xf32, #tpu.memory_space<vmem>>, %arg2: memref<1x1x32xf32, #tpu.memory_space<vmem>>, %arg3: memref<1x1x32xf32, #tpu.memory_space<vmem>>, %arg4: memref<1x1x32xf32, #tpu.memory_space<vmem>>, %arg5: memref<2x16x32xf32, #tpu.memory_space<vmem>>) attributes {dimension_semantics = [], scalar_prefetch = 0 : i64, scratch_operands = 0 : i64, tpu.core_type = #tpu.core_type<tc>} {
    %c0 = arith.constant 0 : index
    %c0_0 = arith.constant 0 : index
    %c0_1 = arith.constant 0 : index
    %0 = vector.load %arg0[%c0, %c0_0, %c0_1] : memref<2x16x32xf32, #tpu.memory_space<vmem>>, vector<2x16x32xf32>
    %c0_2 = arith.constant 0 : index
    %c0_3 = arith.constant 0 : index
    %c0_4 = arith.constant 0 : index
    %1 = vector.load %arg1[%c0_2, %c0_3, %c0_4] : memref<1x16x32xf32, #tpu.memory_space<vmem>>, vector<1x16x32xf32>
    %2 = vector.broadcast %1 : vector<1x16x32xf32> to vector<2x16x32xf32>
    %3 = arith.addf %0, %2 : vector<2x16x32xf32>
    %c0_5 = arith.constant 0 : index
    %c0_6 = arith.constant 0 : index
    %c0_7 = arith.constant 0 : index
    %4 = vector.load %arg2[%c0_5, %c0_6, %c0_7] : memref<1x1x32xf32, #tpu.memory_space<vmem>>, vector<1x1x32xf32>
    %5 = vector.broadcast %4 : vector<1x1x32xf32> to vector<2x16x32xf32>
    %6 = arith.addf %3, %5 : vector<2x16x32xf32>
    %cst = arith.constant dense<0.000000e+00> : vector<2x16xf32>
    %7 = vector.multi_reduction <add>, %6, %cst [2] : vector<2x16x32xf32> to vector<2x16xf32>
    %8 = vector.shape_cast %7 : vector<2x16xf32> to vector<2x16x1xf32>
    %cst_8 = arith.constant 3.200000e+01 : f32
    %9 = vector.broadcast %cst_8 : f32 to vector<2x16x1xf32>
    %10 = arith.divf %8, %9 : vector<2x16x1xf32>
    %11 = vector.broadcast %10 : vector<2x16x1xf32> to vector<2x16x32xf32>
    %12 = arith.subf %6, %11 : vector<2x16x32xf32>
    %13 = arith.mulf %12, %12 : vector<2x16x32xf32>
    %cst_9 = arith.constant dense<0.000000e+00> : vector<2x16xf32>
    %14 = vector.multi_reduction <add>, %13, %cst_9 [2] : vector<2x16x32xf32> to vector<2x16xf32>
    %15 = vector.shape_cast %14 : vector<2x16xf32> to vector<2x16x1xf32>
    %cst_10 = arith.constant 3.200000e+01 : f32
    %16 = vector.broadcast %cst_10 : f32 to vector<2x16x1xf32>
    %17 = arith.divf %15, %16 : vector<2x16x1xf32>
    %cst_11 = arith.constant 9.99999996E-13 : f32
    %18 = vector.broadcast %cst_11 : f32 to vector<2x16x1xf32>
    %19 = arith.addf %17, %18 : vector<2x16x1xf32>
    %20 = math.rsqrt %19 : vector<2x16x1xf32>
    %21 = vector.broadcast %20 : vector<2x16x1xf32> to vector<2x16x32xf32>
    %22 = arith.mulf %12, %21 : vector<2x16x32xf32>
    %c0_12 = arith.constant 0 : index
    %c0_13 = arith.constant 0 : index
    %c0_14 = arith.constant 0 : index
    %23 = vector.load %arg3[%c0_12, %c0_13, %c0_14] : memref<1x1x32xf32, #tpu.memory_space<vmem>>, vector<1x1x32xf32>
    %24 = vector.broadcast %23 : vector<1x1x32xf32> to vector<2x16x32xf32>
    %25 = arith.mulf %22, %24 : vector<2x16x32xf32>
    %c0_15 = arith.constant 0 : index
    %c0_16 = arith.constant 0 : index
    %c0_17 = arith.constant 0 : index
    %26 = vector.load %arg4[%c0_15, %c0_16, %c0_17] : memref<1x1x32xf32, #tpu.memory_space<vmem>>, vector<1x1x32xf32>
    %27 = vector.broadcast %26 : vector<1x1x32xf32> to vector<2x16x32xf32>
    %28 = arith.addf %25, %27 : vector<2x16x32xf32>
    %c0_18 = arith.constant 0 : index
    %c0_19 = arith.constant 0 : index
    %c0_20 = arith.constant 0 : index
    %29 = vector.load %arg5[%c0_18, %c0_19, %c0_20] : memref<2x16x32xf32, #tpu.memory_space<vmem>>, vector<2x16x32xf32>
    tpu.vector_store %arg5[%c0_18, %c0_19, %c0_20], %28 {strides = array<i32>} : memref<2x16x32xf32, #tpu.memory_space<vmem>>, vector<2x16x32xf32>,
    return
  }
}

module attributes {stable_mosaic.version = 11 : i64} {
  func.func @kernel(%arg0: memref<32x32xf32, #tpu.memory_space<vmem>>, %arg1: memref<1x32x384xf32, #tpu.memory_space<vmem>>, %arg2: memref<1x384xf32, #tpu.memory_space<vmem>>, %arg3: memref<2x384xf32, #tpu.memory_space<vmem>>) attributes {dimension_semantics = [], scalar_prefetch = 0 : i64, scratch_operands = 0 : i64, tpu.core_type = #tpu.core_type<tc>} {
    %c0 = arith.constant 0 : index
    %c0_0 = arith.constant 0 : index
    %0 = vector.load %arg0[%c0, %c0_0] : memref<32x32xf32, #tpu.memory_space<vmem>>, vector<32x32xf32>
    %c0_1 = arith.constant 0 : index
    %c0_2 = arith.constant 0 : index
    %c0_3 = arith.constant 0 : index
    %1 = vector.load %arg1[%c0_1, %c0_2, %c0_3] : memref<1x32x384xf32, #tpu.memory_space<vmem>>, vector<1x32x384xf32>
    %2 = vector.shape_cast %1 : vector<1x32x384xf32> to vector<32x384xf32>
    %cst = arith.constant dense<0.000000e+00> : vector<32x384xf32>
    %3 = tpu.matmul %0, %2, %cst {dimension_numbers = #tpu.dot_dimension_numbers<[1], [0], [0], [1], [0, 0, 1, 1], [], []>} : vector<32x32xf32>, vector<32x384xf32>, vector<32x384xf32> -> vector<32x384xf32>
    %4 = vector.extract_strided_slice %3 {offsets = [0, 0], sizes = [16, 384], strides = [1, 1]} : vector<32x384xf32> to vector<16x384xf32>
    %5 = vector.extract_strided_slice %3 {offsets = [16, 0], sizes = [16, 384], strides = [1, 1]} : vector<32x384xf32> to vector<16x384xf32>
    %cst_4 = arith.constant dense<0xFF800000> : vector<384xf32>
    %6 = vector.multi_reduction <maximumf>, %4, %cst_4 [0] : vector<16x384xf32> to vector<384xf32>
    %7 = vector.shape_cast %6 : vector<384xf32> to vector<1x384xf32>
    %cst_5 = arith.constant dense<0xFF800000> : vector<384xf32>
    %8 = vector.multi_reduction <maximumf>, %5, %cst_5 [0] : vector<16x384xf32> to vector<384xf32>
    %9 = vector.shape_cast %8 : vector<384xf32> to vector<1x384xf32>
    %10 = tpu.concatenate %7, %9 in 0 : vector<1x384xf32>, vector<1x384xf32> -> vector<2x384xf32>
    %c0_6 = arith.constant 0 : index
    %c0_7 = arith.constant 0 : index
    %11 = vector.load %arg2[%c0_6, %c0_7] : memref<1x384xf32, #tpu.memory_space<vmem>>, vector<1x384xf32>
    %12 = vector.broadcast %11 : vector<1x384xf32> to vector<2x384xf32>
    %13 = arith.addf %10, %12 : vector<2x384xf32>
    %c0_8 = arith.constant 0 : index
    %c0_9 = arith.constant 0 : index
    %14 = vector.load %arg3[%c0_8, %c0_9] : memref<2x384xf32, #tpu.memory_space<vmem>>, vector<2x384xf32>
    tpu.vector_store %arg3[%c0_8, %c0_9], %13 {strides = array<i32>} : memref<2x384xf32, #tpu.memory_space<vmem>>, vector<2x384xf32>,
    return
  }
}

module attributes {stable_mosaic.version = 11 : i64} {
  func.func @kernel(%arg0: memref<32x32xf32, #tpu.memory_space<vmem>>, %arg1: memref<2x32x384xf32, #tpu.memory_space<vmem>>, %arg2: memref<1x384xf32, #tpu.memory_space<vmem>>, %arg3: memref<2x384xf32, #tpu.memory_space<vmem>>) attributes {dimension_semantics = [], scalar_prefetch = 0 : i64, scratch_operands = 0 : i64, tpu.core_type = #tpu.core_type<tc>} {
    %c0 = arith.constant 0 : index
    %c0_0 = arith.constant 0 : index
    %0 = vector.load %arg0[%c0, %c0_0] : memref<32x32xf32, #tpu.memory_space<vmem>>, vector<32x32xf32>
    %c0_1 = arith.constant 0 : index
    %c0_2 = arith.constant 0 : index
    %c0_3 = arith.constant 0 : index
    %1 = vector.load %arg1[%c0_1, %c0_2, %c0_3] : memref<2x32x384xf32, #tpu.memory_space<vmem>>, vector<1x32x384xf32>
    %2 = vector.shape_cast %1 : vector<1x32x384xf32> to vector<32x384xf32>
    %cst = arith.constant dense<0.000000e+00> : vector<32x384xf32>
    %3 = tpu.matmul %0, %2, %cst {dimension_numbers = #tpu.dot_dimension_numbers<[1], [0], [0], [1], [0, 0, 1, 1], [], []>} : vector<32x32xf32>, vector<32x384xf32>, vector<32x384xf32> -> vector<32x384xf32>
    %4 = vector.extract_strided_slice %3 {offsets = [0, 0], sizes = [15, 384], strides = [1, 1]} : vector<32x384xf32> to vector<15x384xf32>
    %5 = vector.extract_strided_slice %3 {offsets = [16, 0], sizes = [15, 384], strides = [1, 1]} : vector<32x384xf32> to vector<15x384xf32>
    %c1 = arith.constant 1 : index
    %c0_4 = arith.constant 0 : index
    %c0_5 = arith.constant 0 : index
    %6 = vector.load %arg1[%c1, %c0_4, %c0_5] : memref<2x32x384xf32, #tpu.memory_space<vmem>>, vector<1x32x384xf32>
    %7 = vector.shape_cast %6 : vector<1x32x384xf32> to vector<32x384xf32>
    %cst_6 = arith.constant dense<0.000000e+00> : vector<32x384xf32>
    %8 = tpu.matmul %0, %7, %cst_6 {dimension_numbers = #tpu.dot_dimension_numbers<[1], [0], [0], [1], [0, 0, 1, 1], [], []>} : vector<32x32xf32>, vector<32x384xf32>, vector<32x384xf32> -> vector<32x384xf32>
    %9 = vector.extract_strided_slice %8 {offsets = [1, 0], sizes = [15, 384], strides = [1, 1]} : vector<32x384xf32> to vector<15x384xf32>
    %10 = arith.addf %4, %9 : vector<15x384xf32>
    %11 = vector.extract_strided_slice %8 {offsets = [17, 0], sizes = [15, 384], strides = [1, 1]} : vector<32x384xf32> to vector<15x384xf32>
    %12 = arith.addf %5, %11 : vector<15x384xf32>
    %cst_7 = arith.constant dense<0xFF800000> : vector<384xf32>
    %13 = vector.multi_reduction <maximumf>, %10, %cst_7 [0] : vector<15x384xf32> to vector<384xf32>
    %14 = vector.shape_cast %13 : vector<384xf32> to vector<1x384xf32>
    %cst_8 = arith.constant dense<0xFF800000> : vector<384xf32>
    %15 = vector.multi_reduction <maximumf>, %12, %cst_8 [0] : vector<15x384xf32> to vector<384xf32>
    %16 = vector.shape_cast %15 : vector<384xf32> to vector<1x384xf32>
    %17 = tpu.concatenate %14, %16 in 0 : vector<1x384xf32>, vector<1x384xf32> -> vector<2x384xf32>
    %c0_9 = arith.constant 0 : index
    %c0_10 = arith.constant 0 : index
    %18 = vector.load %arg2[%c0_9, %c0_10] : memref<1x384xf32, #tpu.memory_space<vmem>>, vector<1x384xf32>
    %19 = vector.broadcast %18 : vector<1x384xf32> to vector<2x384xf32>
    %20 = arith.addf %17, %19 : vector<2x384xf32>
    %c0_11 = arith.constant 0 : index
    %c0_12 = arith.constant 0 : index
    %21 = vector.load %arg3[%c0_11, %c0_12] : memref<2x384xf32, #tpu.memory_space<vmem>>, vector<2x384xf32>
    tpu.vector_store %arg3[%c0_11, %c0_12], %20 {strides = array<i32>} : memref<2x384xf32, #tpu.memory_space<vmem>>, vector<2x384xf32>,
    return
  }
}

module attributes {stable_mosaic.version = 11 : i64} {
  func.func @kernel(%arg0: memref<32x32xf32, #tpu.memory_space<vmem>>, %arg1: memref<3x32x384xf32, #tpu.memory_space<vmem>>, %arg2: memref<1x384xf32, #tpu.memory_space<vmem>>, %arg3: memref<2x384xf32, #tpu.memory_space<vmem>>) attributes {dimension_semantics = [], scalar_prefetch = 0 : i64, scratch_operands = 0 : i64, tpu.core_type = #tpu.core_type<tc>} {
    %c0 = arith.constant 0 : index
    %c0_0 = arith.constant 0 : index
    %0 = vector.load %arg0[%c0, %c0_0] : memref<32x32xf32, #tpu.memory_space<vmem>>, vector<32x32xf32>
    %c0_1 = arith.constant 0 : index
    %c0_2 = arith.constant 0 : index
    %c0_3 = arith.constant 0 : index
    %1 = vector.load %arg1[%c0_1, %c0_2, %c0_3] : memref<3x32x384xf32, #tpu.memory_space<vmem>>, vector<1x32x384xf32>
    %2 = vector.shape_cast %1 : vector<1x32x384xf32> to vector<32x384xf32>
    %cst = arith.constant dense<0.000000e+00> : vector<32x384xf32>
    %3 = tpu.matmul %0, %2, %cst {dimension_numbers = #tpu.dot_dimension_numbers<[1], [0], [0], [1], [0, 0, 1, 1], [], []>} : vector<32x32xf32>, vector<32x384xf32>, vector<32x384xf32> -> vector<32x384xf32>
    %4 = vector.extract_strided_slice %3 {offsets = [0, 0], sizes = [14, 384], strides = [1, 1]} : vector<32x384xf32> to vector<14x384xf32>
    %5 = vector.extract_strided_slice %3 {offsets = [16, 0], sizes = [14, 384], strides = [1, 1]} : vector<32x384xf32> to vector<14x384xf32>
    %c1 = arith.constant 1 : index
    %c0_4 = arith.constant 0 : index
    %c0_5 = arith.constant 0 : index
    %6 = vector.load %arg1[%c1, %c0_4, %c0_5] : memref<3x32x384xf32, #tpu.memory_space<vmem>>, vector<1x32x384xf32>
    %7 = vector.shape_cast %6 : vector<1x32x384xf32> to vector<32x384xf32>
    %cst_6 = arith.constant dense<0.000000e+00> : vector<32x384xf32>
    %8 = tpu.matmul %0, %7, %cst_6 {dimension_numbers = #tpu.dot_dimension_numbers<[1], [0], [0], [1], [0, 0, 1, 1], [], []>} : vector<32x32xf32>, vector<32x384xf32>, vector<32x384xf32> -> vector<32x384xf32>
    %9 = vector.extract_strided_slice %8 {offsets = [1, 0], sizes = [14, 384], strides = [1, 1]} : vector<32x384xf32> to vector<14x384xf32>
    %10 = arith.addf %4, %9 : vector<14x384xf32>
    %11 = vector.extract_strided_slice %8 {offsets = [17, 0], sizes = [14, 384], strides = [1, 1]} : vector<32x384xf32> to vector<14x384xf32>
    %12 = arith.addf %5, %11 : vector<14x384xf32>
    %c2 = arith.constant 2 : index
    %c0_7 = arith.constant 0 : index
    %c0_8 = arith.constant 0 : index
    %13 = vector.load %arg1[%c2, %c0_7, %c0_8] : memref<3x32x384xf32, #tpu.memory_space<vmem>>, vector<1x32x384xf32>
    %14 = vector.shape_cast %13 : vector<1x32x384xf32> to vector<32x384xf32>
    %cst_9 = arith.constant dense<0.000000e+00> : vector<32x384xf32>
    %15 = tpu.matmul %0, %14, %cst_9 {dimension_numbers = #tpu.dot_dimension_numbers<[1], [0], [0], [1], [0, 0, 1, 1], [], []>} : vector<32x32xf32>, vector<32x384xf32>, vector<32x384xf32> -> vector<32x384xf32>
    %16 = vector.extract_strided_slice %15 {offsets = [2, 0], sizes = [14, 384], strides = [1, 1]} : vector<32x384xf32> to vector<14x384xf32>
    %17 = arith.addf %10, %16 : vector<14x384xf32>
    %18 = vector.extract_strided_slice %15 {offsets = [18, 0], sizes = [14, 384], strides = [1, 1]} : vector<32x384xf32> to vector<14x384xf32>
    %19 = arith.addf %12, %18 : vector<14x384xf32>
    %cst_10 = arith.constant dense<0xFF800000> : vector<384xf32>
    %20 = vector.multi_reduction <maximumf>, %17, %cst_10 [0] : vector<14x384xf32> to vector<384xf32>
    %21 = vector.shape_cast %20 : vector<384xf32> to vector<1x384xf32>
    %cst_11 = arith.constant dense<0xFF800000> : vector<384xf32>
    %22 = vector.multi_reduction <maximumf>, %19, %cst_11 [0] : vector<14x384xf32> to vector<384xf32>
    %23 = vector.shape_cast %22 : vector<384xf32> to vector<1x384xf32>
    %24 = tpu.concatenate %21, %23 in 0 : vector<1x384xf32>, vector<1x384xf32> -> vector<2x384xf32>
    %c0_12 = arith.constant 0 : index
    %c0_13 = arith.constant 0 : index
    %25 = vector.load %arg2[%c0_12, %c0_13] : memref<1x384xf32, #tpu.memory_space<vmem>>, vector<1x384xf32>
    %26 = vector.broadcast %25 : vector<1x384xf32> to vector<2x384xf32>
    %27 = arith.addf %24, %26 : vector<2x384xf32>
    %c0_14 = arith.constant 0 : index
    %c0_15 = arith.constant 0 : index
    %28 = vector.load %arg3[%c0_14, %c0_15] : memref<2x384xf32, #tpu.memory_space<vmem>>, vector<2x384xf32>
    tpu.vector_store %arg3[%c0_14, %c0_15], %27 {strides = array<i32>} : memref<2x384xf32, #tpu.memory_space<vmem>>, vector<2x384xf32>,
    return
  }
}

module attributes {stable_mosaic.version = 11 : i64} {
  func.func @kernel(%arg0: memref<32x32xf32, #tpu.memory_space<vmem>>, %arg1: memref<5x32x384xf32, #tpu.memory_space<vmem>>, %arg2: memref<1x384xf32, #tpu.memory_space<vmem>>, %arg3: memref<2x384xf32, #tpu.memory_space<vmem>>) attributes {dimension_semantics = [], scalar_prefetch = 0 : i64, scratch_operands = 0 : i64, tpu.core_type = #tpu.core_type<tc>} {
    %c0 = arith.constant 0 : index
    %c0_0 = arith.constant 0 : index
    %0 = vector.load %arg0[%c0, %c0_0] : memref<32x32xf32, #tpu.memory_space<vmem>>, vector<32x32xf32>
    %c0_1 = arith.constant 0 : index
    %c0_2 = arith.constant 0 : index
    %c0_3 = arith.constant 0 : index
    %1 = vector.load %arg1[%c0_1, %c0_2, %c0_3] : memref<5x32x384xf32, #tpu.memory_space<vmem>>, vector<1x32x384xf32>
    %2 = vector.shape_cast %1 : vector<1x32x384xf32> to vector<32x384xf32>
    %cst = arith.constant dense<0.000000e+00> : vector<32x384xf32>
    %3 = tpu.matmul %0, %2, %cst {dimension_numbers = #tpu.dot_dimension_numbers<[1], [0], [0], [1], [0, 0, 1, 1], [], []>} : vector<32x32xf32>, vector<32x384xf32>, vector<32x384xf32> -> vector<32x384xf32>
    %4 = vector.extract_strided_slice %3 {offsets = [0, 0], sizes = [12, 384], strides = [1, 1]} : vector<32x384xf32> to vector<12x384xf32>
    %5 = vector.extract_strided_slice %3 {offsets = [16, 0], sizes = [12, 384], strides = [1, 1]} : vector<32x384xf32> to vector<12x384xf32>
    %c1 = arith.constant 1 : index
    %c0_4 = arith.constant 0 : index
    %c0_5 = arith.constant 0 : index
    %6 = vector.load %arg1[%c1, %c0_4, %c0_5] : memref<5x32x384xf32, #tpu.memory_space<vmem>>, vector<1x32x384xf32>
    %7 = vector.shape_cast %6 : vector<1x32x384xf32> to vector<32x384xf32>
    %cst_6 = arith.constant dense<0.000000e+00> : vector<32x384xf32>
    %8 = tpu.matmul %0, %7, %cst_6 {dimension_numbers = #tpu.dot_dimension_numbers<[1], [0], [0], [1], [0, 0, 1, 1], [], []>} : vector<32x32xf32>, vector<32x384xf32>, vector<32x384xf32> -> vector<32x384xf32>
    %9 = vector.extract_strided_slice %8 {offsets = [1, 0], sizes = [12, 384], strides = [1, 1]} : vector<32x384xf32> to vector<12x384xf32>
    %10 = arith.addf %4, %9 : vector<12x384xf32>
    %11 = vector.extract_strided_slice %8 {offsets = [17, 0], sizes = [12, 384], strides = [1, 1]} : vector<32x384xf32> to vector<12x384xf32>
    %12 = arith.addf %5, %11 : vector<12x384xf32>
    %c2 = arith.constant 2 : index
    %c0_7 = arith.constant 0 : index
    %c0_8 = arith.constant 0 : index
    %13 = vector.load %arg1[%c2, %c0_7, %c0_8] : memref<5x32x384xf32, #tpu.memory_space<vmem>>, vector<1x32x384xf32>
    %14 = vector.shape_cast %13 : vector<1x32x384xf32> to vector<32x384xf32>
    %cst_9 = arith.constant dense<0.000000e+00> : vector<32x384xf32>
    %15 = tpu.matmul %0, %14, %cst_9 {dimension_numbers = #tpu.dot_dimension_numbers<[1], [0], [0], [1], [0, 0, 1, 1], [], []>} : vector<32x32xf32>, vector<32x384xf32>, vector<32x384xf32> -> vector<32x384xf32>
    %16 = vector.extract_strided_slice %15 {offsets = [2, 0], sizes = [12, 384], strides = [1, 1]} : vector<32x384xf32> to vector<12x384xf32>
    %17 = arith.addf %10, %16 : vector<12x384xf32>
    %18 = vector.extract_strided_slice %15 {offsets = [18, 0], sizes = [12, 384], strides = [1, 1]} : vector<32x384xf32> to vector<12x384xf32>
    %19 = arith.addf %12, %18 : vector<12x384xf32>
    %c3 = arith.constant 3 : index
    %c0_10 = arith.constant 0 : index
    %c0_11 = arith.constant 0 : index
    %20 = vector.load %arg1[%c3, %c0_10, %c0_11] : memref<5x32x384xf32, #tpu.memory_space<vmem>>, vector<1x32x384xf32>
    %21 = vector.shape_cast %20 : vector<1x32x384xf32> to vector<32x384xf32>
    %cst_12 = arith.constant dense<0.000000e+00> : vector<32x384xf32>
    %22 = tpu.matmul %0, %21, %cst_12 {dimension_numbers = #tpu.dot_dimension_numbers<[1], [0], [0], [1], [0, 0, 1, 1], [], []>} : vector<32x32xf32>, vector<32x384xf32>, vector<32x384xf32> -> vector<32x384xf32>
    %23 = vector.extract_strided_slice %22 {offsets = [3, 0], sizes = [12, 384], strides = [1, 1]} : vector<32x384xf32> to vector<12x384xf32>
    %24 = arith.addf %17, %23 : vector<12x384xf32>
    %25 = vector.extract_strided_slice %22 {offsets = [19, 0], sizes = [12, 384], strides = [1, 1]} : vector<32x384xf32> to vector<12x384xf32>
    %26 = arith.addf %19, %25 : vector<12x384xf32>
    %c4 = arith.constant 4 : index
    %c0_13 = arith.constant 0 : index
    %c0_14 = arith.constant 0 : index
    %27 = vector.load %arg1[%c4, %c0_13, %c0_14] : memref<5x32x384xf32, #tpu.memory_space<vmem>>, vector<1x32x384xf32>
    %28 = vector.shape_cast %27 : vector<1x32x384xf32> to vector<32x384xf32>
    %cst_15 = arith.constant dense<0.000000e+00> : vector<32x384xf32>
    %29 = tpu.matmul %0, %28, %cst_15 {dimension_numbers = #tpu.dot_dimension_numbers<[1], [0], [0], [1], [0, 0, 1, 1], [], []>} : vector<32x32xf32>, vector<32x384xf32>, vector<32x384xf32> -> vector<32x384xf32>
    %30 = vector.extract_strided_slice %29 {offsets = [4, 0], sizes = [12, 384], strides = [1, 1]} : vector<32x384xf32> to vector<12x384xf32>
    %31 = arith.addf %24, %30 : vector<12x384xf32>
    %32 = vector.extract_strided_slice %29 {offsets = [20, 0], sizes = [12, 384], strides = [1, 1]} : vector<32x384xf32> to vector<12x384xf32>
    %33 = arith.addf %26, %32 : vector<12x384xf32>
    %cst_16 = arith.constant dense<0xFF800000> : vector<384xf32>
    %34 = vector.multi_reduction <maximumf>, %31, %cst_16 [0] : vector<12x384xf32> to vector<384xf32>
    %35 = vector.shape_cast %34 : vector<384xf32> to vector<1x384xf32>
    %cst_17 = arith.constant dense<0xFF800000> : vector<384xf32>
    %36 = vector.multi_reduction <maximumf>, %33, %cst_17 [0] : vector<12x384xf32> to vector<384xf32>
    %37 = vector.shape_cast %36 : vector<384xf32> to vector<1x384xf32>
    %38 = tpu.concatenate %35, %37 in 0 : vector<1x384xf32>, vector<1x384xf32> -> vector<2x384xf32>
    %c0_18 = arith.constant 0 : index
    %c0_19 = arith.constant 0 : index
    %39 = vector.load %arg2[%c0_18, %c0_19] : memref<1x384xf32, #tpu.memory_space<vmem>>, vector<1x384xf32>
    %40 = vector.broadcast %39 : vector<1x384xf32> to vector<2x384xf32>
    %41 = arith.addf %38, %40 : vector<2x384xf32>
    %c0_20 = arith.constant 0 : index
    %c0_21 = arith.constant 0 : index
    %42 = vector.load %arg3[%c0_20, %c0_21] : memref<2x384xf32, #tpu.memory_space<vmem>>, vector<2x384xf32>
    tpu.vector_store %arg3[%c0_20, %c0_21], %41 {strides = array<i32>} : memref<2x384xf32, #tpu.memory_space<vmem>>, vector<2x384xf32>,
    return
  }
}

module attributes {stable_mosaic.version = 11 : i64} {
  func.func @kernel(%arg0: memref<32x32xf32, #tpu.memory_space<vmem>>, %arg1: memref<10x32x384xf32, #tpu.memory_space<vmem>>, %arg2: memref<1x384xf32, #tpu.memory_space<vmem>>, %arg3: memref<2x384xf32, #tpu.memory_space<vmem>>) attributes {dimension_semantics = [], scalar_prefetch = 0 : i64, scratch_operands = 0 : i64, tpu.core_type = #tpu.core_type<tc>} {
    %c0 = arith.constant 0 : index
    %c0_0 = arith.constant 0 : index
    %0 = vector.load %arg0[%c0, %c0_0] : memref<32x32xf32, #tpu.memory_space<vmem>>, vector<32x32xf32>
    %c0_1 = arith.constant 0 : index
    %c0_2 = arith.constant 0 : index
    %c0_3 = arith.constant 0 : index
    %1 = vector.load %arg1[%c0_1, %c0_2, %c0_3] : memref<10x32x384xf32, #tpu.memory_space<vmem>>, vector<1x32x384xf32>
    %2 = vector.shape_cast %1 : vector<1x32x384xf32> to vector<32x384xf32>
    %cst = arith.constant dense<0.000000e+00> : vector<32x384xf32>
    %3 = tpu.matmul %0, %2, %cst {dimension_numbers = #tpu.dot_dimension_numbers<[1], [0], [0], [1], [0, 0, 1, 1], [], []>} : vector<32x32xf32>, vector<32x384xf32>, vector<32x384xf32> -> vector<32x384xf32>
    %4 = vector.extract_strided_slice %3 {offsets = [0, 0], sizes = [7, 384], strides = [1, 1]} : vector<32x384xf32> to vector<7x384xf32>
    %5 = vector.extract_strided_slice %3 {offsets = [16, 0], sizes = [7, 384], strides = [1, 1]} : vector<32x384xf32> to vector<7x384xf32>
    %c1 = arith.constant 1 : index
    %c0_4 = arith.constant 0 : index
    %c0_5 = arith.constant 0 : index
    %6 = vector.load %arg1[%c1, %c0_4, %c0_5] : memref<10x32x384xf32, #tpu.memory_space<vmem>>, vector<1x32x384xf32>
    %7 = vector.shape_cast %6 : vector<1x32x384xf32> to vector<32x384xf32>
    %cst_6 = arith.constant dense<0.000000e+00> : vector<32x384xf32>
    %8 = tpu.matmul %0, %7, %cst_6 {dimension_numbers = #tpu.dot_dimension_numbers<[1], [0], [0], [1], [0, 0, 1, 1], [], []>} : vector<32x32xf32>, vector<32x384xf32>, vector<32x384xf32> -> vector<32x384xf32>
    %9 = vector.extract_strided_slice %8 {offsets = [1, 0], sizes = [7, 384], strides = [1, 1]} : vector<32x384xf32> to vector<7x384xf32>
    %10 = arith.addf %4, %9 : vector<7x384xf32>
    %11 = vector.extract_strided_slice %8 {offsets = [17, 0], sizes = [7, 384], strides = [1, 1]} : vector<32x384xf32> to vector<7x384xf32>
    %12 = arith.addf %5, %11 : vector<7x384xf32>
    %c2 = arith.constant 2 : index
    %c0_7 = arith.constant 0 : index
    %c0_8 = arith.constant 0 : index
    %13 = vector.load %arg1[%c2, %c0_7, %c0_8] : memref<10x32x384xf32, #tpu.memory_space<vmem>>, vector<1x32x384xf32>
    %14 = vector.shape_cast %13 : vector<1x32x384xf32> to vector<32x384xf32>
    %cst_9 = arith.constant dense<0.000000e+00> : vector<32x384xf32>
    %15 = tpu.matmul %0, %14, %cst_9 {dimension_numbers = #tpu.dot_dimension_numbers<[1], [0], [0], [1], [0, 0, 1, 1], [], []>} : vector<32x32xf32>, vector<32x384xf32>, vector<32x384xf32> -> vector<32x384xf32>
    %16 = vector.extract_strided_slice %15 {offsets = [2, 0], sizes = [7, 384], strides = [1, 1]} : vector<32x384xf32> to vector<7x384xf32>
    %17 = arith.addf %10, %16 : vector<7x384xf32>
    %18 = vector.extract_strided_slice %15 {offsets = [18, 0], sizes = [7, 384], strides = [1, 1]} : vector<32x384xf32> to vector<7x384xf32>
    %19 = arith.addf %12, %18 : vector<7x384xf32>
    %c3 = arith.constant 3 : index
    %c0_10 = arith.constant 0 : index
    %c0_11 = arith.constant 0 : index
    %20 = vector.load %arg1[%c3, %c0_10, %c0_11] : memref<10x32x384xf32, #tpu.memory_space<vmem>>, vector<1x32x384xf32>
    %21 = vector.shape_cast %20 : vector<1x32x384xf32> to vector<32x384xf32>
    %cst_12 = arith.constant dense<0.000000e+00> : vector<32x384xf32>
    %22 = tpu.matmul %0, %21, %cst_12 {dimension_numbers = #tpu.dot_dimension_numbers<[1], [0], [0], [1], [0, 0, 1, 1], [], []>} : vector<32x32xf32>, vector<32x384xf32>, vector<32x384xf32> -> vector<32x384xf32>
    %23 = vector.extract_strided_slice %22 {offsets = [3, 0], sizes = [7, 384], strides = [1, 1]} : vector<32x384xf32> to vector<7x384xf32>
    %24 = arith.addf %17, %23 : vector<7x384xf32>
    %25 = vector.extract_strided_slice %22 {offsets = [19, 0], sizes = [7, 384], strides = [1, 1]} : vector<32x384xf32> to vector<7x384xf32>
    %26 = arith.addf %19, %25 : vector<7x384xf32>
    %c4 = arith.constant 4 : index
    %c0_13 = arith.constant 0 : index
    %c0_14 = arith.constant 0 : index
    %27 = vector.load %arg1[%c4, %c0_13, %c0_14] : memref<10x32x384xf32, #tpu.memory_space<vmem>>, vector<1x32x384xf32>
    %28 = vector.shape_cast %27 : vector<1x32x384xf32> to vector<32x384xf32>
    %cst_15 = arith.constant dense<0.000000e+00> : vector<32x384xf32>
    %29 = tpu.matmul %0, %28, %cst_15 {dimension_numbers = #tpu.dot_dimension_numbers<[1], [0], [0], [1], [0, 0, 1, 1], [], []>} : vector<32x32xf32>, vector<32x384xf32>, vector<32x384xf32> -> vector<32x384xf32>
    %30 = vector.extract_strided_slice %29 {offsets = [4, 0], sizes = [7, 384], strides = [1, 1]} : vector<32x384xf32> to vector<7x384xf32>
    %31 = arith.addf %24, %30 : vector<7x384xf32>
    %32 = vector.extract_strided_slice %29 {offsets = [20, 0], sizes = [7, 384], strides = [1, 1]} : vector<32x384xf32> to vector<7x384xf32>
    %33 = arith.addf %26, %32 : vector<7x384xf32>
    %c5 = arith.constant 5 : index
    %c0_16 = arith.constant 0 : index
    %c0_17 = arith.constant 0 : index
    %34 = vector.load %arg1[%c5, %c0_16, %c0_17] : memref<10x32x384xf32, #tpu.memory_space<vmem>>, vector<1x32x384xf32>
    %35 = vector.shape_cast %34 : vector<1x32x384xf32> to vector<32x384xf32>
    %cst_18 = arith.constant dense<0.000000e+00> : vector<32x384xf32>
    %36 = tpu.matmul %0, %35, %cst_18 {dimension_numbers = #tpu.dot_dimension_numbers<[1], [0], [0], [1], [0, 0, 1, 1], [], []>} : vector<32x32xf32>, vector<32x384xf32>, vector<32x384xf32> -> vector<32x384xf32>
    %37 = vector.extract_strided_slice %36 {offsets = [5, 0], sizes = [7, 384], strides = [1, 1]} : vector<32x384xf32> to vector<7x384xf32>
    %38 = arith.addf %31, %37 : vector<7x384xf32>
    %39 = vector.extract_strided_slice %36 {offsets = [21, 0], sizes = [7, 384], strides = [1, 1]} : vector<32x384xf32> to vector<7x384xf32>
    %40 = arith.addf %33, %39 : vector<7x384xf32>
    %c6 = arith.constant 6 : index
    %c0_19 = arith.constant 0 : index
    %c0_20 = arith.constant 0 : index
    %41 = vector.load %arg1[%c6, %c0_19, %c0_20] : memref<10x32x384xf32, #tpu.memory_space<vmem>>, vector<1x32x384xf32>
    %42 = vector.shape_cast %41 : vector<1x32x384xf32> to vector<32x384xf32>
    %cst_21 = arith.constant dense<0.000000e+00> : vector<32x384xf32>
    %43 = tpu.matmul %0, %42, %cst_21 {dimension_numbers = #tpu.dot_dimension_numbers<[1], [0], [0], [1], [0, 0, 1, 1], [], []>} : vector<32x32xf32>, vector<32x384xf32>, vector<32x384xf32> -> vector<32x384xf32>
    %44 = vector.extract_strided_slice %43 {offsets = [6, 0], sizes = [7, 384], strides = [1, 1]} : vector<32x384xf32> to vector<7x384xf32>
    %45 = arith.addf %38, %44 : vector<7x384xf32>
    %46 = vector.extract_strided_slice %43 {offsets = [22, 0], sizes = [7, 384], strides = [1, 1]} : vector<32x384xf32> to vector<7x384xf32>
    %47 = arith.addf %40, %46 : vector<7x384xf32>
    %c7 = arith.constant 7 : index
    %c0_22 = arith.constant 0 : index
    %c0_23 = arith.constant 0 : index
    %48 = vector.load %arg1[%c7, %c0_22, %c0_23] : memref<10x32x384xf32, #tpu.memory_space<vmem>>, vector<1x32x384xf32>
    %49 = vector.shape_cast %48 : vector<1x32x384xf32> to vector<32x384xf32>
    %cst_24 = arith.constant dense<0.000000e+00> : vector<32x384xf32>
    %50 = tpu.matmul %0, %49, %cst_24 {dimension_numbers = #tpu.dot_dimension_numbers<[1], [0], [0], [1], [0, 0, 1, 1], [], []>} : vector<32x32xf32>, vector<32x384xf32>, vector<32x384xf32> -> vector<32x384xf32>
    %51 = vector.extract_strided_slice %50 {offsets = [7, 0], sizes = [7, 384], strides = [1, 1]} : vector<32x384xf32> to vector<7x384xf32>
    %52 = arith.addf %45, %51 : vector<7x384xf32>
    %53 = vector.extract_strided_slice %50 {offsets = [23, 0], sizes = [7, 384], strides = [1, 1]} : vector<32x384xf32> to vector<7x384xf32>
    %54 = arith.addf %47, %53 : vector<7x384xf32>
    %c8 = arith.constant 8 : index
    %c0_25 = arith.constant 0 : index
    %c0_26 = arith.constant 0 : index
    %55 = vector.load %arg1[%c8, %c0_25, %c0_26] : memref<10x32x384xf32, #tpu.memory_space<vmem>>, vector<1x32x384xf32>
    %56 = vector.shape_cast %55 : vector<1x32x384xf32> to vector<32x384xf32>
    %cst_27 = arith.constant dense<0.000000e+00> : vector<32x384xf32>
    %57 = tpu.matmul %0, %56, %cst_27 {dimension_numbers = #tpu.dot_dimension_numbers<[1], [0], [0], [1], [0, 0, 1, 1], [], []>} : vector<32x32xf32>, vector<32x384xf32>, vector<32x384xf32> -> vector<32x384xf32>
    %58 = vector.extract_strided_slice %57 {offsets = [8, 0], sizes = [7, 384], strides = [1, 1]} : vector<32x384xf32> to vector<7x384xf32>
    %59 = arith.addf %52, %58 : vector<7x384xf32>
    %60 = vector.extract_strided_slice %57 {offsets = [24, 0], sizes = [7, 384], strides = [1, 1]} : vector<32x384xf32> to vector<7x384xf32>
    %61 = arith.addf %54, %60 : vector<7x384xf32>
    %c9 = arith.constant 9 : index
    %c0_28 = arith.constant 0 : index
    %c0_29 = arith.constant 0 : index
    %62 = vector.load %arg1[%c9, %c0_28, %c0_29] : memref<10x32x384xf32, #tpu.memory_space<vmem>>, vector<1x32x384xf32>
    %63 = vector.shape_cast %62 : vector<1x32x384xf32> to vector<32x384xf32>
    %cst_30 = arith.constant dense<0.000000e+00> : vector<32x384xf32>
    %64 = tpu.matmul %0, %63, %cst_30 {dimension_numbers = #tpu.dot_dimension_numbers<[1], [0], [0], [1], [0, 0, 1, 1], [], []>} : vector<32x32xf32>, vector<32x384xf32>, vector<32x384xf32> -> vector<32x384xf32>
    %65 = vector.extract_strided_slice %64 {offsets = [9, 0], sizes = [7, 384], strides = [1, 1]} : vector<32x384xf32> to vector<7x384xf32>
    %66 = arith.addf %59, %65 : vector<7x384xf32>
    %67 = vector.extract_strided_slice %64 {offsets = [25, 0], sizes = [7, 384], strides = [1, 1]} : vector<32x384xf32> to vector<7x384xf32>
    %68 = arith.addf %61, %67 : vector<7x384xf32>
    %cst_31 = arith.constant dense<0xFF800000> : vector<384xf32>
    %69 = vector.multi_reduction <maximumf>, %66, %cst_31 [0] : vector<7x384xf32> to vector<384xf32>
    %70 = vector.shape_cast %69 : vector<384xf32> to vector<1x384xf32>
    %cst_32 = arith.constant dense<0xFF800000> : vector<384xf32>
    %71 = vector.multi_reduction <maximumf>, %68, %cst_32 [0] : vector<7x384xf32> to vector<384xf32>
    %72 = vector.shape_cast %71 : vector<384xf32> to vector<1x384xf32>
    %73 = tpu.concatenate %70, %72 in 0 : vector<1x384xf32>, vector<1x384xf32> -> vector<2x384xf32>
    %c0_33 = arith.constant 0 : index
    %c0_34 = arith.constant 0 : index
    %74 = vector.load %arg2[%c0_33, %c0_34] : memref<1x384xf32, #tpu.memory_space<vmem>>, vector<1x384xf32>
    %75 = vector.broadcast %74 : vector<1x384xf32> to vector<2x384xf32>
    %76 = arith.addf %73, %75 : vector<2x384xf32>
    %c0_35 = arith.constant 0 : index
    %c0_36 = arith.constant 0 : index
    %77 = vector.load %arg3[%c0_35, %c0_36] : memref<2x384xf32, #tpu.memory_space<vmem>>, vector<2x384xf32>
    tpu.vector_store %arg3[%c0_35, %c0_36], %76 {strides = array<i32>} : memref<2x384xf32, #tpu.memory_space<vmem>>, vector<2x384xf32>,
    return
  }
}

module attributes {stable_mosaic.version = 11 : i64} {
  func.func @_mask_attn_kernel(%arg0: memref<2x16x32xf32, #tpu.memory_space<vmem>>, %arg1: memref<2x16x1xf32, #tpu.memory_space<vmem>>, %arg2: memref<1x1x32xf32, #tpu.memory_space<vmem>>, %arg3: memref<1x1xf32, #tpu.memory_space<vmem>>, %arg4: memref<2x32xf32, #tpu.memory_space<vmem>>) attributes {dimension_semantics = [], scalar_prefetch = 0 : i64, scratch_operands = 0 : i64, tpu.core_type = #tpu.core_type<tc>} {
    %c0 = arith.constant 0 : index
    %c0_0 = arith.constant 0 : index
    %c0_1 = arith.constant 0 : index
    %0 = vector.load %arg0[%c0, %c0_0, %c0_1] : memref<2x16x32xf32, #tpu.memory_space<vmem>>, vector<2x16x32xf32>
    %c0_2 = arith.constant 0 : index
    %c0_3 = arith.constant 0 : index
    %c0_4 = arith.constant 0 : index
    %1 = vector.load %arg2[%c0_2, %c0_3, %c0_4] : memref<1x1x32xf32, #tpu.memory_space<vmem>>, vector<1x1x32xf32>
    %2 = vector.broadcast %1 : vector<1x1x32xf32> to vector<2x16x32xf32>
    %3 = arith.mulf %0, %2 : vector<2x16x32xf32>
    %cst = arith.constant dense<0.000000e+00> : vector<2x16xf32>
    %4 = vector.multi_reduction <add>, %3, %cst [2] : vector<2x16x32xf32> to vector<2x16xf32>
    %5 = vector.shape_cast %4 : vector<2x16xf32> to vector<2x16x1xf32>
    %c0_5 = arith.constant 0 : index
    %c0_6 = arith.constant 0 : index
    %6 = vector.load %arg3[%c0_5, %c0_6] : memref<1x1xf32, #tpu.memory_space<vmem>>, vector<1x1xf32>
    %7 = vector.extract %6[0, 0] : f32 from vector<1x1xf32>
    %8 = vector.broadcast %7 : f32 to vector<2x16x1xf32>
    %9 = arith.addf %5, %8 : vector<2x16x1xf32>
    %c0_7 = arith.constant 0 : index
    %c0_8 = arith.constant 0 : index
    %c0_9 = arith.constant 0 : index
    %10 = vector.load %arg1[%c0_7, %c0_8, %c0_9] : memref<2x16x1xf32, #tpu.memory_space<vmem>>, vector<2x16x1xf32>
    %cst_10 = arith.constant 0.000000e+00 : f32
    %11 = vector.broadcast %cst_10 : f32 to vector<2x16x1xf32>
    %12 = arith.cmpf ogt, %10, %11 : vector<2x16x1xf32>
    %cst_11 = arith.constant -1.000000e+30 : f32
    %13 = vector.broadcast %cst_11 : f32 to vector<2x16x1xf32>
    %14 = arith.select %12, %9, %13 : vector<2x16x1xi1>, vector<2x16x1xf32>
    %cst_12 = arith.constant dense<0xFF800000> : vector<2x1xf32>
    %15 = vector.multi_reduction <maximumf>, %14, %cst_12 [1] : vector<2x16x1xf32> to vector<2x1xf32>
    %16 = vector.shape_cast %15 : vector<2x1xf32> to vector<2x1x1xf32>
    %17 = vector.broadcast %16 : vector<2x1x1xf32> to vector<2x16x1xf32>
    %18 = arith.subf %14, %17 : vector<2x16x1xf32>
    %19 = math.exp %18 : vector<2x16x1xf32>
    %cst_13 = arith.constant dense<0.000000e+00> : vector<2x1xf32>
    %20 = vector.multi_reduction <add>, %19, %cst_13 [1] : vector<2x16x1xf32> to vector<2x1xf32>
    %21 = vector.shape_cast %20 : vector<2x1xf32> to vector<2x1x1xf32>
    %22 = vector.broadcast %21 : vector<2x1x1xf32> to vector<2x16x1xf32>
    %23 = arith.divf %19, %22 : vector<2x16x1xf32>
    %24 = vector.broadcast %23 : vector<2x16x1xf32> to vector<2x16x32xf32>
    %25 = arith.mulf %24, %0 : vector<2x16x32xf32>
    %cst_14 = arith.constant dense<0.000000e+00> : vector<2x32xf32>
    %26 = vector.multi_reduction <add>, %25, %cst_14 [1] : vector<2x16x32xf32> to vector<2x32xf32>
    %c0_15 = arith.constant 0 : index
    %c0_16 = arith.constant 0 : index
    %27 = vector.load %arg4[%c0_15, %c0_16] : memref<2x32xf32, #tpu.memory_space<vmem>>, vector<2x32xf32>
    tpu.vector_store %arg4[%c0_15, %c0_16], %26 {strides = array<i32>} : memref<2x32xf32, #tpu.memory_space<vmem>>, vector<2x32xf32>,
    return
  }
}

module attributes {stable_mosaic.version = 11 : i64} {
  func.func @_gate_kernel(%arg0: memref<2x32xf32, #tpu.memory_space<vmem>>, %arg1: memref<32x32xf32, #tpu.memory_space<vmem>>, %arg2: memref<1x32xf32, #tpu.memory_space<vmem>>, %arg3: memref<32x5xf32, #tpu.memory_space<vmem>>, %arg4: memref<1x5xf32, #tpu.memory_space<vmem>>, %arg5: memref<2x5xf32, #tpu.memory_space<vmem>>) attributes {dimension_semantics = [], scalar_prefetch = 0 : i64, scratch_operands = 0 : i64, tpu.core_type = #tpu.core_type<tc>} {
    %c0 = arith.constant 0 : index
    %c0_0 = arith.constant 0 : index
    %0 = vector.load %arg0[%c0, %c0_0] : memref<2x32xf32, #tpu.memory_space<vmem>>, vector<2x32xf32>
    %c0_1 = arith.constant 0 : index
    %c0_2 = arith.constant 0 : index
    %1 = vector.load %arg1[%c0_1, %c0_2] : memref<32x32xf32, #tpu.memory_space<vmem>>, vector<32x32xf32>
    %cst = arith.constant dense<0.000000e+00> : vector<2x32xf32>
    %2 = tpu.matmul %0, %1, %cst {dimension_numbers = #tpu.dot_dimension_numbers<[1], [0], [0], [1], [0, 0, 1, 1], [], []>} : vector<2x32xf32>, vector<32x32xf32>, vector<2x32xf32> -> vector<2x32xf32>
    %c0_3 = arith.constant 0 : index
    %c0_4 = arith.constant 0 : index
    %3 = vector.load %arg2[%c0_3, %c0_4] : memref<1x32xf32, #tpu.memory_space<vmem>>, vector<1x32xf32>
    %4 = vector.broadcast %3 : vector<1x32xf32> to vector<2x32xf32>
    %5 = arith.addf %2, %4 : vector<2x32xf32>
    %cst_5 = arith.constant 0.000000e+00 : f32
    %6 = vector.broadcast %cst_5 : f32 to vector<2x32xf32>
    %7 = arith.maximumf %5, %6 : vector<2x32xf32>
    %c0_6 = arith.constant 0 : index
    %c0_7 = arith.constant 0 : index
    %8 = vector.load %arg3[%c0_6, %c0_7] : memref<32x5xf32, #tpu.memory_space<vmem>>, vector<32x5xf32>
    %cst_8 = arith.constant dense<0.000000e+00> : vector<2x5xf32>
    %9 = tpu.matmul %7, %8, %cst_8 {dimension_numbers = #tpu.dot_dimension_numbers<[1], [0], [0], [1], [0, 0, 1, 1], [], []>} : vector<2x32xf32>, vector<32x5xf32>, vector<2x5xf32> -> vector<2x5xf32>
    %c0_9 = arith.constant 0 : index
    %c0_10 = arith.constant 0 : index
    %10 = vector.load %arg4[%c0_9, %c0_10] : memref<1x5xf32, #tpu.memory_space<vmem>>, vector<1x5xf32>
    %11 = vector.broadcast %10 : vector<1x5xf32> to vector<2x5xf32>
    %12 = arith.addf %9, %11 : vector<2x5xf32>
    %cst_11 = arith.constant dense<0xFF800000> : vector<2xf32>
    %13 = vector.multi_reduction <maximumf>, %12, %cst_11 [1] : vector<2x5xf32> to vector<2xf32>
    %14 = vector.shape_cast %13 : vector<2xf32> to vector<2x1xf32>
    %15 = vector.broadcast %14 : vector<2x1xf32> to vector<2x5xf32>
    %16 = arith.subf %12, %15 : vector<2x5xf32>
    %17 = math.exp %16 : vector<2x5xf32>
    %cst_12 = arith.constant dense<0.000000e+00> : vector<2xf32>
    %18 = vector.multi_reduction <add>, %17, %cst_12 [1] : vector<2x5xf32> to vector<2xf32>
    %19 = vector.shape_cast %18 : vector<2xf32> to vector<2x1xf32>
    %20 = vector.broadcast %19 : vector<2x1xf32> to vector<2x5xf32>
    %21 = arith.divf %17, %20 : vector<2x5xf32>
    %c0_13 = arith.constant 0 : index
    %c0_14 = arith.constant 0 : index
    %22 = vector.load %arg5[%c0_13, %c0_14] : memref<2x5xf32, #tpu.memory_space<vmem>>, vector<2x5xf32>
    tpu.vector_store %arg5[%c0_13, %c0_14], %21 {strides = array<i32>} : memref<2x5xf32, #tpu.memory_space<vmem>>, vector<2x5xf32>,
    return
  }
}

module attributes {stable_mosaic.version = 11 : i64} {
  func.func @kernel(%arg0: memref<2x320xf32, #tpu.memory_space<vmem>>, %arg1: memref<320x32xf32, #tpu.memory_space<vmem>>, %arg2: memref<1x32xf32, #tpu.memory_space<vmem>>, %arg3: memref<1x32xf32, #tpu.memory_space<vmem>>, %arg4: memref<1x32xf32, #tpu.memory_space<vmem>>, %arg5: memref<32x1xf32, #tpu.memory_space<vmem>>, %arg6: memref<1x1xf32, #tpu.memory_space<vmem>>, %arg7: memref<2x1xf32, #tpu.memory_space<vmem>>) attributes {dimension_semantics = [], scalar_prefetch = 0 : i64, scratch_operands = 0 : i64, tpu.core_type = #tpu.core_type<tc>} {
    %c0 = arith.constant 0 : index
    %c0_0 = arith.constant 0 : index
    %0 = vector.load %arg0[%c0, %c0_0] : memref<2x320xf32, #tpu.memory_space<vmem>>, vector<2x320xf32>
    %c0_1 = arith.constant 0 : index
    %c0_2 = arith.constant 0 : index
    %1 = vector.load %arg1[%c0_1, %c0_2] : memref<320x32xf32, #tpu.memory_space<vmem>>, vector<320x32xf32>
    %cst = arith.constant dense<0.000000e+00> : vector<2x32xf32>
    %2 = tpu.matmul %0, %1, %cst {dimension_numbers = #tpu.dot_dimension_numbers<[1], [0], [0], [1], [0, 0, 1, 1], [], []>} : vector<2x320xf32>, vector<320x32xf32>, vector<2x32xf32> -> vector<2x32xf32>
    %c0_3 = arith.constant 0 : index
    %c0_4 = arith.constant 0 : index
    %3 = vector.load %arg2[%c0_3, %c0_4] : memref<1x32xf32, #tpu.memory_space<vmem>>, vector<1x32xf32>
    %4 = vector.broadcast %3 : vector<1x32xf32> to vector<2x32xf32>
    %5 = arith.addf %2, %4 : vector<2x32xf32>
    %c0_5 = arith.constant 0 : index
    %c0_6 = arith.constant 0 : index
    %6 = vector.load %arg3[%c0_5, %c0_6] : memref<1x32xf32, #tpu.memory_space<vmem>>, vector<1x32xf32>
    %7 = vector.broadcast %6 : vector<1x32xf32> to vector<2x32xf32>
    %8 = arith.mulf %5, %7 : vector<2x32xf32>
    %c0_7 = arith.constant 0 : index
    %c0_8 = arith.constant 0 : index
    %9 = vector.load %arg4[%c0_7, %c0_8] : memref<1x32xf32, #tpu.memory_space<vmem>>, vector<1x32xf32>
    %10 = vector.broadcast %9 : vector<1x32xf32> to vector<2x32xf32>
    %11 = arith.addf %8, %10 : vector<2x32xf32>
    %cst_9 = arith.constant 0.000000e+00 : f32
    %12 = vector.broadcast %cst_9 : f32 to vector<2x32xf32>
    %13 = arith.maximumf %11, %12 : vector<2x32xf32>
    %c0_10 = arith.constant 0 : index
    %c0_11 = arith.constant 0 : index
    %14 = vector.load %arg5[%c0_10, %c0_11] : memref<32x1xf32, #tpu.memory_space<vmem>>, vector<32x1xf32>
    %cst_12 = arith.constant dense<0.000000e+00> : vector<2x1xf32>
    %15 = tpu.matmul %13, %14, %cst_12 {dimension_numbers = #tpu.dot_dimension_numbers<[1], [0], [0], [1], [0, 0, 1, 1], [], []>} : vector<2x32xf32>, vector<32x1xf32>, vector<2x1xf32> -> vector<2x1xf32>
    %c0_13 = arith.constant 0 : index
    %c0_14 = arith.constant 0 : index
    %16 = vector.load %arg6[%c0_13, %c0_14] : memref<1x1xf32, #tpu.memory_space<vmem>>, vector<1x1xf32>
    %17 = vector.broadcast %16 : vector<1x1xf32> to vector<2x1xf32>
    %18 = arith.addf %15, %17 : vector<2x1xf32>
    %c0_15 = arith.constant 0 : index
    %c0_16 = arith.constant 0 : index
    %19 = vector.load %arg7[%c0_15, %c0_16] : memref<2x1xf32, #tpu.memory_space<vmem>>, vector<2x1xf32>
    tpu.vector_store %arg7[%c0_15, %c0_16], %18 {strides = array<i32>} : memref<2x1xf32, #tpu.memory_space<vmem>>, vector<2x1xf32>,
    return
  }
}

</mosaic_0001>

<bundles_post_ra>
// kernel: model_forward.17
= control target key start
LH: loop header
LB: loop body
LE: loop exit
PB: predicated region body
PF: predicated region fallthrough
CT: control target
= control target key end

     0   :  { %vm38_vm0 = vcmask 523264   ;;  %vm45_vm1 = vcmask 516096   ;;  %v248_v21 = vmov 0   ;;  %vm88_vm6 = vcmask 0   ;;  %s367_s0 = inlined_call_operand.vmem [shape: f32[2,17,64], index: 0, kind: input, shape index: {}]   ;;  %s368_s2 = inlined_call_operand.vmem [shape: f32[1,1,64], index: 2, kind: input, shape index: {}]   ;;  %s369_s3 = inlined_call_operand.<no memory space> [shape: f32[1,1], index: 3, kind: input, shape index: {}]   ;;  %s370_s1 = inlined_call_operand.vmem [shape: f32[2,17,1], index: 1, kind: input, shape index: {}]   ;;  %s371_s4 = inlined_call_operand.vmem [shape: f32[2,64], index: 4, kind: output, shape index: {}]  }
   0x1   :  { %v277_v0 = vld [vmem:[%s367_s0 + $0x18] sm:$0xff]  ;;  %v226_v1 = vld [vmem:[%s368_s2] ss:$0 sm:$0xff]  ;;  %v9_v3 = vstv %s369_s3  ;;  %v295_v6 = vld [vmem:[%s367_s0 + $0x28] sm:$0x1]  ;;  %231 = vset.pattern.permute.xlu1 %v248_v21  ;;  %230 = vset.pattern.permute.xlu0 %v248_v21  ;;  %vm85_vm7 = vcmask 7168  }
   0x2   :  { %v285_v2 = vld [vmem:[%s367_s0] sm:$0xff]  ;;  %v35_v4 = vmul.f32 %v226_v1, %v277_v0  ;;  %v300_v7 = vld [vmem:[%s367_s0 + $0x10] sm:$0x1]  ;;  %10 = vst [vmem:[#allocation2] sm:$0x1] %v9_v3  ;;  %v37_v8 = vmul.f32 %v226_v1, %v295_v6  ;;  %v312_v11 = vld [vmem:[%s367_s0 + $0x8] sm:$0xff] }
   0x3   :  { %v32_v5 = vmul.f32 %v226_v1, %v285_v2  ;;  %v34_v9 = vmul.f32 %v226_v1, %v300_v7  ;;  %v307_v10 = vld [vmem:[%s367_s0 + $0x20] sm:$0xff]  ;;  %v33_v17 = vmul.f32 %v226_v1, %v312_v11  ;;  %v70_v22 = vld [vmem:[%s370_s1 + $0x18] sm:$0xff]  ;;  %v72_v28 = vld [vmem:[%s370_s1 + $0x28] sm:$0x1]  ;;  %vm217_vm10 = vcmask 1041409  }
   0x4   :  { %v49_v12 = vsel %vm38_vm0, %v35_v4, 0.0  ;;  %v55_v14 = vsel %vm45_vm1, %v37_v8, 0.0  ;;  %v36_v16 = vmul.f32 %v226_v1, %v307_v10  ;;  %v67_v27 = vld [vmem:[%s370_s1] sm:$0xff]  ;;  %v69_v29 = vld [vmem:[%s370_s1 + $0x10] sm:$0x1]  ;;  %vm76_vm2 = vcmp.gt.f32.partialorder %v70_v22, 0.0 }
   0x5   :  { %v39_v13 = vsel %vm38_vm0, %v32_v5, 0.0  ;;  %50 = vadd.xlane.f32.xlu1 %v49_v12  ;;  %v46_v15 = vsel %vm45_vm1, %v34_v9, 0.0  ;;  %v42_v20 = vsel %vm38_vm0, %v33_v17, 0.0  ;;  %v71_v31 = vld [vmem:[%s370_s1 + $0x20] sm:$0xff]  ;;  %vm73_vm3 = vcmp.gt.f32.partialorder %v67_v27, 0.0  ;;  %v68_v37 = vld [vmem:[%s370_s1 + $0x8] sm:$0xff] }
   0x6   :  { %40 = vadd.xlane.f32.xlu0 %v39_v13  ;;  %v52_v19 = vsel %vm38_vm0, %v36_v16, 0.0  ;;  %vm78_vm4 = vcmp.gt.f32.partialorder %v72_v28, 0.0  ;;  %vm75_vm5 = vcmp.gt.f32.partialorder %v69_v29, 0.0  ;;  %vm77_vm8 = vcmp.gt.f32.partialorder %v71_v31, 0.0 }
   0x7   :  { %vm74_vm9 = vcmp.gt.f32.partialorder %v68_v37, 0.0  ;;  %vm220_vm11 = vcmask 517120  }
   0x9   :  { %56 = vadd.xlane.f32.xlu1 %v55_v14  ;;  %v58_v18 = vld [vmem:[#allocation2] sm:$0x1] }
   0xa   :  { %47 = vadd.xlane.f32.xlu0 %v46_v15  ;;  %227 = vpush %v58_v18 }
   0xd   :  { %53 = vadd.xlane.f32.xlu1 %v52_v19 }
   0xe   :  { %43 = vadd.xlane.f32.xlu0 %v42_v20 }
  0x3b   :  { %s228_s0 = spop %227 }
  0x3c   :  { %v60_v23 = vstv %s228_s0 }
  0x92   :  { %v51_v24 = vpop.xlane.xlu1 %50 }
  0x93   :  { %v41_v25 = vpop.xlane.xlu0 %40  ;;  %v64_v26 = vadd.f32 %v60_v23, %v51_v24 }
  0x94   :  { %v61_v30 = vadd.f32 %v60_v23, %v41_v25 }
  0x95   :  { %v82_v34 = vsel %vm76_vm2, %v64_v26, -1e+30 }
  0x96   :  { %v57_v32 = vpop.xlane.xlu1 %56  ;;  %v79_v38 = vsel %vm73_vm3, %v61_v30, -1e+30  ;;  %v98_v41 = vsel %vm85_vm7, %v82_v34, -inf }
  0x97   :  { %v48_v33 = vpop.xlane.xlu0 %47  ;;  %v66_v35 = vadd.f32 %v60_v23, %v57_v32  ;;  %v86_v48 = vsel %vm85_vm7, %v79_v38, -inf }
  0x98   :  { %v63_v36 = vadd.f32 %v60_v23, %v48_v33 }
  0x99   :  { %v84_v39 = vsel %vm78_vm4, %v66_v35, -1e+30 }
  0x9a   :  { %v81_v40 = vsel %vm75_vm5, %v63_v36, -1e+30  ;;  %v100_v42 = vsel %vm88_vm6, %v84_v39, -inf  ;;  %v54_v44 = vpop.xlane.xlu1 %53 }
  0x9b   :  { %v89_v43 = vsel %vm88_vm6, %v81_v40, -inf  ;;  %v44_v45 = vpop.xlane.xlu0 %43  ;;  %v65_v46 = vadd.f32 %v60_v23, %v54_v44  ;;  %v101_v49 = vmax.f32 %v98_v41, %v100_v42 }
  0x9c   :  { %v62_v47 = vadd.f32 %v60_v23, %v44_v45  ;;  %v90_v50 = vmax.f32 %v86_v48, %v89_v43 }
  0x9d   :  { %v83_v51 = vsel %vm77_vm8, %v65_v46, -1e+30 }
  0x9e   :  { %v80_v52 = vsel %vm74_vm9, %v62_v47, -1e+30  ;;  %v99_v53 = vsel %vm85_vm7, %v83_v51, -inf }
  0x9f   :  { %v87_v54 = vsel %vm85_vm7, %v80_v52, -inf  ;;  %v102_v55 = vmax.f32 %v101_v49, %v99_v53 }
  0xa0   :  { %v91_v56 = vmax.f32 %v90_v50, %v87_v54 }
  0xa1   :  { %v103_v57 = vrot.slane %v102_v55, 4 }
  0xa2   :  { %v92_v58 = vrot.slane %v91_v56, 4 }
  0xa3   :  { %v104_v59 = vmax.f32 %v102_v55, %v103_v57 }
  0xa4   :  { %v93_v60 = vmax.f32 %v91_v56, %v92_v58 }
  0xa5   :  { %v105_v61 = vrot.slane %v104_v59, 2 }
  0xa6   :  { %v94_v62 = vrot.slane %v93_v60, 2 }
  0xa7   :  { %v106_v63 = vmax.f32 %v104_v59, %v105_v61 }
  0xa8   :  { %v95_v1 = vmax.f32 %v93_v60, %v94_v62 }
  0xa9   :  { %v107_v3 = vrot.slane %v106_v63, 1 }
  0xaa   :  { %v96_v4 = vrot.slane %v95_v1, 1 }
  0xab   :  { %v108_v5 = vmax.f32 %v106_v63, %v107_v3 }
  0xac   :  { %v97_v8 = vmax.f32 %v95_v1, %v96_v4 }
  0xad   :  { %v112_v9 = vsub.f32 %v82_v34, %v108_v5  ;;  %v113_v12 = vsub.f32 %v83_v51, %v108_v5  ;;  %v114_v13 = vsub.f32 %v84_v39, %v108_v5 }
  0xae   :  { %v109_v14 = vsub.f32 %v79_v38, %v97_v8  ;;  %v110_v15 = vsub.f32 %v80_v52, %v97_v8  ;;  %v111_v16 = vsub.f32 %v81_v40, %v97_v8 }
  0xaf   :  { %v121_v17 = vmul.f32 1.442695, %v112_v9  ;;  %v123_v18 = vmul.f32 1.442695, %v113_v12  ;;  %v125_v19 = vmul.f32 1.442695, %v114_v13 }
  0xb0   :  { %v115_v20 = vmul.f32 1.442695, %v109_v14  ;;  %v117_v21 = vmul.f32 1.442695, %v110_v15  ;;  %v119_v22 = vmul.f32 1.442695, %v111_v16 }
  0xb1   :  { %232 = vpow2.f32 %v121_v17 }
  0xb2   :  { %234 = vpow2.f32 %v123_v18 }
  0xb3   :  { %236 = vpow2.f32 %v125_v19 }
  0xb4   :  { %238 = vpow2.f32 %v115_v20 }
  0xb5   :  { %240 = vpow2.f32 %v117_v21 }
  0xb6   :  { %242 = vpow2.f32 %v119_v22 }
  0xbb   :  { %v233_v23 = vpop.eup %232 }
  0xbc   :  { %v235_v24 = vpop.eup %234  ;;  %v138_v25 = vsel %vm85_vm7, %v233_v23, 0.0 }
  0xbd   :  { %v237_v26 = vpop.eup %236  ;;  %v139_v27 = vsel %vm85_vm7, %v235_v24, 0.0 }
  0xbe   :  { %v239_v28 = vpop.eup %238  ;;  %v140_v29 = vadd.f32 %v139_v27, %v138_v25  ;;  %v141_v31 = vsel %vm88_vm6, %v237_v26, 0.0 }
  0xbf   :  { %v241_v30 = vpop.eup %240  ;;  %v127_v32 = vsel %vm85_vm7, %v239_v28, 0.0 }
  0xc0   :  { %v243_v33 = vpop.eup %242  ;;  %v142_v34 = vadd.f32 %v141_v31, %v140_v29  ;;  %v128_v35 = vsel %vm85_vm7, %v241_v30, 0.0 }
  0xc1   :  { %v129_v36 = vadd.f32 %v128_v35, %v127_v32  ;;  %v130_v38 = vsel %vm88_vm6, %v243_v33, 0.0 }
  0xc2   :  { %v143_v37 = vrot.slane %v142_v34, 4 }
  0xc3   :  { %v131_v39 = vadd.f32 %v130_v38, %v129_v36 }
  0xc4   :  { %v144_v40 = vadd.f32 %v143_v37, %v142_v34 }
  0xc5   :  { %v132_v41 = vrot.slane %v131_v39, 4 }
  0xc6   :  { %v145_v42 = vrot.slane %v144_v40, 2 }
  0xc7   :  { %v133_v43 = vadd.f32 %v132_v41, %v131_v39 }
  0xc8   :  { %v146_v44 = vadd.f32 %v145_v42, %v144_v40 }
  0xc9   :  { %v134_v45 = vrot.slane %v133_v43, 2 }
  0xca   :  { %v147_v46 = vrot.slane %v146_v44, 1 }
  0xcb   :  { %v135_v47 = vadd.f32 %v134_v45, %v133_v43 }
  0xcc   :  { %v148_v49 = vadd.f32 %v147_v46, %v146_v44 }
  0xcd   :  { %v136_v48 = vrot.slane %v135_v47, 1 }
  0xcf   :  { %v137_v50 = vadd.f32 %v136_v48, %v135_v47 }
  0xd1   :  { %244 = vrcp.f32 %v137_v50 }
  0xd2   :  { %246 = vrcp.f32 %v148_v49 }
  0xdb   :  { %v245_v51 = vpop.eup %244 }
  0xdc   :  { %v151_v52 = vmul.f32 %v245_v51, %v241_v30  ;;  %v150_v53 = vmul.f32 %v245_v51, %v239_v28  ;;  %v247_v54 = vpop.eup %246  ;;  %v152_v57 = vmul.f32 %v245_v51, %v243_v33 }
  0xdd   :  { %v154_v55 = vmul.f32 %v247_v54, %v233_v23  ;;  %v155_v56 = vmul.f32 %v247_v54, %v235_v24  ;;  %v156_v58 = vmul.f32 %v247_v54, %v237_v26 }
  0xde   :  { %164 = vperm.xlu1 %231, %v151_v52   ;;  %159 = vperm.xlu0 %230, %v150_v53  }
  0xe2   :  { %174 = vperm.xlu1 %231, %v154_v55  }
  0xe6   :  { %179 = vperm.xlu1 %231, %v155_v56  }
  0xea   :  { %169 = vperm.xlu1 %231, %v152_v57  }
  0xee   :  { %184 = vperm.xlu1 %231, %v156_v58  }
 0x15d   :  { %v165_v59 = vpop.permute.xlu1 %164  ;;  %v160_v60 = vpop.permute.xlu0 %159 }
 0x15e   :  { %v188_v62 = vmul.f32 %v165_v59, %v312_v11  ;;  %v187_v63 = vmul.f32 %v160_v60, %v285_v2 }
 0x160   :  { %v194_v3 = vsel %vm38_vm0, %v188_v62, 0.0  ;;  %v193_v4 = vsel %vm38_vm0, %v187_v63, 0.0 }
 0x161   :  { %v175_v61 = vpop.permute.xlu1 %174  ;;  %v195_v13 = vadd.f32 %v194_v3, %v193_v4 }
 0x162   :  { %v190_v9 = vmul.f32 %v175_v61, %v277_v0 }
 0x164   :  { %v204_v2 = vsel %vm38_vm0, %v190_v9, 0.0 }
 0x165   :  { %v180_v1 = vpop.permute.xlu1 %179 }
 0x166   :  { %v191_v5 = vmul.f32 %v180_v1, %v307_v10 }
 0x168   :  { %v205_v14 = vsel %vm38_vm0, %v191_v5, 0.0 }
 0x169   :  { %v170_v8 = vpop.permute.xlu1 %169  ;;  %v206_v18 = vadd.f32 %v205_v14, %v204_v2 }
 0x16a   :  { %v189_v12 = vmul.f32 %v170_v8, %v300_v7 }
 0x16c   :  { %v196_v15 = vsel %vm45_vm1, %v189_v12, 0.0 }
 0x16d   :  { %v197_v11 = vadd.f32 %v196_v15, %v195_v13  ;;  %v185_v16 = vpop.permute.xlu1 %184 }
 0x16e   :  { %v192_v17 = vmul.f32 %v185_v16, %v295_v6 }
 0x16f   :  { %v198_v19 = vrot.slane %v197_v11, 4 }
 0x170   :  { %v207_v10 = vsel %vm45_vm1, %v192_v17, 0.0 }
 0x171   :  { %v199_v20 = vadd.f32 %v198_v19, %v197_v11  ;;  %v208_v21 = vadd.f32 %v207_v10, %v206_v18 }
 0x173   :  { %v200_v0 = vrot.slane %v199_v20, 2  ;;  %v209_v22 = vrot.slane %v208_v21, 4 }
 0x175   :  { %v201_v7 = vadd.f32 %v200_v0, %v199_v20  ;;  %v210_v23 = vadd.f32 %v209_v22, %v208_v21 }
 0x177   :  { %v211_v24 = vrot.slane %v210_v23, 2  ;;  %v202_v25 = vrot.slane %v201_v7, 1 }
 0x179   :  { %v212_v26 = vadd.f32 %v211_v24, %v210_v23  ;;  %v203_v28 = vadd.f32 %v202_v25, %v201_v7 }
 0x17b   :  { %v213_v27 = vrot.slane %v212_v26, 1 }
 0x17d   :  { %v214_v29 = vadd.f32 %v213_v27, %v212_v26 }
 0x17f   :  { %v218_v30 = vsel %vm217_vm10, %v214_v29, %v203_v28 }
 0x180   :  { %221 = vst.msk [vmem:[%s371_s4] sm:$0x3] %vm220_vm11, %v218_v30 }

// kernel: model_forward.16
= control target key start
LH: loop header
LB: loop body
LE: loop exit
PB: predicated region body
PF: predicated region fallthrough
CT: control target
= control target key end

     0   :  { %s540_s12 = smov 0   ;;  %s608_s0 = inlined_call_operand.vmem [shape: f32[2,16,2,96], index: 0, kind: input, shape index: {}]   ;;  %s609_s1 = inlined_call_operand.vmem [shape: f32[2,32,96], index: 1, kind: input, shape index: {}]   ;;  %s610_s2 = inlined_call_operand.vmem [shape: f32[2,1,96], index: 2, kind: input, shape index: {}]   ;;  %s611_s3 = inlined_call_operand.vmem [shape: f32[2,16,2,32], index: 3, kind: output, shape index: {}]  }
   0x1 LB: > { %s546_s13 = sadd.s32 4294967295, %s507_s12   ;;  %p430_p0 = scmp.ge.s32.totalorder %s507_s12, 1  ;;  %s507_s12 = sphi %s540_s12, %s13_s12  }
   0x2   : > { %p155_p1 = scmp.lt.s32.totalorder %s507_s12, 3 }
   0x4   : > { %p156_p2 = pnand %p430_p0, %p155_p1 }
   0x5   : > { %p187_p3 = scmp.lt.s32.totalorder (!%p156_p2), %s546_s13, 1  ;;  %vm210_vm0 = vcmask (!%p156_p2), 254976   ;;  %v513_v0 = vmov (!%p156_p2), 0.0   ;;  %s576_s28 = smov (!%p156_p2), 0  }
   0x6   : > { %159 = sbr.rel (%p156_p2) target bundleno = 726 (0x2d6), region = 32  ;;  %211 = vst.msk [vmem:[#allocation2] sm:$0x3] (!%p156_p2), %vm210_vm0, %v513_v0 }
   0xd   : > { %s188_s14 = scalar_select %p187_p3, %s546_s13, 1 }
   0xf   : > { %s553_s15 = sshll.u32 %s188_s14, 5  ;;  %s199_s18 = scalar_lea.vmem %s610_s2, %s188_s14 }
  0x10   : > { %s191_s21 = scalar_lea.vmem %s608_s0, %s553_s15  ;;  %s196_s24 = scalar_lea.vmem %s609_s1, %s553_s15  ;;  %v566_v1 = vld [vmem:[%s199_s18] ss:$0 sm:$0xff] }
  0x11   : > { %s204_s27 = scalar_lea.vmem %s611_s3, %s553_s15  ;;  %v572_v2 = vld [vmem:[%s196_s24] sm:$0xff]  ;;  %v574_v3 = vld [vmem:[%s196_s24 + $0x8] sm:$0xff]  ;;  %v207_v4 = vld [vmem:[%s196_s24 + $0x10] sm:$0xff] }
  0x12   : > { %v208_v5 = vld [vmem:[%s196_s24 + $0x18] sm:$0xff] }
  0x13 LB: >> { %v463_v6 = vpack.c.bf16 %v574_v3, %v572_v2  ;;  %v514_v7 = vmov 0.0|0.0   ;;  %v466_v8 = vpack.c.bf16 %v208_v5, %v207_v4  ;;  %vm515_vm1 = vmmov 0   ;;  %v224_v10 = vld [vmem:[#allocation2] sm:$0x3]  ;;  %s517_s29 = smov 64   ;;  %p218_p4 = scmp.eq.s32.totalorder %s546_s13, 0  ;;  %s511_s28 = sphi %s576_s28, %s217_s28  }
  0x14   : >> { %462 = vmatprep.subr.bf16.mxu0 %v514_v7  ;;  %v516_v9 = vmov 0.0   ;;  %vm231_vm2 = vcmask 261120   ;;  %s219_s30 = ssub.s32 15, %s511_s28  ;;  %s518_s9 = smov 96  }
  0x15   : >> { %464 = vmatpush3.bf16.msra.mxu0 %v463_v6  ;;  %459 = vmatprep.mubr.msk.f32.mxu0 %vm515_vm1, %v516_v9  ;;  %s587_s4 = scalar_select %p218_p4, %s511_s28, %s219_s30 }
  0x16   : >> { %465 = vmatprep.subr.bf16.mxu0 %v514_v7  ;;  %s519_s10 = smov 32   ;;  %s217_s28 = sadd.s32 1, %s511_s28  }
  0x17   : >> { %s437_s5 = sshll.u32 %s587_s4, 1  ;;  %p214_p5 = scmp.ge.s32.totalorder %s217_s28, 16  }
  0x18   : >> { %s222_s8 = scalar_lea.vmem %s191_s21, %s437_s5  ;;  %s339_s16 = scalar_lea.vmem %s204_s27, %s437_s5 }
  0x19   : >> { %467 = vmatpush3.bf16.msra.mxu0 %v466_v8  ;;  %v223_v14 = vld [vmem:[%s222_s8] sm:$0x3] }
  0x1c   : >> { %460 = vmatmul.mubr.msk.f32.vlgmr.msra.gmra.mrb[0].mxu0 %vm231_vm2, %v224_v10 }
  0xef   : >> { %v301_v11 = vpop.f32.mrb[0].mxu0 }
  0xf0   : >> { %v302_v12 = vadd.f32 %v566_v1, %v301_v11  ;;  %v461_v13 = vpop.f32.mrb[1].mxu0 }
  0xf2   : >> { %313 = vrot.lane.b32.xlu0 %v302_v12, %s517_s29  ;;  %v305_v15 = vadd.f32 %v302_v12, %v223_v14 }
  0xf4   : >> { %v440_v16 = vmul.f32 -1.442695, %v305_v15 }
  0xf6   : >> { %491 = vpow2.f32 %v440_v16 }
 0x100   : >> { %v492_v17 = vpop.eup %491 }
 0x101   : >> { %v309_v18 = vadd.f32 1.0, %v492_v17 }
 0x103   : >> { %493 = vrcp.f32 %v309_v18 }
 0x10d   : >> { %v494_v19 = vpop.eup %493 }
 0x10e   : >> { %v323_v26 = vsub.f32 1.0, %v494_v19 }
 0x164   : >> { %v314_v20 = vpop.permute.xlu0 %313 }
 0x165   : >> { %v316_v21 = vmul.f32 %v494_v19, %v314_v20 }
 0x167   : >> { %318 = vrot.lane.b32.xlu0 %v316_v21, %s517_s29 }
 0x1d9   : >> { %v319_v22 = vpop.permute.xlu0 %318 }
 0x1da   : >> { %v321_v23 = vadd.f32 %v319_v22, %v223_v14 }
 0x1dc   : >> { %495 = vtanh.f32 %v321_v23 }
 0x1e6   : >> { %v496_v24 = vpop.eup %495 }
 0x1e7   : >> { %325 = vrot.lane.b32.xlu1 %v496_v24, %s518_s9 }
 0x1eb   : >> { %329 = vrot.lane.b32.xlu1 %v224_v10, %s519_s10 }
 0x259   : >> { %v326_v25 = vpop.permute.xlu1 %325 }
 0x25a   : >> { %v328_v28 = vmul.f32 %v326_v25, %v323_v26 }
 0x25d   : >> { %v330_v27 = vpop.permute.xlu1 %329 }
 0x25e   : >> { %v332_v29 = vmul.f32 %v494_v19, %v330_v27 }
 0x260   : >> { %v333_v30 = vadd.f32 %v332_v29, %v328_v28 }
 0x262   : >> { %335 = vrot.lane.b32.xlu0 %v333_v30, %s518_s9 }
 0x2cf   : > { %216 = sbr.rel (!%p214_p5) target bundleno = 19 (0x13), region = 77 }
 0x2d4   : >> { %v336_v31 = vpop.permute.xlu0 %335 }
 0x2d5   : >> { %338 = vst.msk [vmem:[#allocation2] sm:$0x3] %vm210_vm0, %v336_v31  ;;  %340 = vst.msk [vmem:[%s339_s16] sm:$0x3] %vm210_vm0, %v336_v31 }
 0x2d6 PF: > { %s13_s12 = sadd.s32 1, %s507_s12  }
 0x2d7   : > { %p10_p6 = scmp.ge.s32.totalorder %s13_s12, 4  }
 0x2d9   :  { %12 = sbr.rel (!%p10_p6) target bundleno = 1 (0x1), region = 88 }

// kernel: model_forward.15
= control target key start
LH: loop header
LB: loop body
LE: loop exit
PB: predicated region body
PF: predicated region fallthrough
CT: control target
= control target key end

     0   :  { %vm187_vm0 = vcmask 254976   ;;  %s943_s0 = inlined_call_operand.vmem [shape: f32[16,2,32], index: 0, kind: input, shape index: {}]   ;;  %s944_s1 = inlined_call_operand.vmem [shape: f32[16,1,32], index: 1, kind: input, shape index: {}]   ;;  %s945_s2 = inlined_call_operand.vmem [shape: f32[1,1,32], index: 2, kind: input, shape index: {}]   ;;  %s946_s3 = inlined_call_operand.vmem [shape: f32[1,1,32], index: 3, kind: input, shape index: {}]   ;;  %s947_s4 = inlined_call_operand.vmem [shape: f32[1,1,32], index: 4, kind: input, shape index: {}]   ;;  %s948_s5 = inlined_call_operand.vmem [shape: f32[16,2,32], index: 5, kind: output, shape index: {}]  }
   0x1   :  { %v20_v0 = vld [vmem:[%s943_s0] sm:$0x3]  ;;  %v22_v4 = vld [vmem:[%s943_s0 + $0x4] sm:$0x3]  ;;  %v465_v5 = vld [vmem:[%s944_s1 + $0x2] ss:$0 sm:$0xff] }
   0x2   :  { %v463_v1 = vld [vmem:[%s944_s1] ss:$0 sm:$0xff]  ;;  %v21_v6 = vld [vmem:[%s943_s0 + $0x2] sm:$0x3]  ;;  %v150_v7 = vadd.f32 %v465_v5, %v22_v4  ;;  %v464_v8 = vld [vmem:[%s944_s1 + $0x1] ss:$0 sm:$0xff] }
   0x3   :  { %v553_v2 = vld [vmem:[%s945_s2] ss:$0 sm:$0xff]  ;;  %v148_v3 = vadd.f32 %v463_v1, %v20_v0  ;;  %v23_v9 = vld [vmem:[%s943_s0 + $0x6] sm:$0x3]  ;;  %v466_v10 = vld [vmem:[%s944_s1 + $0x3] ss:$0 sm:$0xff]  ;;  %v149_v12 = vadd.f32 %v464_v8, %v21_v6 }
   0x4   :  { %v151_v13 = vadd.f32 %v466_v10, %v23_v9  ;;  %v24_v14 = vld [vmem:[%s943_s0 + $0x8] sm:$0x3]  ;;  %v467_v15 = vld [vmem:[%s944_s1 + $0x4] ss:$0 sm:$0xff]  ;;  %v25_v16 = vld [vmem:[%s943_s0 + $0xa] sm:$0x3]  ;;  %v586_v17 = vadd.f32 %v553_v2, %v150_v7 }
   0x5   :  { %v574_v11 = vadd.f32 %v553_v2, %v148_v3  ;;  %v152_v18 = vadd.f32 %v467_v15, %v24_v14  ;;  %v468_v19 = vld [vmem:[%s944_s1 + $0x5] ss:$0 sm:$0xff]  ;;  %v26_v20 = vld [vmem:[%s943_s0 + $0xc] sm:$0x3]  ;;  %v469_v21 = vld [vmem:[%s944_s1 + $0x6] ss:$0 sm:$0xff]  ;;  %v600_v23 = vadd.f32 %v553_v2, %v149_v12 }
   0x6   :  { %v603_v24 = vadd.f32 %v553_v2, %v151_v13  ;;  %v153_v25 = vadd.f32 %v468_v19, %v25_v16  ;;  %v27_v26 = vld [vmem:[%s943_s0 + $0xe] sm:$0x3]  ;;  %v470_v27 = vld [vmem:[%s944_s1 + $0x7] ss:$0 sm:$0xff]  ;;  %v194_v28 = vsel %vm187_vm0, %v586_v17, 0.0  ;;  %v154_v31 = vadd.f32 %v469_v21, %v26_v20 }
   0x7   :  { %v188_v22 = vsel %vm187_vm0, %v574_v11, 0.0  ;;  %195 = vadd.xlane.f32.xlu1 %v194_v28  ;;  %v191_v29 = vsel %vm187_vm0, %v600_v23, 0.0  ;;  %v616_v30 = vadd.f32 %v553_v2, %v152_v18  ;;  %v155_v34 = vadd.f32 %v470_v27, %v27_v26  ;;  %v28_v35 = vld [vmem:[%s943_s0 + $0x10] sm:$0x3]  ;;  %v471_v36 = vld [vmem:[%s944_s1 + $0x8] ss:$0 sm:$0xff] }
   0x8   :  { %189 = vadd.xlane.f32.xlu0 %v188_v22  ;;  %v197_v32 = vsel %vm187_vm0, %v603_v24, 0.0  ;;  %v621_v33 = vadd.f32 %v553_v2, %v153_v25  ;;  %v29_v37 = vld [vmem:[%s943_s0 + $0x12] sm:$0x3]  ;;  %v472_v38 = vld [vmem:[%s944_s1 + $0x9] ss:$0 sm:$0xff]  ;;  %v638_v40 = vadd.f32 %v553_v2, %v154_v31  ;;  %v156_v41 = vadd.f32 %v471_v36, %v28_v35 }
   0x9   :  { %v200_v39 = vsel %vm187_vm0, %v616_v30, 0.0  ;;  %v643_v43 = vadd.f32 %v553_v2, %v155_v34  ;;  %v157_v44 = vadd.f32 %v472_v38, %v29_v37  ;;  %v30_v45 = vld [vmem:[%s943_s0 + $0x14] sm:$0x3]  ;;  %v473_v46 = vld [vmem:[%s944_s1 + $0xa] ss:$0 sm:$0xff] }
   0xa   :  { %v203_v42 = vsel %vm187_vm0, %v621_v33, 0.0  ;;  %v31_v47 = vld [vmem:[%s943_s0 + $0x16] sm:$0x3]  ;;  %v474_v48 = vld [vmem:[%s944_s1 + $0xb] ss:$0 sm:$0xff]  ;;  %v206_v49 = vsel %vm187_vm0, %v638_v40, 0.0  ;;  %v660_v50 = vadd.f32 %v553_v2, %v156_v41  ;;  %v158_v51 = vadd.f32 %v473_v46, %v30_v45 }
   0xb   :  { %198 = vadd.xlane.f32.xlu1 %v197_v32  ;;  %v209_v52 = vsel %vm187_vm0, %v643_v43, 0.0  ;;  %v665_v53 = vadd.f32 %v553_v2, %v157_v44  ;;  %v159_v54 = vadd.f32 %v474_v48, %v31_v47  ;;  %v32_v55 = vld [vmem:[%s943_s0 + $0x18] sm:$0x3]  ;;  %v475_v56 = vld [vmem:[%s944_s1 + $0xc] ss:$0 sm:$0xff] }
   0xc   :  { %192 = vadd.xlane.f32.xlu0 %v191_v29  ;;  %v33_v57 = vld [vmem:[%s943_s0 + $0x1a] sm:$0x3]  ;;  %v476_v58 = vld [vmem:[%s944_s1 + $0xd] ss:$0 sm:$0xff]  ;;  %v212_v59 = vsel %vm187_vm0, %v660_v50, 0.0  ;;  %v682_v60 = vadd.f32 %v553_v2, %v158_v51  ;;  %v160_v61 = vadd.f32 %v475_v56, %v32_v55 }
   0xd   :  { %v215_v62 = vsel %vm187_vm0, %v665_v53, 0.0  ;;  %v687_v63 = vadd.f32 %v553_v2, %v159_v54  ;;  %v161_v0 = vadd.f32 %v476_v58, %v33_v57  ;;  %v34_v1 = vld [vmem:[%s943_s0 + $0x1c] sm:$0x3]  ;;  %v477_v3 = vld [vmem:[%s944_s1 + $0xe] ss:$0 sm:$0xff] }
   0xe   :  { %v35_v4 = vld [vmem:[%s943_s0 + $0x1e] sm:$0x3]  ;;  %v478_v5 = vld [vmem:[%s944_s1 + $0xf] ss:$0 sm:$0xff]  ;;  %v218_v6 = vsel %vm187_vm0, %v682_v60, 0.0  ;;  %v704_v7 = vadd.f32 %v553_v2, %v160_v61  ;;  %v162_v8 = vadd.f32 %v477_v3, %v34_v1 }
   0xf   :  { %204 = vadd.xlane.f32.xlu1 %v203_v42  ;;  %v221_v9 = vsel %vm187_vm0, %v687_v63, 0.0  ;;  %v709_v10 = vadd.f32 %v553_v2, %v161_v0  ;;  %v163_v12 = vadd.f32 %v478_v5, %v35_v4 }
  0x10   :  { %201 = vadd.xlane.f32.xlu0 %v200_v39  ;;  %v224_v13 = vsel %vm187_vm0, %v704_v7, 0.0  ;;  %v714_v14 = vadd.f32 %v553_v2, %v162_v8 }
  0x11   :  { %v227_v15 = vsel %vm187_vm0, %v709_v10, 0.0  ;;  %v719_v16 = vadd.f32 %v553_v2, %v163_v12 }
  0x12   :  { %v230_v18 = vsel %vm187_vm0, %v714_v14, 0.0 }
  0x13   :  { %210 = vadd.xlane.f32.xlu1 %v209_v52  ;;  %v233_v19 = vsel %vm187_vm0, %v719_v16, 0.0 }
  0x14   :  { %207 = vadd.xlane.f32.xlu0 %v206_v49 }
  0x17   :  { %216 = vadd.xlane.f32.xlu1 %v215_v62 }
  0x18   :  { %213 = vadd.xlane.f32.xlu0 %v212_v59 }
  0x1b   :  { %222 = vadd.xlane.f32.xlu1 %v221_v9 }
  0x1c   :  { %219 = vadd.xlane.f32.xlu0 %v218_v6 }
  0x1f   :  { %228 = vadd.xlane.f32.xlu1 %v227_v15 }
  0x20   :  { %225 = vadd.xlane.f32.xlu0 %v224_v13 }
  0x23   :  { %234 = vadd.xlane.f32.xlu1 %v233_v19 }
  0x24   :  { %231 = vadd.xlane.f32.xlu0 %v230_v18 }
  0x94   :  { %v196_v22 = vpop.xlane.xlu1 %195 }
  0x95   :  { %v190_v20 = vpop.xlane.xlu0 %189  ;;  %v239_v25 = vmul.f32 0.03125, %v196_v22 }
  0x96   :  { %v237_v21 = vmul.f32 0.03125, %v190_v20 }
  0x97   :  { %v729_v2 = vsub.f32 %v586_v17, %v239_v25 }
  0x98   :  { %v726_v26 = vsub.f32 %v574_v11, %v237_v21  ;;  %v199_v29 = vpop.xlane.xlu1 %198 }
  0x99   :  { %v193_v27 = vpop.xlane.xlu0 %192  ;;  %v240_v32 = vmul.f32 0.03125, %v199_v29  ;;  %v271_v34 = vmul.f32 %v729_v2, %v729_v2 }
  0x9a   :  { %v238_v28 = vmul.f32 0.03125, %v193_v27  ;;  %v269_v31 = vmul.f32 %v726_v26, %v726_v26 }
  0x9b   :  { %v740_v11 = vsub.f32 %v603_v24, %v240_v32  ;;  %v291_v39 = vsel %vm187_vm0, %v271_v34, 0.0 }
  0x9c   :  { %v736_v35 = vsub.f32 %v600_v23, %v238_v28  ;;  %v285_v36 = vsel %vm187_vm0, %v269_v31, 0.0  ;;  %v205_v38 = vpop.xlane.xlu1 %204 }
  0x9d   :  { %286 = vadd.xlane.f32.xlu0 %v285_v36  ;;  %v202_v17 = vpop.xlane.xlu0 %201  ;;  %v242_v42 = vmul.f32 0.03125, %v205_v38  ;;  %v272_v44 = vmul.f32 %v740_v11, %v740_v11 }
  0x9e   :  { %v241_v37 = vmul.f32 0.03125, %v202_v17  ;;  %v270_v41 = vmul.f32 %v736_v35, %v736_v35 }
  0x9f   :  { %v752_v24 = vsub.f32 %v621_v33, %v242_v42  ;;  %v294_v49 = vsel %vm187_vm0, %v272_v44, 0.0 }
  0xa0   :  { %v748_v23 = vsub.f32 %v616_v30, %v241_v37  ;;  %v288_v45 = vsel %vm187_vm0, %v270_v41, 0.0  ;;  %v211_v48 = vpop.xlane.xlu1 %210 }
  0xa1   :  { %292 = vadd.xlane.f32.xlu0 %v291_v39  ;;  %289 = vadd.xlane.f32.xlu1 %v288_v45  ;;  %v208_v46 = vpop.xlane.xlu0 %207  ;;  %v244_v52 = vmul.f32 0.03125, %v211_v48  ;;  %v274_v30 = vmul.f32 %v752_v24, %v752_v24 }
  0xa2   :  { %v243_v47 = vmul.f32 0.03125, %v208_v46  ;;  %v273_v51 = vmul.f32 %v748_v23, %v748_v23 }
  0xa3   :  { %v764_v55 = vsub.f32 %v643_v43, %v244_v52  ;;  %v300_v59 = vsel %vm187_vm0, %v274_v30, 0.0 }
  0xa4   :  { %v760_v54 = vsub.f32 %v638_v40, %v243_v47  ;;  %v297_v33 = vsel %vm187_vm0, %v273_v51, 0.0  ;;  %v217_v58 = vpop.xlane.xlu1 %216 }
  0xa5   :  { %295 = vadd.xlane.f32.xlu1 %v294_v49  ;;  %298 = vadd.xlane.f32.xlu0 %v297_v33  ;;  %v214_v56 = vpop.xlane.xlu0 %213  ;;  %v246_v62 = vmul.f32 0.03125, %v217_v58  ;;  %v276_v40 = vmul.f32 %v764_v55, %v764_v55 }
  0xa6   :  { %v245_v57 = vmul.f32 0.03125, %v214_v56  ;;  %v275_v61 = vmul.f32 %v760_v54, %v760_v54 }
  0xa7   :  { %v776_v1 = vsub.f32 %v665_v53, %v246_v62  ;;  %v306_v6 = vsel %vm187_vm0, %v276_v40, 0.0 }
  0xa8   :  { %v772_v0 = vsub.f32 %v660_v50, %v245_v57  ;;  %v303_v43 = vsel %vm187_vm0, %v275_v61, 0.0  ;;  %v223_v5 = vpop.xlane.xlu1 %222 }
  0xa9   :  { %301 = vadd.xlane.f32.xlu1 %v300_v59  ;;  %304 = vadd.xlane.f32.xlu0 %v303_v43  ;;  %v220_v3 = vpop.xlane.xlu0 %219  ;;  %v248_v9 = vmul.f32 0.03125, %v223_v5  ;;  %v278_v50 = vmul.f32 %v776_v1, %v776_v1 }
  0xaa   :  { %v247_v4 = vmul.f32 0.03125, %v220_v3  ;;  %v277_v8 = vmul.f32 %v772_v0, %v772_v0 }
  0xab   :  { %v788_v13 = vsub.f32 %v687_v63, %v248_v9  ;;  %v312_v20 = vsel %vm187_vm0, %v278_v50, 0.0 }
  0xac   :  { %v784_v12 = vsub.f32 %v682_v60, %v247_v4  ;;  %v309_v53 = vsel %vm187_vm0, %v277_v8, 0.0  ;;  %v229_v19 = vpop.xlane.xlu1 %228  ;;  %v824_v4 = vld [vmem:[%s946_s3] ss:$0 sm:$0xff] }
  0xad   :  { %307 = vadd.xlane.f32.xlu1 %v306_v6  ;;  %310 = vadd.xlane.f32.xlu0 %v309_v53  ;;  %v226_v15 = vpop.xlane.xlu0 %225  ;;  %v250_v22 = vmul.f32 0.03125, %v229_v19  ;;  %v280_v60 = vmul.f32 %v788_v13, %v788_v13  ;;  %v830_v53 = vld [vmem:[%s947_s4] ss:$0 sm:$0xff] }
  0xae   :  { %v249_v18 = vmul.f32 0.03125, %v226_v15  ;;  %v279_v21 = vmul.f32 %v784_v12, %v784_v12 }
  0xaf   :  { %v800_v27 = vsub.f32 %v709_v10, %v250_v22  ;;  %v318_v32 = vsel %vm187_vm0, %v280_v60, 0.0 }
  0xb0   :  { %v796_v25 = vsub.f32 %v704_v7, %v249_v18  ;;  %v315_v63 = vsel %vm187_vm0, %v279_v21, 0.0  ;;  %v235_v31 = vpop.xlane.xlu1 %234 }
  0xb1   :  { %313 = vadd.xlane.f32.xlu1 %v312_v20  ;;  %316 = vadd.xlane.f32.xlu0 %v315_v63  ;;  %v232_v28 = vpop.xlane.xlu0 %231  ;;  %v252_v36 = vmul.f32 0.03125, %v235_v31  ;;  %v282_v7 = vmul.f32 %v800_v27, %v800_v27 }
  0xb2   :  { %v251_v29 = vmul.f32 0.03125, %v232_v28  ;;  %v281_v34 = vmul.f32 %v796_v25, %v796_v25 }
  0xb3   :  { %v812_v37 = vsub.f32 %v719_v16, %v252_v36  ;;  %v324_v38 = vsel %vm187_vm0, %v282_v7, 0.0 }
  0xb4   :  { %v808_v17 = vsub.f32 %v714_v14, %v251_v29  ;;  %v321_v10 = vsel %vm187_vm0, %v281_v34, 0.0 }
  0xb5   :  { %319 = vadd.xlane.f32.xlu1 %v318_v32  ;;  %322 = vadd.xlane.f32.xlu0 %v321_v10  ;;  %v284_v41 = vmul.f32 %v812_v37, %v812_v37 }
  0xb6   :  { %v283_v39 = vmul.f32 %v808_v17, %v808_v17 }
  0xb7   :  { %v330_v14 = vsel %vm187_vm0, %v284_v41, 0.0 }
  0xb8   :  { %v327_v42 = vsel %vm187_vm0, %v283_v39, 0.0 }
  0xb9   :  { %325 = vadd.xlane.f32.xlu1 %v324_v38  ;;  %328 = vadd.xlane.f32.xlu0 %v327_v42 }
  0xbd   :  { %331 = vadd.xlane.f32.xlu1 %v330_v14 }
 0x12a   :  { %v287_v44 = vpop.xlane.xlu0 %286 }
 0x12b   :  { %v333_v16 = vmul.f32 0.03125, %v287_v44 }
 0x12d   :  { %v349_v45 = vadd.f32 1e-12, %v333_v16 }
 0x12e   :  { %v290_v46 = vpop.xlane.xlu1 %289  ;;  %v293_v47 = vpop.xlane.xlu0 %292 }
 0x12f   :  { %482 = vrsqrt.f32 %v349_v45  ;;  %v334_v48 = vmul.f32 0.03125, %v290_v46  ;;  %v335_v49 = vmul.f32 0.03125, %v293_v47 }
 0x131   :  { %v350_v51 = vadd.f32 1e-12, %v334_v48  ;;  %v351_v52 = vadd.f32 1e-12, %v335_v49 }
 0x132   :  { %v296_v30 = vpop.xlane.xlu1 %295  ;;  %v299_v33 = vpop.xlane.xlu0 %298 }
 0x133   :  { %484 = vrsqrt.f32 %v350_v51  ;;  %v336_v56 = vmul.f32 0.03125, %v296_v30  ;;  %v337_v57 = vmul.f32 0.03125, %v299_v33 }
 0x134   :  { %486 = vrsqrt.f32 %v351_v52 }
 0x135   :  { %v352_v58 = vadd.f32 1e-12, %v336_v56  ;;  %v353_v59 = vadd.f32 1e-12, %v337_v57 }
 0x136   :  { %v302_v61 = vpop.xlane.xlu1 %301  ;;  %v305_v62 = vpop.xlane.xlu0 %304 }
 0x137   :  { %488 = vrsqrt.f32 %v352_v58  ;;  %v338_v40 = vmul.f32 0.03125, %v302_v61  ;;  %v339_v43 = vmul.f32 0.03125, %v305_v62 }
 0x138   :  { %490 = vrsqrt.f32 %v353_v59 }
 0x139   :  { %v483_v3 = vpop.eup %482  ;;  %v354_v5 = vadd.f32 1e-12, %v338_v40  ;;  %v355_v6 = vadd.f32 1e-12, %v339_v43 }
 0x13a   :  { %v381_v8 = vmul.f32 %v483_v3, %v726_v26  ;;  %v308_v9 = vpop.xlane.xlu1 %307  ;;  %v311_v50 = vpop.xlane.xlu0 %310 }
 0x13b   :  { %492 = vrsqrt.f32 %v354_v5  ;;  %v340_v15 = vmul.f32 0.03125, %v308_v9  ;;  %v341_v18 = vmul.f32 0.03125, %v311_v50 }
 0x13c   :  { %v404_v19 = vmul.f32 %v824_v4, %v381_v8  ;;  %494 = vrsqrt.f32 %v355_v6 }
 0x13d   :  { %v485_v20 = vpop.eup %484  ;;  %v356_v21 = vadd.f32 1e-12, %v340_v15  ;;  %v357_v22 = vadd.f32 1e-12, %v341_v18 }
 0x13e   :  { %v487_v60 = vpop.eup %486  ;;  %v427_v63 = vadd.f32 %v830_v53, %v404_v19  ;;  %v382_v26 = vmul.f32 %v485_v20, %v736_v35  ;;  %v314_v28 = vpop.xlane.xlu1 %313 }
 0x13f   :  { %v317_v29 = vpop.xlane.xlu0 %316  ;;  %v383_v31 = vmul.f32 %v487_v60, %v729_v2  ;;  %496 = vrsqrt.f32 %v356_v21  ;;  %v342_v32 = vmul.f32 0.03125, %v314_v28 }
 0x140   :  { %v343_v34 = vmul.f32 0.03125, %v317_v29  ;;  %443 = vst.msk [vmem:[%s948_s5] sm:$0x3] %vm187_vm0, %v427_v63  ;;  %v405_v36 = vmul.f32 %v824_v4, %v382_v26  ;;  %498 = vrsqrt.f32 %v357_v22 }
 0x141   :  { %v489_v7 = vpop.eup %488  ;;  %v406_v10 = vmul.f32 %v824_v4, %v383_v31  ;;  %v358_v38 = vadd.f32 1e-12, %v342_v32 }
 0x142   :  { %v359_v35 = vadd.f32 1e-12, %v343_v34  ;;  %v491_v39 = vpop.eup %490  ;;  %v428_v41 = vadd.f32 %v830_v53, %v405_v36  ;;  %v384_v2 = vmul.f32 %v489_v7, %v740_v11  ;;  %v320_v42 = vpop.xlane.xlu1 %319 }
 0x143   :  { %v323_v14 = vpop.xlane.xlu0 %322  ;;  %v429_v44 = vadd.f32 %v830_v53, %v406_v10  ;;  %v385_v16 = vmul.f32 %v491_v39, %v748_v23  ;;  %500 = vrsqrt.f32 %v358_v38  ;;  %v344_v45 = vmul.f32 0.03125, %v320_v42 }
 0x144   :  { %444 = vst.msk [vmem:[%s948_s5 + $0x2] sm:$0x3] %vm187_vm0, %v428_v41  ;;  %v407_v46 = vmul.f32 %v824_v4, %v384_v2  ;;  %502 = vrsqrt.f32 %v359_v35  ;;  %v345_v47 = vmul.f32 0.03125, %v323_v14 }
 0x145   :  { %v493_v48 = vpop.eup %492  ;;  %445 = vst.msk [vmem:[%s948_s5 + $0x4] sm:$0x3] %vm187_vm0, %v429_v44  ;;  %v408_v11 = vmul.f32 %v824_v4, %v385_v16  ;;  %v360_v23 = vadd.f32 1e-12, %v344_v45 }
 0x146   :  { %v495_v49 = vpop.eup %494  ;;  %v430_v51 = vadd.f32 %v830_v53, %v407_v46  ;;  %v386_v52 = vmul.f32 %v493_v48, %v752_v24  ;;  %v361_v30 = vadd.f32 1e-12, %v345_v47  ;;  %v326_v33 = vpop.xlane.xlu1 %325 }
 0x147   :  { %v329_v56 = vpop.xlane.xlu0 %328  ;;  %v431_v57 = vadd.f32 %v830_v53, %v408_v11  ;;  %v387_v58 = vmul.f32 %v495_v49, %v760_v54  ;;  %504 = vrsqrt.f32 %v360_v23  ;;  %v346_v59 = vmul.f32 0.03125, %v326_v33 }
 0x148   :  { %446 = vst.msk [vmem:[%s948_s5 + $0x6] sm:$0x3] %vm187_vm0, %v430_v51  ;;  %v409_v61 = vmul.f32 %v824_v4, %v386_v52  ;;  %506 = vrsqrt.f32 %v361_v30  ;;  %v347_v62 = vmul.f32 0.03125, %v329_v56 }
 0x149   :  { %v497_v40 = vpop.eup %496  ;;  %447 = vst.msk [vmem:[%s948_s5 + $0x8] sm:$0x3] %vm187_vm0, %v431_v57  ;;  %v410_v24 = vmul.f32 %v824_v4, %v387_v58  ;;  %v362_v54 = vadd.f32 1e-12, %v346_v59 }
 0x14a   :  { %v499_v43 = vpop.eup %498  ;;  %v432_v3 = vadd.f32 %v830_v53, %v409_v61  ;;  %v388_v5 = vmul.f32 %v497_v40, %v764_v55  ;;  %v363_v6 = vadd.f32 1e-12, %v347_v62  ;;  %v332_v8 = vpop.xlane.xlu1 %331 }
 0x14b   :  { %v433_v9 = vadd.f32 %v830_v53, %v410_v24  ;;  %v389_v50 = vmul.f32 %v499_v43, %v772_v0  ;;  %508 = vrsqrt.f32 %v362_v54  ;;  %v348_v15 = vmul.f32 0.03125, %v332_v8 }
 0x14c   :  { %448 = vst.msk [vmem:[%s948_s5 + $0xa] sm:$0x3] %vm187_vm0, %v432_v3  ;;  %v411_v18 = vmul.f32 %v824_v4, %v388_v5  ;;  %510 = vrsqrt.f32 %v363_v6 }
 0x14d   :  { %v501_v19 = vpop.eup %500  ;;  %449 = vst.msk [vmem:[%s948_s5 + $0xc] sm:$0x3] %vm187_vm0, %v433_v9  ;;  %v412_v55 = vmul.f32 %v824_v4, %v389_v50  ;;  %v364_v20 = vadd.f32 1e-12, %v348_v15 }
 0x14e   :  { %v503_v0 = vpop.eup %502  ;;  %v434_v21 = vadd.f32 %v830_v53, %v411_v18  ;;  %v390_v22 = vmul.f32 %v501_v19, %v776_v1 }
 0x14f   :  { %v435_v60 = vadd.f32 %v830_v53, %v412_v55  ;;  %v391_v63 = vmul.f32 %v503_v0, %v784_v12  ;;  %512 = vrsqrt.f32 %v364_v20 }
 0x150   :  { %450 = vst.msk [vmem:[%s948_s5 + $0xe] sm:$0x3] %vm187_vm0, %v434_v21  ;;  %v413_v26 = vmul.f32 %v824_v4, %v390_v22 }
 0x151   :  { %v505_v28 = vpop.eup %504  ;;  %451 = vst.msk [vmem:[%s948_s5 + $0x10] sm:$0x3] %vm187_vm0, %v435_v60  ;;  %v414_v1 = vmul.f32 %v824_v4, %v391_v63 }
 0x152   :  { %v507_v29 = vpop.eup %506  ;;  %v436_v31 = vadd.f32 %v830_v53, %v413_v26  ;;  %v392_v12 = vmul.f32 %v505_v28, %v788_v13 }
 0x153   :  { %v437_v32 = vadd.f32 %v830_v53, %v414_v1  ;;  %v393_v34 = vmul.f32 %v507_v29, %v796_v25 }
 0x154   :  { %452 = vst.msk [vmem:[%s948_s5 + $0x12] sm:$0x3] %vm187_vm0, %v436_v31  ;;  %v415_v36 = vmul.f32 %v824_v4, %v392_v12 }
 0x155   :  { %v509_v7 = vpop.eup %508  ;;  %453 = vst.msk [vmem:[%s948_s5 + $0x14] sm:$0x3] %vm187_vm0, %v437_v32  ;;  %v416_v10 = vmul.f32 %v824_v4, %v393_v34 }
 0x156   :  { %v511_v13 = vpop.eup %510  ;;  %v438_v38 = vadd.f32 %v830_v53, %v415_v36  ;;  %v394_v25 = vmul.f32 %v509_v7, %v800_v27 }
 0x157   :  { %v439_v35 = vadd.f32 %v830_v53, %v416_v10  ;;  %v395_v39 = vmul.f32 %v511_v13, %v808_v17 }
 0x158   :  { %454 = vst.msk [vmem:[%s948_s5 + $0x16] sm:$0x3] %vm187_vm0, %v438_v38  ;;  %v417_v41 = vmul.f32 %v824_v4, %v394_v25 }
 0x159   :  { %v513_v2 = vpop.eup %512  ;;  %455 = vst.msk [vmem:[%s948_s5 + $0x18] sm:$0x3] %vm187_vm0, %v439_v35  ;;  %v418_v42 = vmul.f32 %v824_v4, %v395_v39 }
 0x15a   :  { %v440_v27 = vadd.f32 %v830_v53, %v417_v41  ;;  %v396_v14 = vmul.f32 %v513_v2, %v812_v37 }
 0x15b   :  { %v441_v17 = vadd.f32 %v830_v53, %v418_v42 }
 0x15c   :  { %456 = vst.msk [vmem:[%s948_s5 + $0x1a] sm:$0x3] %vm187_vm0, %v440_v27  ;;  %v419_v44 = vmul.f32 %v824_v4, %v396_v14 }
 0x15d   :  { %457 = vst.msk [vmem:[%s948_s5 + $0x1c] sm:$0x3] %vm187_vm0, %v441_v17 }
 0x15e   :  { %v442_v16 = vadd.f32 %v830_v53, %v419_v44 }
 0x160   :  { %458 = vst.msk [vmem:[%s948_s5 + $0x1e] sm:$0x3] %vm187_vm0, %v442_v16 }

// kernel: model_forward.18
= control target key start
LH: loop header
LB: loop body
LE: loop exit
PB: predicated region body
PF: predicated region fallthrough
CT: control target
= control target key end

     0   :  { %v337_v0 = vmov 0.0|0.0   ;;  %vm338_vm0 = vmmov 0   ;;  %v339_v6 = vmov 0.0   ;;  %vm54_vm1 = vcmask 1043456   ;;  %s453_s1 = inlined_call_operand.vmem [shape: f32[108,32], index: 1, kind: input, shape index: {}]   ;;  %s454_s0 = inlined_call_operand.vmem [shape: f32[2,108], index: 0, kind: input, shape index: {}]   ;;  %s455_s5 = inlined_call_operand.vmem [shape: f32[32,1], index: 5, kind: input, shape index: {}]   ;;  %s456_s6 = inlined_call_operand.<no memory space> [shape: f32[1,1], index: 6, kind: input, shape index: {}]   ;;  %s457_s2 = inlined_call_operand.vmem [shape: f32[1,32], index: 2, kind: input, shape index: {}]   ;;  %s458_s3 = inlined_call_operand.vmem [shape: f32[1,32], index: 3, kind: input, shape index: {}]   ;;  %s459_s4 = inlined_call_operand.vmem [shape: f32[1,32], index: 4, kind: input, shape index: {}]   ;;  %s460_s7 = inlined_call_operand.vmem [shape: f32[2,1], index: 7, kind: output, shape index: {}]  }
   0x1   :  { %305 = vmatprep.subr.bf16.mxu0 %v337_v0  ;;  %v29_v1 = vld [vmem:[%s453_s1] sm:$0xff]  ;;  %v30_v2 = vld [vmem:[%s453_s1 + $0x8] sm:$0xff]  ;;  %v31_v3 = vld [vmem:[%s453_s1 + $0x10] sm:$0xff]  ;;  %327 = vmatprep.subr.bf16.mxu1 %v337_v0  ;;  %vm340_vm2 = vmmov 1   ;;  %vm50_vm4 = vcmask 883712   ;;  %v12_v30 = vstv %s456_s6  ;;  %vm156_vm5 = vcmask 261120  }
   0x2   :  { %v306_v4 = vpack.c.bf16 %v30_v2, %v29_v1  ;;  %v32_v5 = vld [vmem:[%s453_s1 + $0x18] sm:$0xff]  ;;  %291 = vmatprep.mubr.msk.f32.mxu0 %vm338_vm0, %v339_v6  ;;  %302 = vmatprep.mubr.msk.f32.mxu1 %vm338_vm0, %v339_v6  ;;  %v33_v8 = vld [vmem:[%s453_s1 + $0x20] sm:$0xff]  ;;  %v34_v9 = vld [vmem:[%s453_s1 + $0x28] sm:$0xff]  ;;  %13 = vst [vmem:[#allocation2] sm:$0x1] %v12_v30  ;;  %vm230_vm6 = vcmask 1024  }
   0x3   :  { %v309_v7 = vpack.c.bf16 %v32_v5, %v31_v3  ;;  %v312_v10 = vpack.c.bf16 %v34_v9, %v33_v8  ;;  %v35_v11 = vld [vmem:[%s453_s1 + $0x30] sm:$0xff]  ;;  %v36_v12 = vld [vmem:[%s453_s1 + $0x38] sm:$0xff]  ;;  %v37_v14 = vld [vmem:[%s453_s1 + $0x40] sm:$0xff] }
   0x4   :  { %307 = vmatpush3.bf16.msra.mxu0 %v306_v4  ;;  %v315_v13 = vpack.c.bf16 %v36_v12, %v35_v11  ;;  %v38_v15 = vld [vmem:[%s453_s1 + $0x48] sm:$0xff]  ;;  %v39_v17 = vld [vmem:[%s453_s1 + $0x50] sm:$0xff]  ;;  %v40_v18 = vld [vmem:[%s453_s1 + $0x58] sm:$0xff] }
   0x5   :  { %308 = vmatprep.subr.bf16.mxu0 %v337_v0  ;;  %v318_v16 = vpack.c.bf16 %v38_v15, %v37_v14  ;;  %v321_v19 = vpack.c.bf16 %v40_v18, %v39_v17  ;;  %v41_v20 = vld [vmem:[%s453_s1 + $0x60] sm:$0xff]  ;;  %v42_v21 = vld [vmem:[%s453_s1 + $0x68] sm:$0xf]  ;;  %vm325_vm3 = vmpackc.low %vm54_vm1, %vm340_vm2 }
   0x6   :  { %v324_v22 = vpack.c.bf16 %v42_v21, %v41_v20  ;;  %v28_v23 = vld [vmem:[%s454_s0] sm:$0x3]  ;;  %v146_v25 = vld [vmem:[%s455_s5 + $0x8] sm:$0xff]  ;;  %v147_v27 = vld [vmem:[%s455_s5 + $0x10] sm:$0xff] }
   0x7   :  { %v145_v24 = vld [vmem:[%s455_s5] sm:$0xff]  ;;  %v148_v28 = vld [vmem:[%s455_s5 + $0x18] sm:$0xff] }
   0x8   :  { %310 = vmatpush3.bf16.msra.mxu0 %v309_v7  ;;  %v328_v26 = vpack.c.bf16 %v146_v25, %v145_v24  ;;  %v331_v29 = vpack.c.bf16 %v148_v28, %v147_v27  ;;  %v236_v31 = vld [vmem:[%s457_s2] ss:$0 sm:$0xff] }
   0x9   :  { %311 = vmatprep.subr.bf16.mxu0 %v337_v0  ;;  %v239_v33 = vld [vmem:[%s458_s3] ss:$0 sm:$0xff] }
   0xa   :  { %329 = vmatpush3.bf16.msra.mxu1 %v328_v26  ;;  %v240_v36 = vld [vmem:[%s459_s4] ss:$0 sm:$0xff] }
   0xb   :  { %330 = vmatprep.subr.bf16.mxu1 %v337_v0  ;;  %v241_v40 = vld [vmem:[#allocation2] ss:$0 sm:$0xff] }
   0xc   :  { %313 = vmatpush3.bf16.msra.mxu0 %v312_v10 }
   0xd   :  { %314 = vmatprep.subr.bf16.mxu0 %v337_v0 }
   0xe   :  { %332 = vmatpush3.bf16.msra.mxu1 %v331_v29 }
  0x10   :  { %316 = vmatpush3.bf16.msra.mxu0 %v315_v13 }
  0x11   :  { %317 = vmatprep.subr.bf16.mxu0 %v337_v0 }
  0x14   :  { %319 = vmatpush3.bf16.msra.mxu0 %v318_v16 }
  0x15   :  { %320 = vmatprep.subr.bf16.mxu0 %v337_v0 }
  0x18   :  { %322 = vmatpush3.bf16.msra.mxu0 %v321_v19 }
  0x19   :  { %323 = vmatprep.subr.bf16.mxu0 %v337_v0 }
  0x1c   :  { %326 = vmatpush3.bf16.msk.msra.mxu0 %vm325_vm3, %v324_v22 }
  0x1f   :  { %292 = vmatmul.mubr.msk.f32.vlgmr.msra.gmra.mrb[0].mxu0 %vm50_vm4, %v28_v23 }
  0xf2   :  { %v124_v32 = vpop.f32.mrb[0].mxu0 }
  0xf3   :  { %v125_v34 = vadd.f32 %v236_v31, %v124_v32  ;;  %v293_v35 = vpop.f32.mrb[1].mxu0 }
  0xf5   :  { %v135_v37 = vmul.f32 %v239_v33, %v125_v34 }
  0xf7   :  { %v143_v38 = vadd.f32 %v240_v36, %v135_v37 }
  0xf9   :  { %v144_v39 = vmax.f32 %v143_v38, 0.0 }
  0xfb   :  { %303 = vmatmul.mubr.msk.f32.vlgmr.msra.gmra.mrb[0].mxu1 %vm156_vm5, %v144_v39 }
 0x1ce   :  { %v226_v41 = vpop.f32.mrb[0].mxu1 }
 0x1cf   :  { %v227_v42 = vadd.f32 %v241_v40, %v226_v41  ;;  %v304_v43 = vpop.f32.mrb[1].mxu1 }
 0x1d1   :  { %231 = vst.msk [vmem:[%s460_s7] sm:$0x3] %vm230_vm6, %v227_v42 }

// kernel: model_forward.19
= control target key start
LH: loop header
LB: loop body
LE: loop exit
PB: predicated region body
PF: predicated region fallthrough
CT: control target
= control target key end

     0   :  { %vm41_vm0 = vcmask 261120   ;;  %s217_s0 = inlined_call_operand.vmem [shape: f32[2,16,32], index: 0, kind: input, shape index: {}]   ;;  %s218_s1 = inlined_call_operand.vmem [shape: f32[1,16,32], index: 1, kind: input, shape index: {}]   ;;  %s219_s2 = inlined_call_operand.vmem [shape: f32[1,1,32], index: 2, kind: input, shape index: {}]   ;;  %s220_s3 = inlined_call_operand.vmem [shape: f32[1,1,32], index: 3, kind: input, shape index: {}]   ;;  %s221_s4 = inlined_call_operand.vmem [shape: f32[1,1,32], index: 4, kind: input, shape index: {}]   ;;  %s222_s5 = inlined_call_operand.vmem [shape: f32[2,16,32], index: 5, kind: output, shape index: {}]  }
   0x1   :  { %v20_v0 = vld [vmem:[%s217_s0] sm:$0xff]  ;;  %v22_v4 = vld [vmem:[%s217_s0 + $0x10] sm:$0xff]  ;;  %v21_v5 = vld [vmem:[%s217_s0 + $0x8] sm:$0xff] }
   0x2   :  { %v24_v1 = vld [vmem:[%s218_s1] sm:$0xff]  ;;  %v25_v6 = vld [vmem:[%s218_s1 + $0x8] sm:$0xff]  ;;  %v23_v9 = vld [vmem:[%s217_s0 + $0x18] sm:$0xff] }
   0x3   :  { %v125_v2 = vld [vmem:[%s219_s2] ss:$0 sm:$0xff]  ;;  %v26_v3 = vadd.f32 %v24_v1, %v20_v0  ;;  %v28_v7 = vadd.f32 %v24_v1, %v22_v4  ;;  %v27_v8 = vadd.f32 %v25_v6, %v21_v5  ;;  %v29_v11 = vadd.f32 %v25_v6, %v23_v9 }
   0x4   :  { %v126_v52 = vld [vmem:[%s220_s3] ss:$0 sm:$0xff] }
   0x5   :  { %v37_v10 = vadd.f32 %v125_v2, %v26_v3  ;;  %v39_v12 = vadd.f32 %v125_v2, %v28_v7  ;;  %v38_v13 = vadd.f32 %v125_v2, %v27_v8  ;;  %v40_v15 = vadd.f32 %v125_v2, %v29_v11  ;;  %v127_v54 = vld [vmem:[%s221_s4] ss:$0 sm:$0xff] }
   0x7   :  { %v42_v14 = vsel %vm41_vm0, %v37_v10, 0.0  ;;  %v48_v16 = vsel %vm41_vm0, %v39_v12, 0.0  ;;  %v45_v17 = vsel %vm41_vm0, %v38_v13, 0.0  ;;  %v51_v18 = vsel %vm41_vm0, %v40_v15, 0.0 }
   0x8   :  { %43 = vadd.xlane.f32.xlu0 %v42_v14  ;;  %49 = vadd.xlane.f32.xlu1 %v48_v16 }
   0xc   :  { %46 = vadd.xlane.f32.xlu0 %v45_v17  ;;  %52 = vadd.xlane.f32.xlu1 %v51_v18 }
  0x95   :  { %v44_v19 = vpop.xlane.xlu0 %43  ;;  %v50_v21 = vpop.xlane.xlu1 %49 }
  0x96   :  { %v55_v20 = vmul.f32 0.03125, %v44_v19  ;;  %v57_v22 = vmul.f32 0.03125, %v50_v21 }
  0x98   :  { %v59_v23 = vsub.f32 %v37_v10, %v55_v20  ;;  %v61_v24 = vsub.f32 %v39_v12, %v57_v22 }
  0x99   :  { %v47_v25 = vpop.xlane.xlu0 %46  ;;  %v53_v27 = vpop.xlane.xlu1 %52 }
  0x9a   :  { %v56_v26 = vmul.f32 0.03125, %v47_v25  ;;  %v63_v28 = vmul.f32 %v59_v23, %v59_v23  ;;  %v58_v29 = vmul.f32 0.03125, %v53_v27  ;;  %v65_v30 = vmul.f32 %v61_v24, %v61_v24 }
  0x9c   :  { %v60_v31 = vsub.f32 %v38_v13, %v56_v26  ;;  %v67_v32 = vsel %vm41_vm0, %v63_v28, 0.0  ;;  %v62_v33 = vsub.f32 %v40_v15, %v58_v29  ;;  %v73_v34 = vsel %vm41_vm0, %v65_v30, 0.0 }
  0x9d   :  { %68 = vadd.xlane.f32.xlu0 %v67_v32 }
  0x9e   :  { %v64_v35 = vmul.f32 %v60_v31, %v60_v31  ;;  %v66_v36 = vmul.f32 %v62_v33, %v62_v33 }
  0xa0   :  { %v70_v37 = vsel %vm41_vm0, %v64_v35, 0.0  ;;  %v76_v38 = vsel %vm41_vm0, %v66_v36, 0.0 }
  0xa1   :  { %74 = vadd.xlane.f32.xlu0 %v73_v34  ;;  %71 = vadd.xlane.f32.xlu1 %v70_v37 }
  0xa5   :  { %77 = vadd.xlane.f32.xlu1 %v76_v38 }
 0x12a   :  { %v69_v39 = vpop.xlane.xlu0 %68 }
 0x12b   :  { %v79_v40 = vmul.f32 0.03125, %v69_v39 }
 0x12d   :  { %v83_v41 = vadd.f32 1e-12, %v79_v40 }
 0x12e   :  { %v72_v42 = vpop.xlane.xlu1 %71  ;;  %v75_v43 = vpop.xlane.xlu0 %74 }
 0x12f   :  { %128 = vrsqrt.f32 %v83_v41  ;;  %v80_v44 = vmul.f32 0.03125, %v72_v42  ;;  %v81_v45 = vmul.f32 0.03125, %v75_v43 }
 0x131   :  { %v84_v46 = vadd.f32 1e-12, %v80_v44  ;;  %v85_v47 = vadd.f32 1e-12, %v81_v45 }
 0x132   :  { %v78_v48 = vpop.xlane.xlu1 %77 }
 0x133   :  { %130 = vrsqrt.f32 %v84_v46  ;;  %v82_v49 = vmul.f32 0.03125, %v78_v48 }
 0x134   :  { %132 = vrsqrt.f32 %v85_v47 }
 0x135   :  { %v86_v50 = vadd.f32 1e-12, %v82_v49 }
 0x137   :  { %134 = vrsqrt.f32 %v86_v50 }
 0x139   :  { %v129_v51 = vpop.eup %128 }
 0x13a   :  { %v91_v53 = vmul.f32 %v129_v51, %v59_v23 }
 0x13c   :  { %v102_v55 = vmul.f32 %v126_v52, %v91_v53 }
 0x13d   :  { %v131_v56 = vpop.eup %130 }
 0x13e   :  { %v133_v57 = vpop.eup %132  ;;  %v113_v58 = vadd.f32 %v127_v54, %v102_v55  ;;  %v92_v59 = vmul.f32 %v131_v56, %v60_v31 }
 0x13f   :  { %v93_v60 = vmul.f32 %v133_v57, %v61_v24 }
 0x140   :  { %117 = vst.msk [vmem:[%s222_s5] sm:$0xff] %vm41_vm0, %v113_v58  ;;  %v103_v61 = vmul.f32 %v126_v52, %v92_v59 }
 0x141   :  { %v135_v62 = vpop.eup %134  ;;  %v104_v63 = vmul.f32 %v126_v52, %v93_v60 }
 0x142   :  { %v114_v0 = vadd.f32 %v127_v54, %v103_v61  ;;  %v94_v1 = vmul.f32 %v135_v62, %v62_v33 }
 0x143   :  { %v115_v2 = vadd.f32 %v127_v54, %v104_v63 }
 0x144   :  { %118 = vst.msk [vmem:[%s222_s5 + $0x8] sm:$0xff] %vm41_vm0, %v114_v0  ;;  %v105_v3 = vmul.f32 %v126_v52, %v94_v1 }
 0x145   :  { %119 = vst.msk [vmem:[%s222_s5 + $0x10] sm:$0xff] %vm41_vm0, %v115_v2 }
 0x146   :  { %v116_v4 = vadd.f32 %v127_v54, %v105_v3 }
 0x148   :  { %120 = vst.msk [vmem:[%s222_s5 + $0x18] sm:$0xff] %vm41_vm0, %v116_v4 }

// kernel: model_forward.22
= control target key start
LH: loop header
LB: loop body
LE: loop exit
PB: predicated region body
PF: predicated region fallthrough
CT: control target
= control target key end

     0   :  { %v356_v3 = vmov 0.0   ;;  %vm30_vm0 = vcmask 261120   ;;  %v265_v47 = vlaneseq  ;;  %vm259_vm1 = vcmask 1040384   ;;  %s443_s1 = inlined_call_operand.vmem [shape: f32[1,32,384], index: 1, kind: input, shape index: {}]   ;;  %s444_s0 = inlined_call_operand.vmem [shape: f32[32,32], index: 0, kind: input, shape index: {}]   ;;  %s445_s2 = inlined_call_operand.vmem [shape: f32[1,384], index: 2, kind: input, shape index: {}]   ;;  %s446_s3 = inlined_call_operand.vmem [shape: f32[2,384], index: 3, kind: output, shape index: {}]  }
   0x1   :  { %v19_v0 = vld [vmem:[%s443_s1 + $0x8] sm:$0xff]  ;;  %v22_v1 = vld [vmem:[%s443_s1 + $0x20] sm:$0xff]  ;;  %v20_v2 = vld [vmem:[%s443_s1 + $0x10] sm:$0xff]  ;;  %107 = vmatprep.mubr.f32.mxu0 %v356_v3 }
   0x2   :  { %v338_v4 = vpack.c.bf16 %v22_v1, %v19_v0  ;;  %v23_v5 = vld [vmem:[%s443_s1 + $0x28] sm:$0xff]  ;;  %v18_v6 = vld [vmem:[%s443_s1] sm:$0xff]  ;;  %v21_v7 = vld [vmem:[%s443_s1 + $0x18] sm:$0xff]  ;;  %v266_v58 = vshrl.u32 %v265_v47, 7 }
   0x3   :  { %v346_v8 = vpack.c.bf16 %v23_v5, %v20_v2  ;;  %v340_v9 = vpack.c.bf16 %v21_v7, %v18_v6  ;;  %v25_v10 = vld [vmem:[%s443_s1 + $0x38] sm:$0xff]  ;;  %v28_v11 = vld [vmem:[%s443_s1 + $0x50] sm:$0xff]  ;;  %v26_v12 = vld [vmem:[%s443_s1 + $0x40] sm:$0xff]  ;;  %v357_v5 = vmov 1983009808  }
   0x4   :  { %339 = vmatprep.subr.bf16.mxu0 %v338_v4  ;;  %v342_v13 = vpack.c.bf16 %v28_v11, %v25_v10  ;;  %v29_v14 = vld [vmem:[%s443_s1 + $0x58] sm:$0xff]  ;;  %v24_v15 = vld [vmem:[%s443_s1 + $0x30] sm:$0xff]  ;;  %v27_v16 = vld [vmem:[%s443_s1 + $0x48] sm:$0xff]  ;;  %v275_v4 = vsub.s32 2, %v266_v58  ;;  %v288_v6 = vunpack.c.l.s4 %v357_v5  ;;  %v267_v7 = vsub.s32 0, %v266_v58 }
   0x5   :  { %347 = vmatprep.subr.bf16.mxu1 %v346_v8  ;;  %341 = vmatpush1.bf16.msra.mxu0 %v340_v9  ;;  %v350_v17 = vpack.c.bf16 %v29_v14, %v26_v12  ;;  %v344_v18 = vpack.c.bf16 %v27_v16, %v24_v15  ;;  %v14_v19 = vld [vmem:[%s444_s0] sm:$0xff]  ;;  %v15_v20 = vld [vmem:[%s444_s0 + $0x8] sm:$0xff]  ;;  %v16_v21 = vld [vmem:[%s444_s0 + $0x10] sm:$0xff] }
   0x6   :  { %349 = vmatpush3.bf16.msra.mxu1 %v346_v8  ;;  %343 = vmatprep.subr.bf16.mxu0 %v342_v13  ;;  %v17_v22 = vld [vmem:[%s444_s0 + $0x18] sm:$0xff]  ;;  %v263_v11 = vld [vmem:[%s445_s2] sm:$0x7]  ;;  %v271_v13 = vsub.s32 1, %v266_v58 }
   0x7   :  { %351 = vmatprep.subr.bf16.mxu1 %v350_v17  ;;  %332 = vmatprep.mubr.msk.f32.mxu1 %vm30_vm0, %v14_v19 }
   0x9   :  { %345 = vmatpush1.bf16.msra.mxu0 %v344_v18  ;;  %v268_v18 = vrot.slane %v263_v11, %v267_v7 }
   0xa   :  { %353 = vmatpush3.bf16.msra.mxu1 %v350_v17  ;;  %v276_v17 = vrot.slane %v263_v11, %v275_v4 }
   0xc   :  { %308 = vmatmul.mubr.msk.f32.vlgmr.msra.gmra.mrb[0].mxu0 %vm30_vm0, %v14_v19 }
   0xd   :  { %333 = vmatmul.mubr.msk.f32.vlgmr.msra.gmra.mrb[0].mxu1 %vm30_vm0, %v15_v20  ;;  %113 = vmatprep.mubr.f32.mxu0 %v356_v3 }
   0xe   :  { %335 = vmatprep.mubr.msk.f32.mxu1 %vm30_vm0, %v16_v21 }
  0x10   :  { %309 = vmatmul.mubr.msk.f32.gmra.mrb[2].mxu0 %vm30_vm0, %v15_v20 }
  0x11   :  { %336 = vmatmul.mubr.msk.f32.gmra.mrb[2].mxu1 %vm30_vm0, %v17_v22  ;;  %119 = vmatprep.mubr.f32.mxu0 %v356_v3 }
  0x14   :  { %310 = vmatmul.mubr.msk.f32.gmra.mrb[4].mxu0 %vm30_vm0, %v16_v21  ;;  %v289_v21 = vunpack.c.0.s8 %v288_v6 }
  0x15   :  { %125 = vmatprep.mubr.f32.mxu0 %v356_v3 }
  0x18   :  { %311 = vmatmul.mubr.msk.f32.gmra.mrb[6].mxu0 %vm30_vm0, %v17_v22 }
  0xdf   :  { %v109_v23 = vpop.f32.mrb[0].mxu0 }
  0xe0   :  { %v111_v24 = vpop.f32.mrb[1].mxu0  ;;  %v334_v25 = vpop.f32.mrb[0].mxu1 }
  0xe1   :  { %v198_v26 = vpop.f32.mrb[1].mxu1 }
  0xe2   :  { %v231_v27 = vmax.f32 %v198_v26, %v334_v25 }
  0xe3   :  { %v115_v28 = vpop.f32.mrb[2].mxu0 }
  0xe4   :  { %v232_v29 = vrot.slane %v231_v27, 4  ;;  %v217_v30 = vmax.f32 %v109_v23, %v115_v28  ;;  %v337_v31 = vpop.f32.mrb[2].mxu1  ;;  %v117_v32 = vpop.f32.mrb[3].mxu0  ;;  %v272_v23 = vrot.slane %v263_v11, %v271_v13 }
  0xe5   :  { %v224_v33 = vmax.f32 %v111_v24, %v117_v32  ;;  %v208_v34 = vpop.f32.mrb[3].mxu1 }
  0xe6   :  { %v233_v35 = vmax.f32 %v231_v27, %v232_v29  ;;  %v218_v36 = vrot.slane %v217_v30, 4  ;;  %v252_v37 = vmax.f32 %v208_v34, %v337_v31 }
  0xe7   :  { %v225_v38 = vrot.slane %v224_v33, 4  ;;  %v121_v39 = vpop.f32.mrb[4].mxu0 }
  0xe8   :  { %v234_v40 = vrot.slane %v233_v35, 2  ;;  %v219_v41 = vmax.f32 %v217_v30, %v218_v36  ;;  %v253_v42 = vrot.slane %v252_v37, 4  ;;  %v123_v43 = vpop.f32.mrb[5].mxu0  ;;  %v292_v30 = vsub.s32 %v289_v21, %v266_v58 }
  0xe9   :  { %v226_v44 = vmax.f32 %v224_v33, %v225_v38 }
  0xea   :  { %v235_v45 = vmax.f32 %v233_v35, %v234_v40  ;;  %v254_v46 = vmax.f32 %v252_v37, %v253_v42  ;;  %v220_v50 = vrot.slane %v219_v41, 2 }
  0xeb   :  { %v127_v48 = vpop.f32.mrb[6].mxu0  ;;  %v227_v54 = vrot.slane %v226_v44, 2 }
  0xec   :  { %v236_v49 = vrot.slane %v235_v45, 1  ;;  %v255_v51 = vrot.slane %v254_v46, 2  ;;  %v238_v52 = vmax.f32 %v121_v39, %v127_v48  ;;  %v129_v53 = vpop.f32.mrb[7].mxu0  ;;  %v221_v61 = vmax.f32 %v219_v41, %v220_v50 }
  0xed   :  { %v245_v55 = vmax.f32 %v123_v43, %v129_v53  ;;  %v228_v0 = vmax.f32 %v226_v44, %v227_v54 }
  0xee   :  { %v256_v56 = vmax.f32 %v254_v46, %v255_v51  ;;  %v239_v57 = vrot.slane %v238_v52, 4  ;;  %v237_v60 = vmax.f32 %v235_v45, %v236_v49  ;;  %v222_v9 = vrot.slane %v221_v61, 1 }
  0xef   :  { %v246_v59 = vrot.slane %v245_v55, 4  ;;  %v229_v14 = vrot.slane %v228_v0, 1 }
  0xf0   :  { %v257_v62 = vrot.slane %v256_v56, 1  ;;  %v240_v63 = vmax.f32 %v238_v52, %v239_v57  ;;  %v223_v20 = vmax.f32 %v221_v61, %v222_v9 }
  0xf1   :  { %v247_v1 = vmax.f32 %v245_v55, %v246_v59  ;;  %v230_v24 = vmax.f32 %v228_v0, %v229_v14 }
  0xf2   :  { %v258_v2 = vmax.f32 %v256_v56, %v257_v62  ;;  %v241_v3 = vrot.slane %v240_v63, 2 }
  0xf3   :  { %v248_v8 = vrot.slane %v247_v1, 2 }
  0xf4   :  { %v262_v10 = vsel %vm259_vm1, %v237_v60, %v258_v2  ;;  %v242_v12 = vmax.f32 %v240_v63, %v241_v3 }
  0xf5   :  { %v249_v15 = vmax.f32 %v247_v1, %v248_v8  ;;  %v282_v29 = vadd.f32 %v276_v17, %v262_v10 }
  0xf6   :  { %v243_v16 = vrot.slane %v242_v12, 1 }
  0xf7   :  { %v250_v19 = vrot.slane %v249_v15, 1  ;;  %v300_v33 = vrot.slane %v282_v29, %v292_v30 }
  0xf8   :  { %v244_v22 = vmax.f32 %v242_v12, %v243_v16 }
  0xf9   :  { %v251_v25 = vmax.f32 %v249_v15, %v250_v19 }
  0xfa   :  { %v260_v26 = vsel %vm259_vm1, %v223_v20, %v244_v22 }
  0xfb   :  { %v280_v27 = vadd.f32 %v268_v18, %v260_v26  ;;  %v261_v28 = vsel %vm259_vm1, %v230_v24, %v251_v25 }
  0xfc   :  { %v281_v31 = vadd.f32 %v272_v23, %v261_v28 }
  0xfe   :  { %v286_v32 = vcombine.low %v280_v27, %v281_v31 }
 0x100   :  { %v293_v34 = vrot.slane %v286_v32, %v292_v30 }
 0x102   :  { %v301_v35 = vcombine.low %v293_v34, %v300_v33 }
 0x104   :  { %303 = vst [vmem:[%s446_s3] sm:$0x3f] %v301_v35 }

// kernel: model_forward.23
= control target key start
LH: loop header
LB: loop body
LE: loop exit
PB: predicated region body
PF: predicated region fallthrough
CT: control target
= control target key end

     0   :  { %v662_v3 = vmov 0.0   ;;  %vm30_vm0 = vcmask 261120   ;;  %vm410_vm1 = vcmask 1046528   ;;  %vm507_vm2 = vcmask 1040384   ;;  %s816_s1 = inlined_call_operand.vmem [shape: f32[2,32,384], index: 1, kind: input, shape index: {}]   ;;  %s817_s0 = inlined_call_operand.vmem [shape: f32[32,32], index: 0, kind: input, shape index: {}]   ;;  %s818_s2 = inlined_call_operand.vmem [shape: f32[1,384], index: 2, kind: input, shape index: {}]   ;;  %s819_s3 = inlined_call_operand.vmem [shape: f32[2,384], index: 3, kind: output, shape index: {}]  }
   0x1   :  { %v19_v0 = vld [vmem:[%s816_s1 + $0x8] sm:$0xff]  ;;  %v22_v1 = vld [vmem:[%s816_s1 + $0x20] sm:$0xff]  ;;  %v20_v2 = vld [vmem:[%s816_s1 + $0x10] sm:$0xff]  ;;  %107 = vmatprep.mubr.f32.mxu0 %v662_v3 }
   0x2   :  { %v628_v4 = vpack.c.bf16 %v22_v1, %v19_v0  ;;  %v23_v5 = vld [vmem:[%s816_s1 + $0x28] sm:$0xff]  ;;  %v18_v6 = vld [vmem:[%s816_s1] sm:$0xff]  ;;  %v21_v7 = vld [vmem:[%s816_s1 + $0x18] sm:$0xff] }
   0x3   :  { %v636_v8 = vpack.c.bf16 %v23_v5, %v20_v2  ;;  %v630_v9 = vpack.c.bf16 %v21_v7, %v18_v6  ;;  %v25_v10 = vld [vmem:[%s816_s1 + $0x38] sm:$0xff]  ;;  %v28_v11 = vld [vmem:[%s816_s1 + $0x50] sm:$0xff]  ;;  %v26_v12 = vld [vmem:[%s816_s1 + $0x40] sm:$0xff] }
   0x4   :  { %629 = vmatprep.subr.bf16.mxu0 %v628_v4  ;;  %v632_v13 = vpack.c.bf16 %v28_v11, %v25_v10  ;;  %v29_v14 = vld [vmem:[%s816_s1 + $0x58] sm:$0xff]  ;;  %v24_v15 = vld [vmem:[%s816_s1 + $0x30] sm:$0xff]  ;;  %v27_v16 = vld [vmem:[%s816_s1 + $0x48] sm:$0xff] }
   0x5   :  { %637 = vmatprep.subr.bf16.mxu1 %v636_v8  ;;  %631 = vmatpush1.bf16.msra.mxu0 %v630_v9  ;;  %v640_v17 = vpack.c.bf16 %v29_v14, %v26_v12  ;;  %v634_v18 = vpack.c.bf16 %v27_v16, %v24_v15  ;;  %v14_v19 = vld [vmem:[%s817_s0] sm:$0xff]  ;;  %v565_v20 = vld [vmem:[%s816_s1 + $0x68] sm:$0xff]  ;;  %v567_v24 = vld [vmem:[%s816_s1 + $0x78] sm:$0xff] }
   0x6   :  { %639 = vmatpush3.bf16.msra.mxu1 %v636_v8  ;;  %633 = vmatprep.subr.bf16.mxu0 %v632_v13  ;;  %v568_v21 = vld [vmem:[%s816_s1 + $0x80] sm:$0xff]  ;;  %v566_v25 = vld [vmem:[%s816_s1 + $0x70] sm:$0xff]  ;;  %v569_v26 = vld [vmem:[%s816_s1 + $0x88] sm:$0xff] }
   0x7   :  { %v564_v22 = vld [vmem:[%s816_s1 + $0x60] sm:$0xff]  ;;  %641 = vmatprep.subr.bf16.mxu1 %v640_v17  ;;  %608 = vmatprep.mubr.msk.f32.mxu1 %vm30_vm0, %v14_v19  ;;  %v644_v23 = vpack.c.bf16 %v568_v21, %v565_v20  ;;  %v652_v27 = vpack.c.bf16 %v569_v26, %v566_v25  ;;  %v571_v28 = vld [vmem:[%s816_s1 + $0x98] sm:$0xff]  ;;  %v574_v29 = vld [vmem:[%s816_s1 + $0xb0] sm:$0xff] }
   0x8   :  { %v572_v30 = vld [vmem:[%s816_s1 + $0xa0] sm:$0xff]  ;;  %v15_v31 = vld [vmem:[%s817_s0 + $0x8] sm:$0xff]  ;;  %v646_v32 = vpack.c.bf16 %v567_v24, %v564_v22  ;;  %v575_v33 = vld [vmem:[%s816_s1 + $0xb8] sm:$0xff]  ;;  %v648_v35 = vpack.c.bf16 %v574_v29, %v571_v28 }
   0x9   :  { %635 = vmatpush1.bf16.msra.mxu0 %v634_v18  ;;  %v16_v34 = vld [vmem:[%s817_s0 + $0x10] sm:$0xff]  ;;  %v573_v37 = vld [vmem:[%s816_s1 + $0xa8] sm:$0xff]  ;;  %v656_v38 = vpack.c.bf16 %v575_v33, %v572_v30  ;;  %v17_v39 = vld [vmem:[%s817_s0 + $0x18] sm:$0xff] }
   0xa   :  { %643 = vmatpush3.bf16.msra.mxu1 %v640_v17  ;;  %653 = vmatprep.subr.bf16.mxu0 %v652_v27  ;;  %v570_v36 = vld [vmem:[%s816_s1 + $0x90] sm:$0xff] }
   0xb   :  { %645 = vmatprep.subr.bf16.mxu1 %v644_v23  ;;  %v650_v40 = vpack.c.bf16 %v573_v37, %v570_v36 }
   0xc   :  { %556 = vmatmul.mubr.msk.f32.vlgmr.msra.gmra.mrb[0].mxu0 %vm30_vm0, %v14_v19 }
   0xd   :  { %609 = vmatmul.mubr.msk.f32.vlgmr.msra.gmra.mrb[0].mxu1 %vm30_vm0, %v15_v31  ;;  %113 = vmatprep.mubr.f32.mxu0 %v662_v3 }
   0xe   :  { %647 = vmatpush1.bf16.msra.mxu1 %v646_v32  ;;  %611 = vmatprep.mubr.msk.f32.mxu1 %vm30_vm0, %v16_v34 }
   0xf   :  { %655 = vmatpush3.bf16.msra.mxu0 %v652_v27  ;;  %649 = vmatprep.subr.bf16.mxu1 %v648_v35 }
  0x10   :  { %557 = vmatmul.mubr.msk.f32.gmra.mrb[2].mxu0 %vm30_vm0, %v15_v31  ;;  %657 = vmatprep.subr.bf16.mxu0 %v656_v38 }
  0x11   :  { %612 = vmatmul.mubr.msk.f32.gmra.mrb[2].mxu1 %vm30_vm0, %v17_v39  ;;  %119 = vmatprep.mubr.f32.mxu0 %v662_v3 }
  0x12   :  { %651 = vmatpush1.bf16.msra.mxu1 %v650_v40  ;;  %294 = vmatprep.mubr.f32.mxu1 %v662_v3 }
  0x13   :  { %659 = vmatpush3.bf16.msra.mxu0 %v656_v38  ;;  %v513_v38 = vlaneseq }
  0x14   :  { %558 = vmatmul.mubr.msk.f32.gmra.mrb[4].mxu0 %vm30_vm0, %v16_v34 }
  0x15   :  { %576 = vmatmul.mubr.msk.f32.vlgmr.msra.gmra.mrb[4].mxu1 %vm30_vm0, %v14_v19  ;;  %125 = vmatprep.mubr.f32.mxu0 %v662_v3 }
  0x16   :  { %300 = vmatprep.mubr.f32.mxu1 %v662_v3 }
  0x18   :  { %559 = vmatmul.mubr.msk.f32.gmra.mrb[6].mxu0 %vm30_vm0, %v17_v39 }
  0x19   :  { %577 = vmatmul.mubr.msk.f32.gmra.mrb[6].mxu1 %vm30_vm0, %v15_v31  ;;  %622 = vmatprep.mubr.msk.f32.mxu0 %vm30_vm0, %v14_v19 }
  0x1a   :  { %306 = vmatprep.mubr.f32.mxu1 %v662_v3 }
  0x1c   :  { %623 = vmatmul.mubr.msk.f32.vlgmr.msra.gmra.mrb[8].mxu0 %vm30_vm0, %v15_v31 }
  0x1d   :  { %578 = vmatmul.mubr.msk.f32.gmra.mrb[8].mxu1 %vm30_vm0, %v16_v34  ;;  %625 = vmatprep.mubr.msk.f32.mxu0 %vm30_vm0, %v16_v34 }
  0x1e   :  { %312 = vmatprep.mubr.f32.mxu1 %v662_v3 }
  0x20   :  { %626 = vmatmul.mubr.msk.f32.gmra.mrb[10].mxu0 %vm30_vm0, %v17_v39 }
  0x21   :  { %579 = vmatmul.mubr.msk.f32.gmra.mrb[10].mxu1 %vm30_vm0, %v17_v39 }
  0xdf   :  { %v109_v41 = vpop.f32.mrb[0].mxu0 }
  0xe0   :  { %v610_v42 = vpop.f32.mrb[0].mxu1  ;;  %v111_v43 = vpop.f32.mrb[1].mxu0 }
  0xe1   :  { %v198_v44 = vpop.f32.mrb[1].mxu1 }
  0xe3   :  { %v115_v45 = vpop.f32.mrb[2].mxu0 }
  0xe4   :  { %v613_v46 = vpop.f32.mrb[2].mxu1  ;;  %v117_v47 = vpop.f32.mrb[3].mxu0 }
  0xe5   :  { %v792_v48 = vpop.f32.mrb[3].mxu1 }
  0xe7   :  { %v121_v49 = vpop.f32.mrb[4].mxu0 }
  0xe8   :  { %v296_v50 = vpop.f32.mrb[4].mxu1  ;;  %v123_v51 = vpop.f32.mrb[5].mxu0 }
  0xe9   :  { %v298_v52 = vpop.f32.mrb[5].mxu1  ;;  %v411_v56 = vrot.slane %v296_v50, 1 }
  0xea   :  { %v414_v59 = vrot.slane %v298_v52, 1 }
  0xeb   :  { %v127_v53 = vpop.f32.mrb[6].mxu0 }
  0xec   :  { %v302_v54 = vpop.f32.mrb[6].mxu1  ;;  %v129_v55 = vpop.f32.mrb[7].mxu0 }
  0xed   :  { %v412_v57 = vrot.slane %v302_v54, 1  ;;  %v304_v58 = vpop.f32.mrb[7].mxu1 }
  0xee   :  { %v415_v60 = vrot.slane %v304_v58, 1 }
  0xef   :  { %v413_v61 = vsel %vm410_vm1, %v411_v56, %v412_v57  ;;  %v429_v62 = vadd.f32 %v412_v57, %v115_v45  ;;  %v624_v63 = vpop.f32.mrb[8].mxu0  ;;  %v514_v56 = vshrl.u32 %v513_v38, 7 }
  0xf0   :  { %v426_v0 = vadd.f32 %v413_v61, %v109_v41  ;;  %v416_v1 = vsel %vm410_vm1, %v414_v59, %v415_v60  ;;  %v430_v2 = vadd.f32 %v415_v60, %v117_v47  ;;  %v308_v3 = vpop.f32.mrb[8].mxu1  ;;  %v418_v4 = vrot.slane %v624_v63, 1  ;;  %v385_v5 = vpop.f32.mrb[9].mxu0 }
  0xf1   :  { %v459_v6 = vsel %vm410_vm1, %v429_v62, -inf  ;;  %v427_v7 = vadd.f32 %v416_v1, %v111_v43  ;;  %v310_v8 = vpop.f32.mrb[9].mxu1  ;;  %v417_v9 = vrot.slane %v385_v5, 1  ;;  %v438_v23 = vrot.slane %v308_v3, 1 }
  0xf2   :  { %v460_v10 = vmax.f32 %v426_v0, %v459_v6  ;;  %v467_v11 = vsel %vm410_vm1, %v430_v2, -inf  ;;  %v431_v12 = vadd.f32 %v610_v42, %v418_v4  ;;  %v441_v31 = vrot.slane %v310_v8, 1 }
  0xf3   :  { %v468_v13 = vmax.f32 %v427_v7, %v467_v11  ;;  %v419_v14 = vsel %vm410_vm1, %v417_v9, %v418_v4  ;;  %v627_v15 = vpop.f32.mrb[10].mxu0  ;;  %v515_v1 = vsub.s32 0, %v514_v56  ;;  %v519_v5 = vsub.s32 1, %v514_v56 }
  0xf4   :  { %v461_v16 = vrot.slane %v460_v10, 4  ;;  %v475_v17 = vsel %vm410_vm1, %v431_v12, -inf  ;;  %v428_v18 = vadd.f32 %v419_v14, %v198_v44  ;;  %v314_v19 = vpop.f32.mrb[10].mxu1  ;;  %v445_v20 = vrot.slane %v627_v15, 1  ;;  %v395_v21 = vpop.f32.mrb[11].mxu0 }
  0xf5   :  { %v469_v22 = vrot.slane %v468_v13, 4  ;;  %v439_v24 = vrot.slane %v314_v19, 1  ;;  %v316_v25 = vpop.f32.mrb[11].mxu1  ;;  %v444_v26 = vrot.slane %v395_v21, 1  ;;  %v663_v6 = vmov 1983009808  }
  0xf6   :  { %v462_v27 = vmax.f32 %v460_v10, %v461_v16  ;;  %v476_v28 = vmax.f32 %v428_v18, %v475_v17  ;;  %v458_v29 = vadd.f32 %v613_v46, %v445_v20  ;;  %v442_v30 = vrot.slane %v316_v25, 1 }
  0xf7   :  { %v440_v32 = vsel %vm410_vm1, %v438_v23, %v439_v24  ;;  %v456_v33 = vadd.f32 %v439_v24, %v127_v53  ;;  %v446_v34 = vsel %vm410_vm1, %v444_v26, %v445_v20  ;;  %v470_v35 = vmax.f32 %v468_v13, %v469_v22 }
  0xf8   :  { %v477_v36 = vrot.slane %v476_v28, 4  ;;  %v453_v37 = vadd.f32 %v440_v32, %v121_v49  ;;  %v463_v39 = vrot.slane %v462_v27, 2  ;;  %v443_v41 = vsel %vm410_vm1, %v441_v31, %v442_v30 }
  0xf9   :  { %v483_v40 = vsel %vm410_vm1, %v456_v33, -inf  ;;  %v457_v42 = vadd.f32 %v442_v30, %v129_v55  ;;  %v499_v45 = vsel %vm410_vm1, %v458_v29, -inf  ;;  %v454_v46 = vadd.f32 %v443_v41, %v123_v51 }
  0xfa   :  { %v478_v43 = vmax.f32 %v476_v28, %v477_v36  ;;  %v484_v44 = vmax.f32 %v453_v37, %v483_v40  ;;  %v455_v50 = vadd.f32 %v446_v34, %v792_v48  ;;  %v471_v52 = vrot.slane %v470_v35, 2  ;;  %v511_v48 = vld [vmem:[%s818_s2] sm:$0x7] }
  0xfb   :  { %v491_v47 = vsel %vm410_vm1, %v457_v42, -inf  ;;  %v464_v58 = vmax.f32 %v462_v27, %v463_v39  ;;  %v536_v7 = vunpack.c.l.s4 %v663_v6  ;;  %v523_v12 = vsub.s32 2, %v514_v56 }
  0xfc   :  { %v485_v53 = vrot.slane %v484_v44, 4  ;;  %v492_v54 = vmax.f32 %v454_v46, %v491_v47  ;;  %v479_v49 = vrot.slane %v478_v43, 2  ;;  %v500_v57 = vmax.f32 %v455_v50, %v499_v45 }
  0xfd   :  { %v472_v55 = vmax.f32 %v470_v35, %v471_v52  ;;  %v465_v2 = vrot.slane %v464_v58, 1  ;;  %v516_v14 = vrot.slane %v511_v48, %v515_v1  ;;  %v520_v19 = vrot.slane %v511_v48, %v519_v5 }
  0xfe   :  { %v486_v59 = vmax.f32 %v484_v44, %v485_v53  ;;  %v493_v60 = vrot.slane %v492_v54, 4  ;;  %v501_v61 = vrot.slane %v500_v57, 4  ;;  %v480_v0 = vmax.f32 %v478_v43, %v479_v49 }
  0xff   :  { %v473_v9 = vrot.slane %v472_v55, 1  ;;  %v466_v16 = vmax.f32 %v464_v58, %v465_v2  ;;  %v537_v20 = vunpack.c.0.s8 %v536_v7  ;;  %v524_v25 = vrot.slane %v511_v48, %v523_v12 }
 0x100   :  { %v487_v62 = vrot.slane %v486_v59, 2  ;;  %v494_v63 = vmax.f32 %v492_v54, %v493_v60  ;;  %v502_v51 = vmax.f32 %v500_v57, %v501_v61  ;;  %v481_v13 = vrot.slane %v480_v0, 1 }
 0x101   :  { %v474_v22 = vmax.f32 %v472_v55, %v473_v9  ;;  %v540_v31 = vsub.s32 %v537_v20, %v514_v56 }
 0x102   :  { %v488_v3 = vmax.f32 %v486_v59, %v487_v62  ;;  %v495_v4 = vrot.slane %v494_v63, 2  ;;  %v503_v8 = vrot.slane %v502_v51, 2  ;;  %v482_v26 = vmax.f32 %v480_v0, %v481_v13 }
 0x104   :  { %v489_v10 = vrot.slane %v488_v3, 1  ;;  %v496_v11 = vmax.f32 %v494_v63, %v495_v4  ;;  %v504_v15 = vmax.f32 %v502_v51, %v503_v8 }
 0x106   :  { %v490_v17 = vmax.f32 %v488_v3, %v489_v10  ;;  %v497_v18 = vrot.slane %v496_v11, 1  ;;  %v505_v21 = vrot.slane %v504_v15, 1 }
 0x108   :  { %v508_v23 = vsel %vm507_vm2, %v466_v16, %v490_v17  ;;  %v498_v24 = vmax.f32 %v496_v11, %v497_v18  ;;  %v506_v28 = vmax.f32 %v504_v15, %v505_v21 }
 0x109   :  { %v528_v27 = vadd.f32 %v516_v14, %v508_v23 }
 0x10a   :  { %v509_v29 = vsel %vm507_vm2, %v474_v22, %v498_v24  ;;  %v510_v32 = vsel %vm507_vm2, %v482_v26, %v506_v28 }
 0x10b   :  { %v529_v30 = vadd.f32 %v520_v19, %v509_v29  ;;  %v530_v33 = vadd.f32 %v524_v25, %v510_v32 }
 0x10d   :  { %v534_v34 = vcombine.low %v528_v27, %v529_v30  ;;  %v548_v36 = vrot.slane %v530_v33, %v540_v31 }
 0x10f   :  { %v541_v35 = vrot.slane %v534_v34, %v540_v31 }
 0x111   :  { %v549_v37 = vcombine.low %v541_v35, %v548_v36 }
 0x113   :  { %551 = vst [vmem:[%s819_s3] sm:$0x3f] %v549_v37 }

// kernel: model_forward.24
= control target key start
LH: loop header
LB: loop body
LE: loop exit
PB: predicated region body
PF: predicated region fallthrough
CT: control target
= control target key end

     0   :  { %v962_v3 = vmov 0.0   ;;  %vm30_vm0 = vcmask 261120   ;;  %vm410_vm1 = vcmask 1046528   ;;  %vm652_vm2 = vcmask 1045504   ;;  %s1194_s1 = inlined_call_operand.vmem [shape: f32[3,32,384], index: 1, kind: input, shape index: {}]   ;;  %s1195_s0 = inlined_call_operand.vmem [shape: f32[32,32], index: 0, kind: input, shape index: {}]   ;;  %s1196_s2 = inlined_call_operand.vmem [shape: f32[1,384], index: 2, kind: input, shape index: {}]   ;;  %s1197_s3 = inlined_call_operand.vmem [shape: f32[2,384], index: 3, kind: output, shape index: {}]  }
   0x1   :  { %v19_v0 = vld [vmem:[%s1194_s1 + $0x8] sm:$0xff]  ;;  %v22_v1 = vld [vmem:[%s1194_s1 + $0x20] sm:$0xff]  ;;  %v20_v2 = vld [vmem:[%s1194_s1 + $0x10] sm:$0xff]  ;;  %107 = vmatprep.mubr.f32.mxu0 %v962_v3  ;;  %vm749_vm3 = vcmask 1040384  }
   0x2   :  { %v912_v4 = vpack.c.bf16 %v22_v1, %v19_v0  ;;  %v23_v5 = vld [vmem:[%s1194_s1 + $0x28] sm:$0xff]  ;;  %v18_v6 = vld [vmem:[%s1194_s1] sm:$0xff]  ;;  %v21_v7 = vld [vmem:[%s1194_s1 + $0x18] sm:$0xff] }
   0x3   :  { %v920_v8 = vpack.c.bf16 %v23_v5, %v20_v2  ;;  %v914_v9 = vpack.c.bf16 %v21_v7, %v18_v6  ;;  %v25_v10 = vld [vmem:[%s1194_s1 + $0x38] sm:$0xff]  ;;  %v28_v11 = vld [vmem:[%s1194_s1 + $0x50] sm:$0xff]  ;;  %v26_v12 = vld [vmem:[%s1194_s1 + $0x40] sm:$0xff] }
   0x4   :  { %913 = vmatprep.subr.bf16.mxu0 %v912_v4  ;;  %v916_v13 = vpack.c.bf16 %v28_v11, %v25_v10  ;;  %v29_v14 = vld [vmem:[%s1194_s1 + $0x58] sm:$0xff]  ;;  %v24_v15 = vld [vmem:[%s1194_s1 + $0x30] sm:$0xff]  ;;  %v27_v16 = vld [vmem:[%s1194_s1 + $0x48] sm:$0xff] }
   0x5   :  { %921 = vmatprep.subr.bf16.mxu1 %v920_v8  ;;  %915 = vmatpush1.bf16.msra.mxu0 %v914_v9  ;;  %v924_v17 = vpack.c.bf16 %v29_v14, %v26_v12  ;;  %v918_v18 = vpack.c.bf16 %v27_v16, %v24_v15  ;;  %v1024_v19 = vld [vmem:[%s1195_s0] sm:$0xff]  ;;  %v807_v20 = vld [vmem:[%s1194_s1 + $0x68] sm:$0xff]  ;;  %v808_v22 = vld [vmem:[%s1194_s1 + $0x70] sm:$0xff] }
   0x6   :  { %923 = vmatpush3.bf16.msra.mxu1 %v920_v8  ;;  %917 = vmatprep.subr.bf16.mxu0 %v916_v13  ;;  %v810_v21 = vld [vmem:[%s1194_s1 + $0x80] sm:$0xff]  ;;  %v811_v23 = vld [vmem:[%s1194_s1 + $0x88] sm:$0xff]  ;;  %v809_v27 = vld [vmem:[%s1194_s1 + $0x78] sm:$0xff] }
   0x7   :  { %925 = vmatprep.subr.bf16.mxu1 %v924_v17  ;;  %878 = vmatprep.mubr.msk.f32.mxu1 %vm30_vm0, %v1024_v19  ;;  %v928_v24 = vpack.c.bf16 %v810_v21, %v807_v20  ;;  %v936_v25 = vpack.c.bf16 %v811_v23, %v808_v22  ;;  %v806_v26 = vld [vmem:[%s1194_s1 + $0x60] sm:$0xff]  ;;  %v813_v28 = vld [vmem:[%s1194_s1 + $0x98] sm:$0xff]  ;;  %v816_v29 = vld [vmem:[%s1194_s1 + $0xb0] sm:$0xff] }
   0x8   :  { %v814_v30 = vld [vmem:[%s1194_s1 + $0xa0] sm:$0xff]  ;;  %v1058_v31 = vld [vmem:[%s1195_s0 + $0x8] sm:$0xff]  ;;  %v930_v32 = vpack.c.bf16 %v809_v27, %v806_v26  ;;  %v817_v33 = vld [vmem:[%s1194_s1 + $0xb8] sm:$0xff]  ;;  %v932_v34 = vpack.c.bf16 %v816_v29, %v813_v28 }
   0x9   :  { %919 = vmatpush1.bf16.msra.mxu0 %v918_v18  ;;  %v812_v35 = vld [vmem:[%s1194_s1 + $0x90] sm:$0xff]  ;;  %v815_v36 = vld [vmem:[%s1194_s1 + $0xa8] sm:$0xff]  ;;  %v940_v38 = vpack.c.bf16 %v817_v33, %v814_v30  ;;  %v830_v42 = vld [vmem:[%s1194_s1 + $0xe0] sm:$0xff] }
   0xa   :  { %927 = vmatpush3.bf16.msra.mxu1 %v924_v17  ;;  %937 = vmatprep.subr.bf16.mxu0 %v936_v25  ;;  %v1074_v37 = vld [vmem:[%s1195_s0 + $0x10] sm:$0xff]  ;;  %v831_v40 = vld [vmem:[%s1194_s1 + $0xe8] sm:$0xff]  ;;  %v17_v43 = vld [vmem:[%s1195_s0 + $0x18] sm:$0xff]  ;;  %v934_v44 = vpack.c.bf16 %v815_v36, %v812_v35 }
   0xb   :  { %929 = vmatprep.subr.bf16.mxu1 %v928_v24  ;;  %v828_v39 = vld [vmem:[%s1194_s1 + $0xd0] sm:$0xff]  ;;  %v827_v41 = vld [vmem:[%s1194_s1 + $0xc8] sm:$0xff]  ;;  %v834_v47 = vld [vmem:[%s1194_s1 + $0x100] sm:$0xff] }
   0xc   :  { %798 = vmatmul.mubr.msk.f32.vlgmr.msra.gmra.mrb[0].mxu0 %vm30_vm0, %v1024_v19  ;;  %v952_v45 = vpack.c.bf16 %v831_v40, %v828_v39  ;;  %v944_v46 = vpack.c.bf16 %v830_v42, %v827_v41  ;;  %v837_v48 = vld [vmem:[%s1194_s1 + $0x118] sm:$0xff]  ;;  %v826_v50 = vld [vmem:[%s1194_s1 + $0xc0] sm:$0xff]  ;;  %v836_v53 = vld [vmem:[%s1194_s1 + $0x110] sm:$0xff] }
   0xd   :  { %879 = vmatmul.mubr.msk.f32.vlgmr.msra.gmra.mrb[0].mxu1 %vm30_vm0, %v1058_v31  ;;  %939 = vmatpush3.bf16.msra.mxu0 %v936_v25  ;;  %v956_v49 = vpack.c.bf16 %v837_v48, %v834_v47  ;;  %v829_v51 = vld [vmem:[%s1194_s1 + $0xd8] sm:$0xff]  ;;  %v832_v55 = vld [vmem:[%s1194_s1 + $0xf0] sm:$0xff]  ;;  %v835_v56 = vld [vmem:[%s1194_s1 + $0x108] sm:$0xff] }
   0xe   :  { %931 = vmatpush1.bf16.msra.mxu1 %v930_v32  ;;  %113 = vmatprep.mubr.f32.mxu0 %v962_v3  ;;  %v833_v52 = vld [vmem:[%s1194_s1 + $0xf8] sm:$0xff]  ;;  %v946_v54 = vpack.c.bf16 %v829_v51, %v826_v50  ;;  %v950_v58 = vpack.c.bf16 %v835_v56, %v832_v55 }
   0xf   :  { %881 = vmatprep.mubr.msk.f32.mxu1 %vm30_vm0, %v1074_v37  ;;  %933 = vmatprep.subr.bf16.mxu1 %v932_v34  ;;  %v948_v57 = vpack.c.bf16 %v836_v53, %v833_v52 }
  0x10   :  { %799 = vmatmul.mubr.msk.f32.gmra.mrb[2].mxu0 %vm30_vm0, %v1058_v31  ;;  %941 = vmatprep.subr.bf16.mxu0 %v940_v38 }
  0x11   :  { %882 = vmatmul.mubr.msk.f32.gmra.mrb[2].mxu1 %vm30_vm0, %v17_v43  ;;  %119 = vmatprep.mubr.f32.mxu0 %v962_v3 }
  0x12   :  { %935 = vmatpush1.bf16.msra.mxu1 %v934_v44  ;;  %294 = vmatprep.mubr.f32.mxu1 %v962_v3 }
  0x13   :  { %943 = vmatpush3.bf16.msra.mxu0 %v940_v38  ;;  %953 = vmatprep.subr.bf16.mxu1 %v952_v45 }
  0x14   :  { %800 = vmatmul.mubr.msk.f32.gmra.mrb[4].mxu0 %vm30_vm0, %v1074_v37  ;;  %945 = vmatprep.subr.bf16.mxu0 %v944_v46 }
  0x15   :  { %818 = vmatmul.mubr.msk.f32.vlgmr.msra.gmra.mrb[4].mxu1 %vm30_vm0, %v1024_v19  ;;  %125 = vmatprep.mubr.f32.mxu0 %v962_v3 }
  0x16   :  { %300 = vmatprep.mubr.f32.mxu1 %v962_v3  ;;  %955 = vmatpush3.bf16.msra.mxu1 %v952_v45 }
  0x17   :  { %957 = vmatprep.subr.bf16.mxu1 %v956_v49 }
  0x18   :  { %801 = vmatmul.mubr.msk.f32.gmra.mrb[6].mxu0 %vm30_vm0, %v17_v43 }
  0x19   :  { %819 = vmatmul.mubr.msk.f32.gmra.mrb[6].mxu1 %vm30_vm0, %v1058_v31  ;;  %892 = vmatprep.mubr.msk.f32.mxu0 %vm30_vm0, %v1024_v19 }
  0x1a   :  { %306 = vmatprep.mubr.f32.mxu1 %v962_v3  ;;  %959 = vmatpush3.bf16.msra.mxu1 %v956_v49 }
  0x1c   :  { %893 = vmatmul.mubr.msk.f32.vlgmr.msra.gmra.mrb[8].mxu0 %vm30_vm0, %v1058_v31 }
  0x1d   :  { %820 = vmatmul.mubr.msk.f32.gmra.mrb[8].mxu1 %vm30_vm0, %v1074_v37  ;;  %947 = vmatpush1.bf16.msra.mxu0 %v946_v54 }
  0x1e   :  { %312 = vmatprep.mubr.f32.mxu1 %v962_v3  ;;  %895 = vmatprep.mubr.msk.f32.mxu0 %vm30_vm0, %v1074_v37 }
  0x1f   :  { %949 = vmatprep.subr.bf16.mxu0 %v948_v57 }
  0x20   :  { %896 = vmatmul.mubr.msk.f32.gmra.mrb[10].mxu0 %vm30_vm0, %v17_v43 }
  0x21   :  { %821 = vmatmul.mubr.msk.f32.gmra.mrb[10].mxu1 %vm30_vm0, %v17_v43  ;;  %951 = vmatpush1.bf16.msra.mxu0 %v950_v58 }
  0x22   :  { %536 = vmatprep.mubr.f32.mxu0 %v962_v3  ;;  %906 = vmatprep.mubr.msk.f32.mxu1 %vm30_vm0, %v1024_v19 }
  0x24   :  { %838 = vmatmul.mubr.msk.f32.vlgmr.msra.gmra.mrb[12].mxu0 %vm30_vm0, %v1024_v19 }
  0x25   :  { %907 = vmatmul.mubr.msk.f32.vlgmr.msra.gmra.mrb[12].mxu1 %vm30_vm0, %v1058_v31  ;;  %542 = vmatprep.mubr.f32.mxu0 %v962_v3 }
  0x26   :  { %909 = vmatprep.mubr.msk.f32.mxu1 %vm30_vm0, %v1074_v37 }
  0x28   :  { %839 = vmatmul.mubr.msk.f32.gmra.mrb[14].mxu0 %vm30_vm0, %v1058_v31 }
  0x29   :  { %910 = vmatmul.mubr.msk.f32.gmra.mrb[14].mxu1 %vm30_vm0, %v17_v43  ;;  %548 = vmatprep.mubr.f32.mxu0 %v962_v3 }
  0x2c   :  { %840 = vmatmul.mubr.msk.f32.gmra.mrb[16].mxu0 %vm30_vm0, %v1074_v37 }
  0x2d   :  { %554 = vmatprep.mubr.f32.mxu0 %v962_v3 }
  0x30   :  { %841 = vmatmul.mubr.msk.f32.gmra.mrb[18].mxu0 %vm30_vm0, %v17_v43 }
  0xdf   :  { %v109_v59 = vpop.f32.mrb[0].mxu0 }
  0xe0   :  { %v111_v60 = vpop.f32.mrb[1].mxu0  ;;  %v880_v61 = vpop.f32.mrb[0].mxu1 }
  0xe1   :  { %v198_v62 = vpop.f32.mrb[1].mxu1 }
  0xe3   :  { %v115_v63 = vpop.f32.mrb[2].mxu0 }
  0xe4   :  { %v117_v0 = vpop.f32.mrb[3].mxu0  ;;  %v883_v1 = vpop.f32.mrb[2].mxu1 }
  0xe5   :  { %v208_v2 = vpop.f32.mrb[3].mxu1 }
  0xe7   :  { %v121_v4 = vpop.f32.mrb[4].mxu0 }
  0xe8   :  { %v123_v5 = vpop.f32.mrb[5].mxu0  ;;  %v296_v6 = vpop.f32.mrb[4].mxu1 }
  0xe9   :  { %v298_v7 = vpop.f32.mrb[5].mxu1  ;;  %v411_v8 = vrot.slane %v296_v6, 1 }
  0xea   :  { %v414_v10 = vrot.slane %v298_v7, 1 }
  0xeb   :  { %v127_v9 = vpop.f32.mrb[6].mxu0 }
  0xec   :  { %v302_v11 = vpop.f32.mrb[6].mxu1  ;;  %v129_v3 = vpop.f32.mrb[7].mxu0 }
  0xed   :  { %v412_v12 = vrot.slane %v302_v11, 1  ;;  %v304_v13 = vpop.f32.mrb[7].mxu1 }
  0xee   :  { %v415_v14 = vrot.slane %v304_v13, 1 }
  0xef   :  { %v413_v15 = vsel %vm410_vm1, %v411_v8, %v412_v12  ;;  %v429_v16 = vadd.f32 %v412_v12, %v115_v63  ;;  %v894_v17 = vpop.f32.mrb[8].mxu0 }
  0xf0   :  { %v426_v18 = vadd.f32 %v413_v15, %v109_v59  ;;  %v416_v19 = vsel %vm410_vm1, %v414_v10, %v415_v14  ;;  %v430_v20 = vadd.f32 %v415_v14, %v117_v0  ;;  %v418_v21 = vrot.slane %v894_v17, 1  ;;  %v385_v22 = vpop.f32.mrb[9].mxu0  ;;  %v308_v23 = vpop.f32.mrb[8].mxu1 }
  0xf1   :  { %v427_v24 = vadd.f32 %v416_v19, %v111_v60  ;;  %v417_v25 = vrot.slane %v385_v22, 1  ;;  %v310_v26 = vpop.f32.mrb[9].mxu1  ;;  %v438_v29 = vrot.slane %v308_v23, 1 }
  0xf2   :  { %v431_v27 = vadd.f32 %v880_v61, %v418_v21  ;;  %v441_v32 = vrot.slane %v310_v26, 1 }
  0xf3   :  { %v419_v28 = vsel %vm410_vm1, %v417_v25, %v418_v21  ;;  %v897_v30 = vpop.f32.mrb[10].mxu0 }
  0xf4   :  { %v428_v31 = vadd.f32 %v419_v28, %v198_v62  ;;  %v314_v33 = vpop.f32.mrb[10].mxu1  ;;  %v445_v34 = vrot.slane %v897_v30, 1  ;;  %v395_v35 = vpop.f32.mrb[11].mxu0 }
  0xf5   :  { %v439_v36 = vrot.slane %v314_v33, 1  ;;  %v316_v37 = vpop.f32.mrb[11].mxu1  ;;  %v444_v38 = vrot.slane %v395_v35, 1 }
  0xf6   :  { %v458_v39 = vadd.f32 %v883_v1, %v445_v34  ;;  %v442_v40 = vrot.slane %v316_v37, 1 }
  0xf7   :  { %v440_v41 = vsel %vm410_vm1, %v438_v29, %v439_v36  ;;  %v456_v42 = vadd.f32 %v439_v36, %v127_v9  ;;  %v446_v43 = vsel %vm410_vm1, %v444_v38, %v445_v34  ;;  %v538_v44 = vpop.f32.mrb[12].mxu0 }
  0xf8   :  { %v453_v45 = vadd.f32 %v440_v41, %v121_v4  ;;  %v443_v46 = vsel %vm410_vm1, %v441_v32, %v442_v40  ;;  %v1170_v47 = vadd.f32 %v442_v40, %v129_v3  ;;  %v455_v48 = vadd.f32 %v446_v43, %v208_v2  ;;  %v908_v49 = vpop.f32.mrb[12].mxu1  ;;  %v540_v50 = vpop.f32.mrb[13].mxu0 }
  0xf9   :  { %v454_v51 = vadd.f32 %v443_v46, %v123_v5  ;;  %v660_v52 = vrot.slane %v908_v49, 2  ;;  %v627_v53 = vpop.f32.mrb[13].mxu1  ;;  %v653_v57 = vrot.slane %v538_v44, 2  ;;  %v656_v58 = vrot.slane %v540_v50, 2 }
  0xfa   :  { %v659_v54 = vrot.slane %v627_v53, 2 }
  0xfb   :  { %v673_v55 = vadd.f32 %v660_v52, %v431_v27  ;;  %v544_v56 = vpop.f32.mrb[14].mxu0 }
  0xfc   :  { %v661_v59 = vsel %vm652_vm2, %v659_v54, %v660_v52  ;;  %v654_v60 = vrot.slane %v544_v56, 2  ;;  %v911_v61 = vpop.f32.mrb[14].mxu1  ;;  %v546_v62 = vpop.f32.mrb[15].mxu0 }
  0xfd   :  { %v717_v63 = vsel %vm652_vm2, %v673_v55, -inf  ;;  %v670_v0 = vadd.f32 %v661_v59, %v428_v31  ;;  %v687_v1 = vrot.slane %v911_v61, 2  ;;  %v657_v2 = vrot.slane %v546_v62, 2  ;;  %v637_v4 = vpop.f32.mrb[15].mxu1 }
  0xfe   :  { %v655_v5 = vsel %vm652_vm2, %v653_v57, %v654_v60  ;;  %v671_v6 = vadd.f32 %v654_v60, %v429_v16  ;;  %v686_v7 = vrot.slane %v637_v4, 2 }
  0xff   :  { %v718_v8 = vmax.f32 %v670_v0, %v717_v63  ;;  %v668_v9 = vadd.f32 %v655_v5, %v426_v18  ;;  %v700_v10 = vadd.f32 %v687_v1, %v458_v39  ;;  %v658_v11 = vsel %vm652_vm2, %v656_v58, %v657_v2  ;;  %v550_v3 = vpop.f32.mrb[16].mxu0 }
 0x100   :  { %v701_v12 = vsel %vm652_vm2, %v671_v6, -inf  ;;  %v669_v13 = vadd.f32 %v658_v11, %v427_v24  ;;  %v672_v14 = vadd.f32 %v657_v2, %v430_v20  ;;  %v688_v15 = vsel %vm652_vm2, %v686_v7, %v687_v1  ;;  %v552_v17 = vpop.f32.mrb[17].mxu0 }
 0x101   :  { %v719_v19 = vrot.slane %v718_v8, 4  ;;  %v702_v21 = vmax.f32 %v668_v9, %v701_v12  ;;  %v741_v22 = vsel %vm652_vm2, %v700_v10, -inf  ;;  %v697_v23 = vadd.f32 %v688_v15, %v455_v48 }
 0x102   :  { %v709_v16 = vsel %vm652_vm2, %v672_v14, -inf  ;;  %v680_v29 = vrot.slane %v550_v3, 2  ;;  %v683_v33 = vrot.slane %v552_v17, 2  ;;  %v963_v9 = vmov 1983009808  }
 0x103   :  { %v720_v25 = vmax.f32 %v718_v8, %v719_v19  ;;  %v703_v18 = vrot.slane %v702_v21, 4  ;;  %v710_v26 = vmax.f32 %v669_v13, %v709_v16  ;;  %v742_v27 = vmax.f32 %v697_v23, %v741_v22  ;;  %v556_v28 = vpop.f32.mrb[18].mxu0  ;;  %v753_v13 = vld [vmem:[%s1196_s2] sm:$0x7] }
 0x104   :  { %v681_v30 = vrot.slane %v556_v28, 2  ;;  %v558_v31 = vpop.f32.mrb[19].mxu0  ;;  %v778_v10 = vunpack.c.l.s4 %v963_v9 }
 0x105   :  { %v721_v24 = vrot.slane %v720_v25, 2  ;;  %v711_v20 = vrot.slane %v710_v26, 4  ;;  %v743_v32 = vrot.slane %v742_v27, 4  ;;  %v704_v34 = vmax.f32 %v702_v21, %v703_v18 }
 0x106   :  { %v682_v35 = vsel %vm652_vm2, %v680_v29, %v681_v30  ;;  %v698_v36 = vadd.f32 %v681_v30, %v456_v42  ;;  %v684_v37 = vrot.slane %v558_v31, 2  ;;  %v755_v42 = vlaneseq }
 0x107   :  { %v722_v38 = vmax.f32 %v720_v25, %v721_v24  ;;  %v712_v39 = vmax.f32 %v710_v26, %v711_v20  ;;  %v744_v40 = vmax.f32 %v742_v27, %v743_v32  ;;  %v695_v41 = vadd.f32 %v682_v35, %v453_v45 }
 0x108   :  { %v725_v43 = vsel %vm652_vm2, %v698_v36, -inf  ;;  %v685_v44 = vsel %vm652_vm2, %v683_v33, %v684_v37  ;;  %v699_v46 = vadd.f32 %v684_v37, %v1170_v47  ;;  %v705_v49 = vrot.slane %v704_v34, 2 }
 0x109   :  { %v745_v48 = vrot.slane %v744_v40, 2  ;;  %v726_v50 = vmax.f32 %v695_v41, %v725_v43  ;;  %v696_v52 = vadd.f32 %v685_v44, %v454_v51  ;;  %v723_v54 = vrot.slane %v722_v38, 1 }
 0x10a   :  { %v733_v53 = vsel %vm652_vm2, %v699_v46, -inf  ;;  %v713_v56 = vrot.slane %v712_v39, 2  ;;  %v706_v45 = vmax.f32 %v704_v34, %v705_v49  ;;  %v756_v47 = vshrl.u32 %v755_v42, 7 }
 0x10b   :  { %v746_v55 = vmax.f32 %v744_v40, %v745_v48  ;;  %v727_v57 = vrot.slane %v726_v50, 4  ;;  %v734_v58 = vmax.f32 %v696_v52, %v733_v53  ;;  %v724_v62 = vmax.f32 %v722_v38, %v723_v54 }
 0x10c   :  { %v714_v0 = vmax.f32 %v712_v39, %v713_v56  ;;  %v757_v4 = vsub.s32 0, %v756_v47  ;;  %v707_v5 = vrot.slane %v706_v45, 1  ;;  %v765_v8 = vsub.s32 2, %v756_v47 }
 0x10d   :  { %v747_v59 = vrot.slane %v746_v55, 1  ;;  %v728_v60 = vmax.f32 %v726_v50, %v727_v57  ;;  %v735_v61 = vrot.slane %v734_v58, 4  ;;  %v761_v11 = vsub.s32 1, %v756_v47 }
 0x10e   :  { %v715_v3 = vrot.slane %v714_v0, 1  ;;  %v758_v15 = vrot.slane %v753_v13, %v757_v4  ;;  %v708_v17 = vmax.f32 %v706_v45, %v707_v5  ;;  %v766_v22 = vrot.slane %v753_v13, %v765_v8 }
 0x10f   :  { %v748_v63 = vmax.f32 %v746_v55, %v747_v59  ;;  %v729_v1 = vrot.slane %v728_v60, 2  ;;  %v736_v2 = vmax.f32 %v734_v58, %v735_v61  ;;  %v779_v23 = vunpack.c.0.s8 %v778_v10 }
 0x110   :  { %v762_v16 = vrot.slane %v753_v13, %v761_v11  ;;  %v716_v25 = vmax.f32 %v714_v0, %v715_v3 }
 0x111   :  { %v752_v51 = vsel %vm749_vm3, %v724_v62, %v748_v63  ;;  %v730_v6 = vmax.f32 %v728_v60, %v729_v1  ;;  %v737_v7 = vrot.slane %v736_v2, 2  ;;  %v782_v30 = vsub.s32 %v779_v23, %v756_v47 }
 0x112   :  { %v772_v29 = vadd.f32 %v766_v22, %v752_v51 }
 0x113   :  { %v731_v12 = vrot.slane %v730_v6, 1  ;;  %v738_v14 = vmax.f32 %v736_v2, %v737_v7 }
 0x114   :  { %v790_v20 = vrot.slane %v772_v29, %v782_v30 }
 0x115   :  { %v732_v19 = vmax.f32 %v730_v6, %v731_v12  ;;  %v739_v21 = vrot.slane %v738_v14, 1 }
 0x117   :  { %v750_v18 = vsel %vm749_vm3, %v708_v17, %v732_v19  ;;  %v740_v26 = vmax.f32 %v738_v14, %v739_v21 }
 0x118   :  { %v770_v27 = vadd.f32 %v758_v15, %v750_v18 }
 0x119   :  { %v751_v28 = vsel %vm749_vm3, %v716_v25, %v740_v26 }
 0x11a   :  { %v771_v31 = vadd.f32 %v762_v16, %v751_v28 }
 0x11c   :  { %v776_v24 = vcombine.low %v770_v27, %v771_v31 }
 0x11e   :  { %v783_v32 = vrot.slane %v776_v24, %v782_v30 }
 0x120   :  { %v791_v33 = vcombine.low %v783_v32, %v790_v20 }
 0x122   :  { %793 = vst [vmem:[%s1197_s3] sm:$0x3f] %v791_v33 }

// kernel: model_forward.25
= control target key start
LH: loop header
LB: loop body
LE: loop exit
PB: predicated region body
PF: predicated region fallthrough
CT: control target
= control target key end

     0   :  { %v1562_v3 = vmov 0.0   ;;  %vm30_vm0 = vcmask 261120   ;;  %vm410_vm1 = vcmask 1046528   ;;  %vm652_vm2 = vcmask 1045504   ;;  %s1926_s1 = inlined_call_operand.vmem [shape: f32[5,32,384], index: 1, kind: input, shape index: {}]   ;;  %s1927_s0 = inlined_call_operand.vmem [shape: f32[32,32], index: 0, kind: input, shape index: {}]   ;;  %s1928_s2 = inlined_call_operand.vmem [shape: f32[1,384], index: 2, kind: input, shape index: {}]   ;;  %s1929_s3 = inlined_call_operand.vmem [shape: f32[2,384], index: 3, kind: output, shape index: {}]  }
   0x1   :  { %v19_v0 = vld [vmem:[%s1926_s1 + $0x8] sm:$0xff]  ;;  %v22_v1 = vld [vmem:[%s1926_s1 + $0x20] sm:$0xff]  ;;  %v20_v2 = vld [vmem:[%s1926_s1 + $0x10] sm:$0xff]  ;;  %107 = vmatprep.mubr.f32.mxu0 %v1562_v3  ;;  %vm894_vm3 = vcmask 1044480   ;;  %vm1136_vm4 = vcmask 1043456   ;;  %vm1233_vm5 = vcmask 1040384  }
   0x2   :  { %v1480_v4 = vpack.c.bf16 %v22_v1, %v19_v0  ;;  %v23_v5 = vld [vmem:[%s1926_s1 + $0x28] sm:$0xff]  ;;  %v18_v6 = vld [vmem:[%s1926_s1] sm:$0xff]  ;;  %v21_v7 = vld [vmem:[%s1926_s1 + $0x18] sm:$0xff] }
   0x3   :  { %v1488_v8 = vpack.c.bf16 %v23_v5, %v20_v2  ;;  %v1482_v9 = vpack.c.bf16 %v21_v7, %v18_v6  ;;  %v25_v10 = vld [vmem:[%s1926_s1 + $0x38] sm:$0xff]  ;;  %v28_v11 = vld [vmem:[%s1926_s1 + $0x50] sm:$0xff]  ;;  %v26_v12 = vld [vmem:[%s1926_s1 + $0x40] sm:$0xff] }
   0x4   :  { %1481 = vmatprep.subr.bf16.mxu0 %v1480_v4  ;;  %v1484_v13 = vpack.c.bf16 %v28_v11, %v25_v10  ;;  %v29_v14 = vld [vmem:[%s1926_s1 + $0x58] sm:$0xff]  ;;  %v24_v15 = vld [vmem:[%s1926_s1 + $0x30] sm:$0xff]  ;;  %v27_v16 = vld [vmem:[%s1926_s1 + $0x48] sm:$0xff] }
   0x5   :  { %1489 = vmatprep.subr.bf16.mxu1 %v1488_v8  ;;  %1483 = vmatpush1.bf16.msra.mxu0 %v1482_v9  ;;  %v1492_v17 = vpack.c.bf16 %v29_v14, %v26_v12  ;;  %v1486_v18 = vpack.c.bf16 %v27_v16, %v24_v15  ;;  %v1624_v19 = vld [vmem:[%s1927_s0] sm:$0xff]  ;;  %v1291_v20 = vld [vmem:[%s1926_s1 + $0x68] sm:$0xff]  ;;  %v1292_v22 = vld [vmem:[%s1926_s1 + $0x70] sm:$0xff] }
   0x6   :  { %1491 = vmatpush3.bf16.msra.mxu1 %v1488_v8  ;;  %1485 = vmatprep.subr.bf16.mxu0 %v1484_v13  ;;  %v1294_v21 = vld [vmem:[%s1926_s1 + $0x80] sm:$0xff]  ;;  %v1295_v23 = vld [vmem:[%s1926_s1 + $0x88] sm:$0xff]  ;;  %v1293_v27 = vld [vmem:[%s1926_s1 + $0x78] sm:$0xff] }
   0x7   :  { %1493 = vmatprep.subr.bf16.mxu1 %v1492_v17  ;;  %1418 = vmatprep.mubr.msk.f32.mxu1 %vm30_vm0, %v1624_v19  ;;  %v1496_v24 = vpack.c.bf16 %v1294_v21, %v1291_v20  ;;  %v1504_v25 = vpack.c.bf16 %v1295_v23, %v1292_v22  ;;  %v1290_v26 = vld [vmem:[%s1926_s1 + $0x60] sm:$0xff]  ;;  %v1297_v28 = vld [vmem:[%s1926_s1 + $0x98] sm:$0xff]  ;;  %v1300_v29 = vld [vmem:[%s1926_s1 + $0xb0] sm:$0xff] }
   0x8   :  { %v1298_v30 = vld [vmem:[%s1926_s1 + $0xa0] sm:$0xff]  ;;  %v1658_v31 = vld [vmem:[%s1927_s0 + $0x8] sm:$0xff]  ;;  %v1498_v32 = vpack.c.bf16 %v1293_v27, %v1290_v26  ;;  %v1301_v33 = vld [vmem:[%s1926_s1 + $0xb8] sm:$0xff]  ;;  %v1500_v34 = vpack.c.bf16 %v1300_v29, %v1297_v28 }
   0x9   :  { %1487 = vmatpush1.bf16.msra.mxu0 %v1486_v18  ;;  %v1296_v35 = vld [vmem:[%s1926_s1 + $0x90] sm:$0xff]  ;;  %v1299_v36 = vld [vmem:[%s1926_s1 + $0xa8] sm:$0xff]  ;;  %v1508_v38 = vpack.c.bf16 %v1301_v33, %v1298_v30  ;;  %v1314_v42 = vld [vmem:[%s1926_s1 + $0xe0] sm:$0xff] }
   0xa   :  { %1495 = vmatpush3.bf16.msra.mxu1 %v1492_v17  ;;  %1505 = vmatprep.subr.bf16.mxu0 %v1504_v25  ;;  %v1674_v37 = vld [vmem:[%s1927_s0 + $0x10] sm:$0xff]  ;;  %v1315_v40 = vld [vmem:[%s1926_s1 + $0xe8] sm:$0xff]  ;;  %v1694_v43 = vld [vmem:[%s1927_s0 + $0x18] sm:$0xff]  ;;  %v1502_v44 = vpack.c.bf16 %v1299_v36, %v1296_v35 }
   0xb   :  { %1497 = vmatprep.subr.bf16.mxu1 %v1496_v24  ;;  %v1312_v39 = vld [vmem:[%s1926_s1 + $0xd0] sm:$0xff]  ;;  %v1311_v41 = vld [vmem:[%s1926_s1 + $0xc8] sm:$0xff]  ;;  %v1318_v47 = vld [vmem:[%s1926_s1 + $0x100] sm:$0xff] }
   0xc   :  { %1282 = vmatmul.mubr.msk.f32.vlgmr.msra.gmra.mrb[0].mxu0 %vm30_vm0, %v1624_v19  ;;  %v1520_v45 = vpack.c.bf16 %v1315_v40, %v1312_v39  ;;  %v1512_v46 = vpack.c.bf16 %v1314_v42, %v1311_v41  ;;  %v1321_v48 = vld [vmem:[%s1926_s1 + $0x118] sm:$0xff]  ;;  %v1331_v50 = vld [vmem:[%s1926_s1 + $0x128] sm:$0xff]  ;;  %v1334_v51 = vld [vmem:[%s1926_s1 + $0x140] sm:$0xff] }
   0xd   :  { %1419 = vmatmul.mubr.msk.f32.vlgmr.msra.gmra.mrb[0].mxu1 %vm30_vm0, %v1658_v31  ;;  %1507 = vmatpush3.bf16.msra.mxu0 %v1504_v25  ;;  %v1524_v49 = vpack.c.bf16 %v1321_v48, %v1318_v47  ;;  %v1310_v52 = vld [vmem:[%s1926_s1 + $0xc0] sm:$0xff]  ;;  %v1313_v53 = vld [vmem:[%s1926_s1 + $0xd8] sm:$0xff]  ;;  %v1528_v54 = vpack.c.bf16 %v1334_v51, %v1331_v50  ;;  %v1320_v56 = vld [vmem:[%s1926_s1 + $0x110] sm:$0xff] }
   0xe   :  { %1499 = vmatpush1.bf16.msra.mxu1 %v1498_v32  ;;  %113 = vmatprep.mubr.f32.mxu0 %v1562_v3  ;;  %v1317_v55 = vld [vmem:[%s1926_s1 + $0xf8] sm:$0xff]  ;;  %v1514_v57 = vpack.c.bf16 %v1313_v53, %v1310_v52  ;;  %v1316_v58 = vld [vmem:[%s1926_s1 + $0xf0] sm:$0xff]  ;;  %v1319_v59 = vld [vmem:[%s1926_s1 + $0x108] sm:$0xff] }
   0xf   :  { %1421 = vmatprep.mubr.msk.f32.mxu1 %vm30_vm0, %v1674_v37  ;;  %1501 = vmatprep.subr.bf16.mxu1 %v1500_v34  ;;  %v1516_v60 = vpack.c.bf16 %v1320_v56, %v1317_v55  ;;  %v1332_v61 = vld [vmem:[%s1926_s1 + $0x130] sm:$0xff]  ;;  %v1335_v62 = vld [vmem:[%s1926_s1 + $0x148] sm:$0xff]  ;;  %v1518_v63 = vpack.c.bf16 %v1319_v59, %v1316_v58  ;;  %v1330_v1 = vld [vmem:[%s1926_s1 + $0x120] sm:$0xff] }
  0x10   :  { %1283 = vmatmul.mubr.msk.f32.gmra.mrb[2].mxu0 %vm30_vm0, %v1658_v31  ;;  %1509 = vmatprep.subr.bf16.mxu0 %v1508_v38  ;;  %v1536_v0 = vpack.c.bf16 %v1335_v62, %v1332_v61  ;;  %v1333_v2 = vld [vmem:[%s1926_s1 + $0x138] sm:$0xff]  ;;  %v1340_v5 = vld [vmem:[%s1926_s1 + $0x170] sm:$0xff]  ;;  %v1338_v6 = vld [vmem:[%s1926_s1 + $0x160] sm:$0xff] }
  0x11   :  { %1422 = vmatmul.mubr.msk.f32.gmra.mrb[2].mxu1 %vm30_vm0, %v1694_v43  ;;  %119 = vmatprep.mubr.f32.mxu0 %v1562_v3  ;;  %v1337_v4 = vld [vmem:[%s1926_s1 + $0x158] sm:$0xff]  ;;  %v1530_v8 = vpack.c.bf16 %v1333_v2, %v1330_v1  ;;  %v1336_v10 = vld [vmem:[%s1926_s1 + $0x150] sm:$0xff]  ;;  %v1339_v11 = vld [vmem:[%s1926_s1 + $0x168] sm:$0xff] }
  0x12   :  { %1503 = vmatpush1.bf16.msra.mxu1 %v1502_v44  ;;  %294 = vmatprep.mubr.f32.mxu1 %v1562_v3  ;;  %v1341_v7 = vld [vmem:[%s1926_s1 + $0x178] sm:$0xff]  ;;  %v1532_v9 = vpack.c.bf16 %v1340_v5, %v1337_v4  ;;  %v1352_v13 = vld [vmem:[%s1926_s1 + $0x190] sm:$0xff]  ;;  %v1355_v14 = vld [vmem:[%s1926_s1 + $0x1a8] sm:$0xff]  ;;  %v1534_v17 = vpack.c.bf16 %v1339_v11, %v1336_v10 }
  0x13   :  { %1511 = vmatpush3.bf16.msra.mxu0 %v1508_v38  ;;  %1521 = vmatprep.subr.bf16.mxu1 %v1520_v45  ;;  %v1540_v12 = vpack.c.bf16 %v1341_v7, %v1338_v6  ;;  %v1351_v15 = vld [vmem:[%s1926_s1 + $0x188] sm:$0xff]  ;;  %v1354_v16 = vld [vmem:[%s1926_s1 + $0x1a0] sm:$0xff]  ;;  %v1552_v18 = vpack.c.bf16 %v1355_v14, %v1352_v13  ;;  %v1361_v22 = vld [vmem:[%s1926_s1 + $0x1d8] sm:$0xff] }
  0x14   :  { %1284 = vmatmul.mubr.msk.f32.gmra.mrb[4].mxu0 %vm30_vm0, %v1674_v37  ;;  %1513 = vmatprep.subr.bf16.mxu0 %v1512_v46  ;;  %v1544_v20 = vpack.c.bf16 %v1354_v16, %v1351_v15  ;;  %v1358_v21 = vld [vmem:[%s1926_s1 + $0x1c0] sm:$0xff]  ;;  %v1353_v25 = vld [vmem:[%s1926_s1 + $0x198] sm:$0xff]  ;;  %v1360_v27 = vld [vmem:[%s1926_s1 + $0x1d0] sm:$0xff] }
  0x15   :  { %1302 = vmatmul.mubr.msk.f32.vlgmr.msra.gmra.mrb[4].mxu1 %vm30_vm0, %v1624_v19  ;;  %125 = vmatprep.mubr.f32.mxu0 %v1562_v3  ;;  %v1556_v23 = vpack.c.bf16 %v1361_v22, %v1358_v21  ;;  %v1350_v24 = vld [vmem:[%s1926_s1 + $0x180] sm:$0xff]  ;;  %v1357_v26 = vld [vmem:[%s1926_s1 + $0x1b8] sm:$0xff]  ;;  %v1356_v29 = vld [vmem:[%s1926_s1 + $0x1b0] sm:$0xff] }
  0x16   :  { %300 = vmatprep.mubr.f32.mxu1 %v1562_v3  ;;  %1523 = vmatpush3.bf16.msra.mxu1 %v1520_v45  ;;  %v1546_v28 = vpack.c.bf16 %v1353_v25, %v1350_v24  ;;  %v1359_v30 = vld [vmem:[%s1926_s1 + $0x1c8] sm:$0xff]  ;;  %v1548_v32 = vpack.c.bf16 %v1360_v27, %v1357_v26 }
  0x17   :  { %1525 = vmatprep.subr.bf16.mxu1 %v1524_v49  ;;  %v1550_v33 = vpack.c.bf16 %v1359_v30, %v1356_v29 }
  0x18   :  { %1285 = vmatmul.mubr.msk.f32.gmra.mrb[6].mxu0 %vm30_vm0, %v1694_v43 }
  0x19   :  { %1303 = vmatmul.mubr.msk.f32.gmra.mrb[6].mxu1 %vm30_vm0, %v1658_v31  ;;  %1432 = vmatprep.mubr.msk.f32.mxu0 %vm30_vm0, %v1624_v19 }
  0x1a   :  { %306 = vmatprep.mubr.f32.mxu1 %v1562_v3  ;;  %1527 = vmatpush3.bf16.msra.mxu1 %v1524_v49 }
  0x1b   :  { %1529 = vmatprep.subr.bf16.mxu1 %v1528_v54 }
  0x1c   :  { %1433 = vmatmul.mubr.msk.f32.vlgmr.msra.gmra.mrb[8].mxu0 %vm30_vm0, %v1658_v31 }
  0x1d   :  { %1304 = vmatmul.mubr.msk.f32.gmra.mrb[8].mxu1 %vm30_vm0, %v1674_v37  ;;  %1515 = vmatpush1.bf16.msra.mxu0 %v1514_v57 }
  0x1e   :  { %312 = vmatprep.mubr.f32.mxu1 %v1562_v3  ;;  %1435 = vmatprep.mubr.msk.f32.mxu0 %vm30_vm0, %v1674_v37 }
  0x1f   :  { %1517 = vmatprep.subr.bf16.mxu0 %v1516_v60 }
  0x20   :  { %1436 = vmatmul.mubr.msk.f32.gmra.mrb[10].mxu0 %vm30_vm0, %v1694_v43 }
  0x21   :  { %1305 = vmatmul.mubr.msk.f32.gmra.mrb[10].mxu1 %vm30_vm0, %v1694_v43  ;;  %1519 = vmatpush1.bf16.msra.mxu0 %v1518_v63 }
  0x22   :  { %536 = vmatprep.mubr.f32.mxu0 %v1562_v3  ;;  %1446 = vmatprep.mubr.msk.f32.mxu1 %vm30_vm0, %v1624_v19 }
  0x23   :  { %1537 = vmatprep.subr.bf16.mxu0 %v1536_v0 }
  0x24   :  { %1322 = vmatmul.mubr.msk.f32.vlgmr.msra.gmra.mrb[12].mxu0 %vm30_vm0, %v1624_v19 }
  0x25   :  { %1447 = vmatmul.mubr.msk.f32.vlgmr.msra.gmra.mrb[12].mxu1 %vm30_vm0, %v1658_v31  ;;  %1539 = vmatpush3.bf16.msra.mxu0 %v1536_v0 }
  0x26   :  { %1531 = vmatpush1.bf16.msra.mxu1 %v1530_v8  ;;  %542 = vmatprep.mubr.f32.mxu0 %v1562_v3 }
  0x27   :  { %1449 = vmatprep.mubr.msk.f32.mxu1 %vm30_vm0, %v1674_v37  ;;  %1533 = vmatprep.subr.bf16.mxu1 %v1532_v9 }
  0x28   :  { %1323 = vmatmul.mubr.msk.f32.gmra.mrb[14].mxu0 %vm30_vm0, %v1658_v31  ;;  %1541 = vmatprep.subr.bf16.mxu0 %v1540_v12 }
  0x29   :  { %1450 = vmatmul.mubr.msk.f32.gmra.mrb[14].mxu1 %vm30_vm0, %v1694_v43  ;;  %548 = vmatprep.mubr.f32.mxu0 %v1562_v3 }
  0x2a   :  { %1535 = vmatpush1.bf16.msra.mxu1 %v1534_v17  ;;  %778 = vmatprep.mubr.f32.mxu1 %v1562_v3 }
  0x2b   :  { %1543 = vmatpush3.bf16.msra.mxu0 %v1540_v12  ;;  %1553 = vmatprep.subr.bf16.mxu1 %v1552_v18 }
  0x2c   :  { %1324 = vmatmul.mubr.msk.f32.gmra.mrb[16].mxu0 %vm30_vm0, %v1674_v37  ;;  %1545 = vmatprep.subr.bf16.mxu0 %v1544_v20 }
  0x2d   :  { %1342 = vmatmul.mubr.msk.f32.vlgmr.msra.gmra.mrb[16].mxu1 %vm30_vm0, %v1624_v19  ;;  %554 = vmatprep.mubr.f32.mxu0 %v1562_v3 }
  0x2e   :  { %784 = vmatprep.mubr.f32.mxu1 %v1562_v3  ;;  %1555 = vmatpush3.bf16.msra.mxu1 %v1552_v18 }
  0x2f   :  { %1557 = vmatprep.subr.bf16.mxu1 %v1556_v23 }
  0x30   :  { %1325 = vmatmul.mubr.msk.f32.gmra.mrb[18].mxu0 %vm30_vm0, %v1694_v43 }
  0x31   :  { %1343 = vmatmul.mubr.msk.f32.gmra.mrb[18].mxu1 %vm30_vm0, %v1658_v31  ;;  %1460 = vmatprep.mubr.msk.f32.mxu0 %vm30_vm0, %v1624_v19 }
  0x32   :  { %790 = vmatprep.mubr.f32.mxu1 %v1562_v3  ;;  %1559 = vmatpush3.bf16.msra.mxu1 %v1556_v23 }
  0x34   :  { %1461 = vmatmul.mubr.msk.f32.vlgmr.msra.gmra.mrb[20].mxu0 %vm30_vm0, %v1658_v31 }
  0x35   :  { %1344 = vmatmul.mubr.msk.f32.gmra.mrb[20].mxu1 %vm30_vm0, %v1674_v37  ;;  %1547 = vmatpush1.bf16.msra.mxu0 %v1546_v28 }
  0x36   :  { %796 = vmatprep.mubr.f32.mxu1 %v1562_v3  ;;  %1463 = vmatprep.mubr.msk.f32.mxu0 %vm30_vm0, %v1674_v37 }
  0x37   :  { %1549 = vmatprep.subr.bf16.mxu0 %v1548_v32 }
  0x38   :  { %1464 = vmatmul.mubr.msk.f32.gmra.mrb[22].mxu0 %vm30_vm0, %v1694_v43 }
  0x39   :  { %1345 = vmatmul.mubr.msk.f32.gmra.mrb[22].mxu1 %vm30_vm0, %v1694_v43  ;;  %1551 = vmatpush1.bf16.msra.mxu0 %v1550_v33 }
  0x3a   :  { %1020 = vmatprep.mubr.f32.mxu0 %v1562_v3  ;;  %1474 = vmatprep.mubr.msk.f32.mxu1 %vm30_vm0, %v1624_v19 }
  0x3c   :  { %1362 = vmatmul.mubr.msk.f32.vlgmr.msra.gmra.mrb[24].mxu0 %vm30_vm0, %v1624_v19 }
  0x3d   :  { %1475 = vmatmul.mubr.msk.f32.vlgmr.msra.gmra.mrb[24].mxu1 %vm30_vm0, %v1658_v31  ;;  %1026 = vmatprep.mubr.f32.mxu0 %v1562_v3 }
  0x3e   :  { %1477 = vmatprep.mubr.msk.f32.mxu1 %vm30_vm0, %v1674_v37 }
  0x40   :  { %1363 = vmatmul.mubr.msk.f32.gmra.mrb[26].mxu0 %vm30_vm0, %v1658_v31 }
  0x41   :  { %1478 = vmatmul.mubr.msk.f32.gmra.mrb[26].mxu1 %vm30_vm0, %v1694_v43  ;;  %1032 = vmatprep.mubr.f32.mxu0 %v1562_v3 }
  0x44   :  { %1364 = vmatmul.mubr.msk.f32.gmra.mrb[28].mxu0 %vm30_vm0, %v1674_v37 }
  0x45   :  { %1038 = vmatprep.mubr.f32.mxu0 %v1562_v3 }
  0x48   :  { %1365 = vmatmul.mubr.msk.f32.gmra.mrb[30].mxu0 %vm30_vm0, %v1694_v43 }
  0xdf   :  { %v109_v19 = vpop.f32.mrb[0].mxu0 }
  0xe0   :  { %v111_v34 = vpop.f32.mrb[1].mxu0  ;;  %v1420_v35 = vpop.f32.mrb[0].mxu1 }
  0xe1   :  { %v198_v36 = vpop.f32.mrb[1].mxu1 }
  0xe3   :  { %v115_v38 = vpop.f32.mrb[2].mxu0 }
  0xe4   :  { %v117_v39 = vpop.f32.mrb[3].mxu0  ;;  %v1423_v31 = vpop.f32.mrb[2].mxu1 }
  0xe5   :  { %v208_v40 = vpop.f32.mrb[3].mxu1 }
  0xe7   :  { %v121_v41 = vpop.f32.mrb[4].mxu0 }
  0xe8   :  { %v123_v42 = vpop.f32.mrb[5].mxu0  ;;  %v296_v44 = vpop.f32.mrb[4].mxu1 }
  0xe9   :  { %v298_v45 = vpop.f32.mrb[5].mxu1  ;;  %v411_v46 = vrot.slane %v296_v44, 1 }
  0xea   :  { %v414_v37 = vrot.slane %v298_v45, 1 }
  0xeb   :  { %v127_v47 = vpop.f32.mrb[6].mxu0 }
  0xec   :  { %v302_v48 = vpop.f32.mrb[6].mxu1  ;;  %v129_v3 = vpop.f32.mrb[7].mxu0 }
  0xed   :  { %v412_v49 = vrot.slane %v302_v48, 1  ;;  %v304_v43 = vpop.f32.mrb[7].mxu1 }
  0xee   :  { %v415_v50 = vrot.slane %v304_v43, 1 }
  0xef   :  { %v413_v51 = vsel %vm410_vm1, %v411_v46, %v412_v49  ;;  %v429_v52 = vadd.f32 %v412_v49, %v115_v38  ;;  %v1434_v53 = vpop.f32.mrb[8].mxu0 }
  0xf0   :  { %v426_v54 = vadd.f32 %v413_v51, %v109_v19  ;;  %v416_v55 = vsel %vm410_vm1, %v414_v37, %v415_v50  ;;  %v430_v56 = vadd.f32 %v415_v50, %v117_v39  ;;  %v418_v57 = vrot.slane %v1434_v53, 1  ;;  %v385_v58 = vpop.f32.mrb[9].mxu0  ;;  %v308_v59 = vpop.f32.mrb[8].mxu1 }
  0xf1   :  { %v427_v60 = vadd.f32 %v416_v55, %v111_v34  ;;  %v417_v61 = vrot.slane %v385_v58, 1  ;;  %v310_v62 = vpop.f32.mrb[9].mxu1  ;;  %v438_v1 = vrot.slane %v308_v59, 1 }
  0xf2   :  { %v431_v63 = vadd.f32 %v1420_v35, %v418_v57  ;;  %v441_v5 = vrot.slane %v310_v62, 1 }
  0xf3   :  { %v419_v0 = vsel %vm410_vm1, %v417_v61, %v418_v57  ;;  %v1437_v2 = vpop.f32.mrb[10].mxu0 }
  0xf4   :  { %v428_v4 = vadd.f32 %v419_v0, %v198_v36  ;;  %v314_v6 = vpop.f32.mrb[10].mxu1  ;;  %v445_v7 = vrot.slane %v1437_v2, 1  ;;  %v395_v8 = vpop.f32.mrb[11].mxu0 }
  0xf5   :  { %v439_v9 = vrot.slane %v314_v6, 1  ;;  %v316_v10 = vpop.f32.mrb[11].mxu1  ;;  %v444_v11 = vrot.slane %v395_v8, 1 }
  0xf6   :  { %v458_v12 = vadd.f32 %v1423_v31, %v445_v7  ;;  %v442_v13 = vrot.slane %v316_v10, 1 }
  0xf7   :  { %v440_v14 = vsel %vm410_vm1, %v438_v1, %v439_v9  ;;  %v456_v15 = vadd.f32 %v439_v9, %v127_v47  ;;  %v446_v16 = vsel %vm410_vm1, %v444_v11, %v445_v7  ;;  %v538_v17 = vpop.f32.mrb[12].mxu0 }
  0xf8   :  { %v453_v18 = vadd.f32 %v440_v14, %v121_v41  ;;  %v443_v20 = vsel %vm410_vm1, %v441_v5, %v442_v13  ;;  %v457_v21 = vadd.f32 %v442_v13, %v129_v3  ;;  %v455_v22 = vadd.f32 %v446_v16, %v208_v40  ;;  %v1448_v23 = vpop.f32.mrb[12].mxu1  ;;  %v540_v24 = vpop.f32.mrb[13].mxu0 }
  0xf9   :  { %v454_v25 = vadd.f32 %v443_v20, %v123_v42  ;;  %v660_v26 = vrot.slane %v1448_v23, 2  ;;  %v627_v27 = vpop.f32.mrb[13].mxu1  ;;  %v653_v32 = vrot.slane %v538_v17, 2  ;;  %v656_v36 = vrot.slane %v540_v24, 2 }
  0xfa   :  { %v659_v28 = vrot.slane %v627_v27, 2 }
  0xfb   :  { %v673_v29 = vadd.f32 %v660_v26, %v431_v63  ;;  %v544_v30 = vpop.f32.mrb[14].mxu0 }
  0xfc   :  { %v661_v33 = vsel %vm652_vm2, %v659_v28, %v660_v26  ;;  %v654_v19 = vrot.slane %v544_v30, 2  ;;  %v1451_v34 = vpop.f32.mrb[14].mxu1  ;;  %v546_v35 = vpop.f32.mrb[15].mxu0 }
  0xfd   :  { %v670_v38 = vadd.f32 %v661_v33, %v428_v4  ;;  %v687_v39 = vrot.slane %v1451_v34, 2  ;;  %v657_v31 = vrot.slane %v546_v35, 2  ;;  %v637_v40 = vpop.f32.mrb[15].mxu1 }
  0xfe   :  { %v655_v41 = vsel %vm652_vm2, %v653_v32, %v654_v19  ;;  %v671_v42 = vadd.f32 %v654_v19, %v429_v52  ;;  %v686_v44 = vrot.slane %v637_v40, 2 }
  0xff   :  { %v668_v45 = vadd.f32 %v655_v41, %v426_v54  ;;  %v700_v46 = vadd.f32 %v687_v39, %v458_v12  ;;  %v658_v47 = vsel %vm652_vm2, %v656_v36, %v657_v31  ;;  %v672_v37 = vadd.f32 %v657_v31, %v430_v56  ;;  %v550_v48 = vpop.f32.mrb[16].mxu0 }
 0x100   :  { %v669_v3 = vadd.f32 %v658_v47, %v427_v60  ;;  %v688_v49 = vsel %vm652_vm2, %v686_v44, %v687_v39  ;;  %v552_v43 = vpop.f32.mrb[17].mxu0  ;;  %v780_v50 = vpop.f32.mrb[16].mxu1  ;;  %v680_v58 = vrot.slane %v550_v48, 2 }
 0x101   :  { %v697_v51 = vadd.f32 %v688_v49, %v455_v22  ;;  %v782_v53 = vpop.f32.mrb[17].mxu1  ;;  %v895_v55 = vrot.slane %v780_v50, 3  ;;  %v683_v62 = vrot.slane %v552_v43, 2 }
 0x102   :  { %v898_v59 = vrot.slane %v782_v53, 3 }
 0x103   :  { %v556_v57 = vpop.f32.mrb[18].mxu0 }
 0x104   :  { %v681_v61 = vrot.slane %v556_v57, 2  ;;  %v786_v52 = vpop.f32.mrb[18].mxu1  ;;  %v558_v54 = vpop.f32.mrb[19].mxu0 }
 0x105   :  { %v896_v63 = vrot.slane %v786_v52, 3  ;;  %v684_v0 = vrot.slane %v558_v54, 2  ;;  %v788_v56 = vpop.f32.mrb[19].mxu1 }
 0x106   :  { %v682_v60 = vsel %vm652_vm2, %v680_v58, %v681_v61  ;;  %v698_v1 = vadd.f32 %v681_v61, %v456_v15  ;;  %v899_v2 = vrot.slane %v788_v56, 3 }
 0x107   :  { %v695_v4 = vadd.f32 %v682_v60, %v453_v18  ;;  %v897_v5 = vsel %vm894_vm3, %v895_v55, %v896_v63  ;;  %v913_v6 = vadd.f32 %v896_v63, %v671_v42  ;;  %v685_v7 = vsel %vm652_vm2, %v683_v62, %v684_v0  ;;  %v1462_v8 = vpop.f32.mrb[20].mxu0 }
 0x108   :  { %v910_v9 = vadd.f32 %v897_v5, %v668_v45  ;;  %v696_v10 = vadd.f32 %v685_v7, %v454_v25  ;;  %v699_v11 = vadd.f32 %v684_v0, %v457_v21  ;;  %v900_v12 = vsel %vm894_vm3, %v898_v59, %v899_v2  ;;  %v869_v13 = vpop.f32.mrb[21].mxu0  ;;  %v792_v14 = vpop.f32.mrb[20].mxu1 }
 0x109   :  { %v911_v16 = vadd.f32 %v900_v12, %v669_v3  ;;  %v914_v17 = vadd.f32 %v899_v2, %v672_v37  ;;  %v902_v20 = vrot.slane %v1462_v8, 3  ;;  %v901_v22 = vrot.slane %v869_v13, 3  ;;  %v794_v15 = vpop.f32.mrb[21].mxu1 }
 0x10a   :  { %v922_v24 = vrot.slane %v792_v14, 3  ;;  %v925_v28 = vrot.slane %v794_v15, 3 }
 0x10b   :  { %v915_v23 = vadd.f32 %v902_v20, %v673_v29  ;;  %v903_v18 = vsel %vm894_vm3, %v901_v22, %v902_v20  ;;  %v1465_v26 = vpop.f32.mrb[22].mxu0 }
 0x10c   :  { %v912_v27 = vadd.f32 %v903_v18, %v670_v38  ;;  %v798_v30 = vpop.f32.mrb[22].mxu1  ;;  %v929_v32 = vrot.slane %v1465_v26, 3  ;;  %v879_v25 = vpop.f32.mrb[23].mxu0 }
 0x10d   :  { %v923_v21 = vrot.slane %v798_v30, 3  ;;  %v800_v33 = vpop.f32.mrb[23].mxu1  ;;  %v928_v19 = vrot.slane %v879_v25, 3 }
 0x10e   :  { %v942_v34 = vadd.f32 %v929_v32, %v700_v46  ;;  %v926_v35 = vrot.slane %v800_v33, 3 }
 0x10f   :  { %v924_v36 = vsel %vm894_vm3, %v922_v24, %v923_v21  ;;  %v940_v39 = vadd.f32 %v923_v21, %v698_v1  ;;  %v930_v31 = vsel %vm894_vm3, %v928_v19, %v929_v32  ;;  %v1022_v29 = vpop.f32.mrb[24].mxu0 }
 0x110   :  { %v937_v40 = vadd.f32 %v924_v36, %v695_v4  ;;  %v927_v41 = vsel %vm894_vm3, %v925_v28, %v926_v35  ;;  %v1902_v42 = vadd.f32 %v926_v35, %v699_v11  ;;  %v939_v38 = vadd.f32 %v930_v31, %v697_v51  ;;  %v1476_v44 = vpop.f32.mrb[24].mxu1  ;;  %v1024_v45 = vpop.f32.mrb[25].mxu0 }
 0x111   :  { %v938_v47 = vadd.f32 %v927_v41, %v696_v10  ;;  %v1144_v37 = vrot.slane %v1476_v44, 4  ;;  %v1111_v48 = vpop.f32.mrb[25].mxu1  ;;  %v1137_v43 = vrot.slane %v1022_v29, 4  ;;  %v1140_v50 = vrot.slane %v1024_v45, 4 }
 0x112   :  { %v1143_v46 = vrot.slane %v1111_v48, 4 }
 0x113   :  { %v1157_v3 = vadd.f32 %v1144_v37, %v915_v23  ;;  %v1028_v49 = vpop.f32.mrb[26].mxu0 }
 0x114   :  { %v1145_v53 = vsel %vm1136_vm4, %v1143_v46, %v1144_v37  ;;  %v1138_v55 = vrot.slane %v1028_v49, 4  ;;  %v1479_v57 = vpop.f32.mrb[26].mxu1  ;;  %v1030_v58 = vpop.f32.mrb[27].mxu0 }
 0x115   :  { %v1201_v59 = vsel %vm1136_vm4, %v1157_v3, -inf  ;;  %v1154_v61 = vadd.f32 %v1145_v53, %v912_v27  ;;  %v1171_v51 = vrot.slane %v1479_v57, 4  ;;  %v1141_v52 = vrot.slane %v1030_v58, 4  ;;  %v1121_v54 = vpop.f32.mrb[27].mxu1 }
 0x116   :  { %v1139_v62 = vsel %vm1136_vm4, %v1137_v43, %v1138_v55  ;;  %v1155_v63 = vadd.f32 %v1138_v55, %v913_v6  ;;  %v1170_v0 = vrot.slane %v1121_v54, 4 }
 0x117   :  { %v1202_v56 = vmax.f32 %v1154_v61, %v1201_v59  ;;  %v1152_v60 = vadd.f32 %v1139_v62, %v910_v9  ;;  %v1184_v1 = vadd.f32 %v1171_v51, %v942_v34  ;;  %v1142_v2 = vsel %vm1136_vm4, %v1140_v50, %v1141_v52  ;;  %v1034_v4 = vpop.f32.mrb[28].mxu0 }
 0x118   :  { %v1185_v5 = vsel %vm1136_vm4, %v1155_v63, -inf  ;;  %v1153_v7 = vadd.f32 %v1142_v2, %v911_v16  ;;  %v1156_v8 = vadd.f32 %v1141_v52, %v914_v17  ;;  %v1172_v10 = vsel %vm1136_vm4, %v1170_v0, %v1171_v51  ;;  %v1036_v11 = vpop.f32.mrb[29].mxu0 }
 0x119   :  { %v1203_v12 = vrot.slane %v1202_v56, 4  ;;  %v1186_v13 = vmax.f32 %v1152_v60, %v1185_v5  ;;  %v1225_v14 = vsel %vm1136_vm4, %v1184_v1, -inf  ;;  %v1181_v20 = vadd.f32 %v1172_v10, %v939_v38 }
 0x11a   :  { %v1193_v6 = vsel %vm1136_vm4, %v1156_v8, -inf  ;;  %v1164_v24 = vrot.slane %v1034_v4, 4  ;;  %v1167_v30 = vrot.slane %v1036_v11, 4  ;;  %v1563_v60 = vmov 1983009808  }
 0x11b   :  { %v1204_v22 = vmax.f32 %v1202_v56, %v1203_v12  ;;  %v1187_v9 = vrot.slane %v1186_v13, 4  ;;  %v1194_v15 = vmax.f32 %v1153_v7, %v1193_v6  ;;  %v1226_v23 = vmax.f32 %v1181_v20, %v1225_v14  ;;  %v1040_v18 = vpop.f32.mrb[30].mxu0  ;;  %v1237_v7 = vld [vmem:[%s1928_s2] sm:$0x7] }
 0x11c   :  { %v1165_v26 = vrot.slane %v1040_v18, 4  ;;  %v1042_v27 = vpop.f32.mrb[31].mxu0  ;;  %v1262_v1 = vunpack.c.l.s4 %v1563_v60 }
 0x11d   :  { %v1205_v16 = vrot.slane %v1204_v22, 2  ;;  %v1195_v17 = vrot.slane %v1194_v15, 4  ;;  %v1227_v28 = vrot.slane %v1226_v23, 4  ;;  %v1188_v32 = vmax.f32 %v1186_v13, %v1187_v9 }
 0x11e   :  { %v1166_v25 = vsel %vm1136_vm4, %v1164_v24, %v1165_v26  ;;  %v1182_v21 = vadd.f32 %v1165_v26, %v940_v39  ;;  %v1168_v33 = vrot.slane %v1042_v27, 4  ;;  %v1239_v39 = vlaneseq }
 0x11f   :  { %v1206_v19 = vmax.f32 %v1204_v22, %v1205_v16  ;;  %v1196_v34 = vmax.f32 %v1194_v15, %v1195_v17  ;;  %v1228_v35 = vmax.f32 %v1226_v23, %v1227_v28  ;;  %v1179_v36 = vadd.f32 %v1166_v25, %v937_v40 }
 0x120   :  { %v1209_v31 = vsel %vm1136_vm4, %v1182_v21, -inf  ;;  %v1169_v29 = vsel %vm1136_vm4, %v1167_v30, %v1168_v33  ;;  %v1183_v41 = vadd.f32 %v1168_v33, %v1902_v42  ;;  %v1189_v44 = vrot.slane %v1188_v32, 2 }
 0x121   :  { %v1229_v38 = vrot.slane %v1228_v35, 2  ;;  %v1210_v45 = vmax.f32 %v1179_v36, %v1209_v31  ;;  %v1180_v37 = vadd.f32 %v1169_v29, %v938_v47  ;;  %v1207_v46 = vrot.slane %v1206_v19, 1 }
 0x122   :  { %v1217_v48 = vsel %vm1136_vm4, %v1183_v41, -inf  ;;  %v1197_v49 = vrot.slane %v1196_v34, 2  ;;  %v1190_v40 = vmax.f32 %v1188_v32, %v1189_v44  ;;  %v1240_v42 = vshrl.u32 %v1239_v39, 7 }
 0x123   :  { %v1230_v3 = vmax.f32 %v1228_v35, %v1229_v38  ;;  %v1211_v43 = vrot.slane %v1210_v45, 4  ;;  %v1218_v50 = vmax.f32 %v1180_v37, %v1217_v48  ;;  %v1208_v58 = vmax.f32 %v1206_v19, %v1207_v46 }
 0x124   :  { %v1198_v61 = vmax.f32 %v1196_v34, %v1197_v49  ;;  %v1241_v54 = vsub.s32 0, %v1240_v42  ;;  %v1191_v62 = vrot.slane %v1190_v40, 1  ;;  %v1249_v56 = vsub.s32 2, %v1240_v42 }
 0x125   :  { %v1231_v53 = vrot.slane %v1230_v3, 1  ;;  %v1212_v55 = vmax.f32 %v1210_v45, %v1211_v43  ;;  %v1219_v57 = vrot.slane %v1218_v50, 4  ;;  %v1245_v2 = vsub.s32 1, %v1240_v42 }
 0x126   :  { %v1199_v4 = vrot.slane %v1198_v61, 1  ;;  %v1242_v10 = vrot.slane %v1237_v7, %v1241_v54  ;;  %v1192_v11 = vmax.f32 %v1190_v40, %v1191_v62  ;;  %v1250_v14 = vrot.slane %v1237_v7, %v1249_v56 }
 0x127   :  { %v1232_v59 = vmax.f32 %v1230_v3, %v1231_v53  ;;  %v1213_v51 = vrot.slane %v1212_v55, 2  ;;  %v1220_v52 = vmax.f32 %v1218_v50, %v1219_v57  ;;  %v1263_v20 = vunpack.c.0.s8 %v1262_v1 }
 0x128   :  { %v1246_v6 = vrot.slane %v1237_v7, %v1245_v2  ;;  %v1200_v22 = vmax.f32 %v1198_v61, %v1199_v4 }
 0x129   :  { %v1236_v47 = vsel %vm1233_vm5, %v1208_v58, %v1232_v59  ;;  %v1214_v63 = vmax.f32 %v1212_v55, %v1213_v51  ;;  %v1221_v0 = vrot.slane %v1220_v52, 2  ;;  %v1266_v26 = vsub.s32 %v1263_v20, %v1240_v42 }
 0x12a   :  { %v1256_v24 = vadd.f32 %v1250_v14, %v1236_v47 }
 0x12b   :  { %v1215_v5 = vrot.slane %v1214_v63, 1  ;;  %v1222_v8 = vmax.f32 %v1220_v52, %v1221_v0 }
 0x12c   :  { %v1274_v17 = vrot.slane %v1256_v24, %v1266_v26 }
 0x12d   :  { %v1216_v12 = vmax.f32 %v1214_v63, %v1215_v5  ;;  %v1223_v13 = vrot.slane %v1222_v8, 1 }
 0x12f   :  { %v1234_v9 = vsel %vm1233_vm5, %v1192_v11, %v1216_v12  ;;  %v1224_v15 = vmax.f32 %v1222_v8, %v1223_v13 }
 0x130   :  { %v1254_v23 = vadd.f32 %v1242_v10, %v1234_v9 }
 0x131   :  { %v1235_v18 = vsel %vm1233_vm5, %v1200_v22, %v1224_v15 }
 0x132   :  { %v1255_v27 = vadd.f32 %v1246_v6, %v1235_v18 }
 0x134   :  { %v1260_v16 = vcombine.low %v1254_v23, %v1255_v27 }
 0x136   :  { %v1267_v28 = vrot.slane %v1260_v16, %v1266_v26 }
 0x138   :  { %v1275_v30 = vcombine.low %v1267_v28, %v1274_v17 }
 0x13a   :  { %1277 = vst [vmem:[%s1929_s3] sm:$0x3f] %v1275_v30 }

// kernel: model_forward.20
= control target key start
LH: loop header
LB: loop body
LE: loop exit
PB: predicated region body
PF: predicated region fallthrough
CT: control target
= control target key end

     0   :  { %vm34_vm0 = vcmask 261120   ;;  %v192_v15 = vmov 0   ;;  %vm66_vm5 = vcmask 7168   ;;  %vm165_vm6 = vcmask 1041409   ;;  %s283_s0 = inlined_call_operand.vmem [shape: f32[2,16,32], index: 0, kind: input, shape index: {}]   ;;  %s284_s2 = inlined_call_operand.vmem [shape: f32[1,1,32], index: 2, kind: input, shape index: {}]   ;;  %s285_s3 = inlined_call_operand.<no memory space> [shape: f32[1,1], index: 3, kind: input, shape index: {}]   ;;  %s286_s1 = inlined_call_operand.vmem [shape: f32[2,16,1], index: 1, kind: input, shape index: {}]   ;;  %s287_s4 = inlined_call_operand.vmem [shape: f32[2,32], index: 4, kind: output, shape index: {}]  }
   0x1   :  { %v221_v0 = vld [vmem:[%s283_s0 + $0x10] sm:$0xff]  ;;  %v174_v1 = vld [vmem:[%s284_s2] ss:$0 sm:$0xff]  ;;  %v9_v3 = vstv %s285_s3  ;;  %v239_v6 = vld [vmem:[%s283_s0 + $0x18] sm:$0xff]  ;;  %179 = vset.pattern.permute.xlu1 %v192_v15  ;;  %178 = vset.pattern.permute.xlu0 %v192_v15  ;;  %vm168_vm7 = vcmask 254976  }
   0x2   :  { %v229_v2 = vld [vmem:[%s283_s0] sm:$0xff]  ;;  %v32_v4 = vmul.f32 %v174_v1, %v221_v0  ;;  %v244_v7 = vld [vmem:[%s283_s0 + $0x8] sm:$0xff]  ;;  %10 = vst [vmem:[#allocation2] sm:$0x1] %v9_v3  ;;  %v33_v8 = vmul.f32 %v174_v1, %v239_v6  ;;  %v56_v16 = vld [vmem:[%s286_s1 + $0x10] sm:$0xff] }
   0x3   :  { %v30_v5 = vmul.f32 %v174_v1, %v229_v2  ;;  %v31_v9 = vmul.f32 %v174_v1, %v244_v7  ;;  %v54_v18 = vld [vmem:[%s286_s1] sm:$0xff]  ;;  %vm60_vm1 = vcmp.gt.f32.partialorder %v56_v16, 0.0  ;;  %v57_v23 = vld [vmem:[%s286_s1 + $0x18] sm:$0xff]  ;;  %v55_v24 = vld [vmem:[%s286_s1 + $0x8] sm:$0xff] }
   0x4   :  { %v41_v10 = vsel %vm34_vm0, %v32_v4, 0.0  ;;  %v44_v12 = vsel %vm34_vm0, %v33_v8, 0.0  ;;  %vm58_vm2 = vcmp.gt.f32.partialorder %v54_v18, 0.0  ;;  %vm61_vm3 = vcmp.gt.f32.partialorder %v57_v23, 0.0 }
   0x5   :  { %v35_v11 = vsel %vm34_vm0, %v30_v5, 0.0  ;;  %42 = vadd.xlane.f32.xlu1 %v41_v10  ;;  %v38_v13 = vsel %vm34_vm0, %v31_v9, 0.0  ;;  %vm59_vm4 = vcmp.gt.f32.partialorder %v55_v24, 0.0 }
   0x6   :  { %36 = vadd.xlane.f32.xlu0 %v35_v11 }
   0x9   :  { %45 = vadd.xlane.f32.xlu1 %v44_v12  ;;  %v47_v14 = vld [vmem:[#allocation2] sm:$0x1] }
   0xa   :  { %39 = vadd.xlane.f32.xlu0 %v38_v13  ;;  %175 = vpush %v47_v14 }
  0x3b   :  { %s176_s0 = spop %175 }
  0x3c   :  { %v49_v17 = vstv %s176_s0 }
  0x92   :  { %v43_v19 = vpop.xlane.xlu1 %42 }
  0x93   :  { %v37_v20 = vpop.xlane.xlu0 %36  ;;  %v52_v21 = vadd.f32 %v49_v17, %v43_v19 }
  0x94   :  { %v50_v22 = vadd.f32 %v49_v17, %v37_v20 }
  0x95   :  { %v64_v25 = vsel %vm60_vm1, %v52_v21, -1e+30 }
  0x96   :  { %v46_v26 = vpop.xlane.xlu1 %45  ;;  %v62_v28 = vsel %vm58_vm2, %v50_v22, -1e+30  ;;  %v76_v31 = vsel %vm66_vm5, %v64_v25, -inf }
  0x97   :  { %v40_v27 = vpop.xlane.xlu0 %39  ;;  %v53_v29 = vadd.f32 %v49_v17, %v46_v26  ;;  %v67_v34 = vsel %vm66_vm5, %v62_v28, -inf }
  0x98   :  { %v51_v30 = vadd.f32 %v49_v17, %v40_v27 }
  0x99   :  { %v65_v32 = vsel %vm61_vm3, %v53_v29, -1e+30 }
  0x9a   :  { %v63_v33 = vsel %vm59_vm4, %v51_v30, -1e+30  ;;  %v77_v35 = vsel %vm66_vm5, %v65_v32, -inf }
  0x9b   :  { %v68_v36 = vsel %vm66_vm5, %v63_v33, -inf  ;;  %v78_v37 = vmax.f32 %v76_v31, %v77_v35 }
  0x9c   :  { %v69_v38 = vmax.f32 %v67_v34, %v68_v36 }
  0x9d   :  { %v79_v39 = vrot.slane %v78_v37, 4 }
  0x9e   :  { %v70_v40 = vrot.slane %v69_v38, 4 }
  0x9f   :  { %v80_v41 = vmax.f32 %v78_v37, %v79_v39 }
  0xa0   :  { %v71_v42 = vmax.f32 %v69_v38, %v70_v40 }
  0xa1   :  { %v81_v43 = vrot.slane %v80_v41, 2 }
  0xa2   :  { %v72_v44 = vrot.slane %v71_v42, 2 }
  0xa3   :  { %v82_v45 = vmax.f32 %v80_v41, %v81_v43 }
  0xa4   :  { %v73_v46 = vmax.f32 %v71_v42, %v72_v44 }
  0xa5   :  { %v83_v47 = vrot.slane %v82_v45, 1 }
  0xa6   :  { %v74_v48 = vrot.slane %v73_v46, 1 }
  0xa7   :  { %v84_v49 = vmax.f32 %v82_v45, %v83_v47 }
  0xa8   :  { %v75_v50 = vmax.f32 %v73_v46, %v74_v48 }
  0xa9   :  { %v87_v51 = vsub.f32 %v64_v25, %v84_v49  ;;  %v88_v52 = vsub.f32 %v65_v32, %v84_v49 }
  0xaa   :  { %v85_v53 = vsub.f32 %v62_v28, %v75_v50  ;;  %v86_v54 = vsub.f32 %v63_v33, %v75_v50 }
  0xab   :  { %v93_v55 = vmul.f32 1.442695, %v87_v51  ;;  %v95_v56 = vmul.f32 1.442695, %v88_v52 }
  0xac   :  { %v89_v57 = vmul.f32 1.442695, %v85_v53  ;;  %v91_v58 = vmul.f32 1.442695, %v86_v54 }
  0xad   :  { %180 = vpow2.f32 %v93_v55 }
  0xae   :  { %182 = vpow2.f32 %v95_v56 }
  0xaf   :  { %184 = vpow2.f32 %v89_v57 }
  0xb0   :  { %186 = vpow2.f32 %v91_v58 }
  0xb7   :  { %v181_v59 = vpop.eup %180 }
  0xb8   :  { %v183_v60 = vpop.eup %182  ;;  %v106_v61 = vsel %vm66_vm5, %v181_v59, 0.0 }
  0xb9   :  { %v185_v62 = vpop.eup %184  ;;  %v107_v63 = vsel %vm66_vm5, %v183_v60, 0.0 }
  0xba   :  { %v187_v1 = vpop.eup %186  ;;  %v108_v3 = vadd.f32 %v107_v63, %v106_v61  ;;  %v97_v4 = vsel %vm66_vm5, %v185_v62, 0.0 }
  0xbb   :  { %v98_v5 = vsel %vm66_vm5, %v187_v1, 0.0 }
  0xbc   :  { %v109_v8 = vrot.slane %v108_v3, 4  ;;  %v99_v9 = vadd.f32 %v98_v5, %v97_v4 }
  0xbe   :  { %v110_v10 = vadd.f32 %v109_v8, %v108_v3  ;;  %v100_v11 = vrot.slane %v99_v9, 4 }
  0xc0   :  { %v101_v12 = vadd.f32 %v100_v11, %v99_v9  ;;  %v111_v13 = vrot.slane %v110_v10, 2 }
  0xc2   :  { %v102_v14 = vrot.slane %v101_v12, 2  ;;  %v112_v15 = vadd.f32 %v111_v13, %v110_v10 }
  0xc4   :  { %v103_v16 = vadd.f32 %v102_v14, %v101_v12  ;;  %v113_v17 = vrot.slane %v112_v15, 1 }
  0xc6   :  { %v104_v18 = vrot.slane %v103_v16, 1  ;;  %v114_v20 = vadd.f32 %v113_v17, %v112_v15 }
  0xc8   :  { %v105_v19 = vadd.f32 %v104_v18, %v103_v16 }
  0xca   :  { %188 = vrcp.f32 %v105_v19 }
  0xcb   :  { %190 = vrcp.f32 %v114_v20 }
  0xd4   :  { %v189_v21 = vpop.eup %188 }
  0xd5   :  { %v117_v22 = vmul.f32 %v189_v21, %v187_v1  ;;  %v116_v23 = vmul.f32 %v189_v21, %v185_v62  ;;  %v191_v24 = vpop.eup %190 }
  0xd6   :  { %v119_v25 = vmul.f32 %v191_v24, %v181_v59  ;;  %v120_v26 = vmul.f32 %v191_v24, %v183_v60 }
  0xd7   :  { %128 = vperm.xlu1 %179, %v117_v22   ;;  %123 = vperm.xlu0 %178, %v116_v23  }
  0xdb   :  { %133 = vperm.xlu1 %179, %v119_v25  }
  0xdf   :  { %138 = vperm.xlu1 %179, %v120_v26  }
 0x156   :  { %v129_v27 = vpop.permute.xlu1 %128  ;;  %v124_v28 = vpop.permute.xlu0 %123 }
 0x157   :  { %v142_v29 = vmul.f32 %v129_v27, %v244_v7  ;;  %v141_v30 = vmul.f32 %v124_v28, %v229_v2 }
 0x159   :  { %v146_v31 = vsel %vm34_vm0, %v142_v29, 0.0  ;;  %v145_v32 = vsel %vm34_vm0, %v141_v30, 0.0 }
 0x15a   :  { %v147_v33 = vadd.f32 %v146_v31, %v145_v32  ;;  %v134_v34 = vpop.permute.xlu1 %133 }
 0x15b   :  { %v143_v36 = vmul.f32 %v134_v34, %v221_v0 }
 0x15c   :  { %v148_v35 = vrot.slane %v147_v33, 4 }
 0x15d   :  { %v154_v40 = vsel %vm34_vm0, %v143_v36, 0.0 }
 0x15e   :  { %v149_v37 = vadd.f32 %v148_v35, %v147_v33  ;;  %v139_v38 = vpop.permute.xlu1 %138 }
 0x15f   :  { %v144_v39 = vmul.f32 %v139_v38, %v239_v6 }
 0x160   :  { %v150_v7 = vrot.slane %v149_v37, 2 }
 0x161   :  { %v155_v41 = vsel %vm34_vm0, %v144_v39, 0.0 }
 0x162   :  { %v156_v42 = vadd.f32 %v155_v41, %v154_v40  ;;  %v151_v43 = vadd.f32 %v150_v7, %v149_v37 }
 0x164   :  { %v157_v2 = vrot.slane %v156_v42, 4  ;;  %v152_v46 = vrot.slane %v151_v43, 1 }
 0x166   :  { %v158_v44 = vadd.f32 %v157_v2, %v156_v42  ;;  %v153_v49 = vadd.f32 %v152_v46, %v151_v43 }
 0x168   :  { %v159_v45 = vrot.slane %v158_v44, 2 }
 0x16a   :  { %v160_v47 = vadd.f32 %v159_v45, %v158_v44 }
 0x16c   :  { %v161_v48 = vrot.slane %v160_v47, 1 }
 0x16e   :  { %v162_v0 = vadd.f32 %v161_v48, %v160_v47 }
 0x170   :  { %v166_v50 = vsel %vm165_vm6, %v162_v0, %v153_v49 }
 0x171   :  { %169 = vst.msk [vmem:[%s287_s4] sm:$0x3] %vm168_vm7, %v166_v50 }

// kernel: model_forward.21
= control target key start
LH: loop header
LB: loop body
LE: loop exit
PB: predicated region body
PF: predicated region fallthrough
CT: control target
= control target key end

     0   :  { %v263_v0 = vmov 0.0|0.0   ;;  %vm264_vm0 = vmmov 0   ;;  %v265_v4 = vmov 0.0   ;;  %vm32_vm1 = vcmask 261120   ;;  %s335_s1 = inlined_call_operand.vmem [shape: f32[32,32], index: 1, kind: input, shape index: {}]   ;;  %s336_s3 = inlined_call_operand.vmem [shape: f32[32,5], index: 3, kind: input, shape index: {}]   ;;  %s337_s0 = inlined_call_operand.vmem [shape: f32[2,32], index: 0, kind: input, shape index: {}]   ;;  %s338_s2 = inlined_call_operand.vmem [shape: f32[1,32], index: 2, kind: input, shape index: {}]   ;;  %s339_s4 = inlined_call_operand.vmem [shape: f32[1,5], index: 4, kind: input, shape index: {}]   ;;  %s340_s5 = inlined_call_operand.vmem [shape: f32[2,5], index: 5, kind: output, shape index: {}]  }
   0x1   :  { %244 = vmatprep.subr.bf16.mxu0 %v263_v0  ;;  %v21_v1 = vld [vmem:[%s335_s1] sm:$0xff]  ;;  %v22_v2 = vld [vmem:[%s335_s1 + $0x8] sm:$0xff]  ;;  %v23_v3 = vld [vmem:[%s335_s1 + $0x10] sm:$0xff]  ;;  %230 = vmatprep.mubr.msk.f32.mxu0 %vm264_vm0, %v265_v4  ;;  %vm191_vm2 = vcmask 33792  }
   0x2   :  { %v245_v5 = vpack.c.bf16 %v22_v2, %v21_v1  ;;  %v24_v6 = vld [vmem:[%s335_s1 + $0x18] sm:$0xff]  ;;  %250 = vmatprep.subr.bf16.mxu1 %v263_v0  ;;  %v107_v7 = vld [vmem:[%s336_s3] sm:$0xff]  ;;  %241 = vmatprep.mubr.msk.f32.mxu1 %vm264_vm0, %v265_v4  ;;  %v108_v8 = vld [vmem:[%s336_s3 + $0x8] sm:$0xff] }
   0x3   :  { %v248_v9 = vpack.c.bf16 %v24_v6, %v23_v3  ;;  %v251_v10 = vpack.c.bf16 %v108_v8, %v107_v7  ;;  %v20_v11 = vld [vmem:[%s337_s0] sm:$0x3]  ;;  %v109_v12 = vld [vmem:[%s336_s3 + $0x10] sm:$0xff]  ;;  %v110_v13 = vld [vmem:[%s336_s3 + $0x18] sm:$0xff] }
   0x4   :  { %246 = vmatpush3.bf16.msra.mxu0 %v245_v5  ;;  %v254_v14 = vpack.c.bf16 %v110_v13, %v109_v12  ;;  %v208_v15 = vld [vmem:[%s338_s2] ss:$0 sm:$0xff] }
   0x5   :  { %247 = vmatprep.subr.bf16.mxu0 %v263_v0  ;;  %252 = vmatpush3.bf16.msra.mxu1 %v251_v10  ;;  %v210_v20 = vld [vmem:[%s339_s4] ss:$0 sm:$0xff] }
   0x6   :  { %253 = vmatprep.subr.bf16.mxu1 %v263_v0 }
   0x8   :  { %249 = vmatpush3.bf16.msra.mxu0 %v248_v9 }
   0x9   :  { %255 = vmatpush3.bf16.msra.mxu1 %v254_v14 }
   0xb   :  { %231 = vmatmul.mubr.msk.f32.vlgmr.msra.gmra.mrb[0].mxu0 %vm32_vm1, %v20_v11 }
  0xde   :  { %v102_v16 = vpop.f32.mrb[0].mxu0 }
  0xdf   :  { %v103_v17 = vadd.f32 %v208_v15, %v102_v16  ;;  %v232_v18 = vpop.f32.mrb[1].mxu0 }
  0xe1   :  { %v106_v19 = vmax.f32 %v103_v17, 0.0 }
  0xe3   :  { %242 = vmatmul.mubr.msk.f32.vlgmr.msra.gmra.mrb[0].mxu1 %vm32_vm1, %v106_v19 }
 0x1b6   :  { %v187_v21 = vpop.f32.mrb[0].mxu1 }
 0x1b7   :  { %v188_v22 = vadd.f32 %v210_v20, %v187_v21  ;;  %v243_v23 = vpop.f32.mrb[1].mxu1 }
 0x1b9   :  { %v192_v24 = vsel %vm191_vm2, %v188_v22, -inf }
 0x1ba   :  { %193 = vmax.xlane.f32.xlu0 %v192_v24 }
 0x247   :  { %v194_v25 = vpop.xlane.xlu0 %193 }
 0x248   :  { %v195_v26 = vsub.f32 %v188_v22, %v194_v25 }
 0x24a   :  { %v196_v27 = vmul.f32 1.442695, %v195_v26 }
 0x24c   :  { %259 = vpow2.f32 %v196_v27 }
 0x256   :  { %v260_v28 = vpop.eup %259 }
 0x257   :  { %v198_v29 = vsel %vm191_vm2, %v260_v28, 0.0 }
 0x258   :  { %199 = vadd.xlane.f32.xlu0 %v198_v29 }
 0x2e5   :  { %v200_v30 = vpop.xlane.xlu0 %199 }
 0x2e6   :  { %261 = vrcp.f32 %v200_v30 }
 0x2f0   :  { %v262_v31 = vpop.eup %261 }
 0x2f1   :  { %v202_v32 = vmul.f32 %v262_v31, %v260_v28 }
 0x2f3   :  { %203 = vst.msk [vmem:[%s340_s5] sm:$0x3] %vm191_vm2, %v202_v32 }

// kernel: model_forward.26
= control target key start
LH: loop header
LB: loop body
LE: loop exit
PB: predicated region body
PF: predicated region fallthrough
CT: control target
= control target key end

     0   :  { %v2881_v3 = vmov 0.0   ;;  %vm30_vm0 = vcmask 261120   ;;  %vm609_vm1 = vcmask 1045504   ;;  %vm839_vm2 = vcmask 1044480   ;;  %s3534_s1 = inlined_call_operand.vmem [shape: f32[10,32,384], index: 1, kind: input, shape index: {}]   ;;  %s3535_s0 = inlined_call_operand.vmem [shape: f32[32,32], index: 0, kind: input, shape index: {}]   ;;  %s3536_s2 = inlined_call_operand.vmem [shape: f32[1,384], index: 2, kind: input, shape index: {}]   ;;  %s3537_s3 = inlined_call_operand.vmem [shape: f32[2,384], index: 3, kind: output, shape index: {}]  }
   0x1   :  { %v19_v0 = vld [vmem:[%s3534_s1 + $0x8] sm:$0xff]  ;;  %v22_v1 = vld [vmem:[%s3534_s1 + $0x20] sm:$0xff]  ;;  %v20_v2 = vld [vmem:[%s3534_s1 + $0x10] sm:$0xff]  ;;  %107 = vmatprep.mubr.f32.mxu0 %v2881_v3  ;;  %vm1069_vm3 = vcmask 1043456   ;;  %vm1299_vm4 = vcmask 1042432   ;;  %vm1529_vm5 = vcmask 1041408  }
   0x2   :  { %v2687_v4 = vpack.c.bf16 %v22_v1, %v19_v0  ;;  %v23_v5 = vld [vmem:[%s3534_s1 + $0x28] sm:$0xff]  ;;  %v18_v6 = vld [vmem:[%s3534_s1] sm:$0xff]  ;;  %v21_v7 = vld [vmem:[%s3534_s1 + $0x18] sm:$0xff]  ;;  %vm1759_vm6 = vcmask 1040384   ;;  %vm2188_vm7 = vcmask 1046528  }
   0x3   :  { %v2695_v8 = vpack.c.bf16 %v23_v5, %v20_v2  ;;  %v2689_v9 = vpack.c.bf16 %v21_v7, %v18_v6  ;;  %v25_v10 = vld [vmem:[%s3534_s1 + $0x38] sm:$0xff]  ;;  %v28_v11 = vld [vmem:[%s3534_s1 + $0x50] sm:$0xff]  ;;  %v26_v12 = vld [vmem:[%s3534_s1 + $0x40] sm:$0xff] }
   0x4   :  { %2688 = vmatprep.subr.bf16.mxu0 %v2687_v4  ;;  %v2691_v13 = vpack.c.bf16 %v28_v11, %v25_v10  ;;  %v29_v14 = vld [vmem:[%s3534_s1 + $0x58] sm:$0xff]  ;;  %v24_v15 = vld [vmem:[%s3534_s1 + $0x30] sm:$0xff]  ;;  %v27_v16 = vld [vmem:[%s3534_s1 + $0x48] sm:$0xff] }
   0x5   :  { %2696 = vmatprep.subr.bf16.mxu1 %v2695_v8  ;;  %2690 = vmatpush1.bf16.msra.mxu0 %v2689_v9  ;;  %v2699_v17 = vpack.c.bf16 %v29_v14, %v26_v12  ;;  %v2693_v18 = vpack.c.bf16 %v27_v16, %v24_v15  ;;  %v2943_v19 = vld [vmem:[%s3535_s0] sm:$0xff]  ;;  %v2288_v20 = vld [vmem:[%s3534_s1 + $0x68] sm:$0xff]  ;;  %v2290_v24 = vld [vmem:[%s3534_s1 + $0x78] sm:$0xff] }
   0x6   :  { %2698 = vmatpush3.bf16.msra.mxu1 %v2695_v8  ;;  %2692 = vmatprep.subr.bf16.mxu0 %v2691_v13  ;;  %v2291_v21 = vld [vmem:[%s3534_s1 + $0x80] sm:$0xff]  ;;  %v2289_v25 = vld [vmem:[%s3534_s1 + $0x70] sm:$0xff]  ;;  %v2292_v26 = vld [vmem:[%s3534_s1 + $0x88] sm:$0xff] }
   0x7   :  { %v2287_v22 = vld [vmem:[%s3534_s1 + $0x60] sm:$0xff]  ;;  %2700 = vmatprep.subr.bf16.mxu1 %v2699_v17  ;;  %2555 = vmatprep.mubr.msk.f32.mxu1 %vm30_vm0, %v2943_v19  ;;  %v2703_v23 = vpack.c.bf16 %v2291_v21, %v2288_v20  ;;  %v2711_v27 = vpack.c.bf16 %v2292_v26, %v2289_v25  ;;  %v2294_v28 = vld [vmem:[%s3534_s1 + $0x98] sm:$0xff]  ;;  %v2297_v29 = vld [vmem:[%s3534_s1 + $0xb0] sm:$0xff] }
   0x8   :  { %v2974_v30 = vld [vmem:[%s3535_s0 + $0x8] sm:$0xff]  ;;  %v2705_v31 = vpack.c.bf16 %v2290_v24, %v2287_v22  ;;  %v2295_v32 = vld [vmem:[%s3534_s1 + $0xa0] sm:$0xff]  ;;  %v2298_v33 = vld [vmem:[%s3534_s1 + $0xb8] sm:$0xff]  ;;  %v2707_v35 = vpack.c.bf16 %v2297_v29, %v2294_v28 }
   0x9   :  { %2694 = vmatpush1.bf16.msra.mxu0 %v2693_v18  ;;  %v2985_v34 = vld [vmem:[%s3535_s0 + $0x10] sm:$0xff]  ;;  %v2296_v37 = vld [vmem:[%s3534_s1 + $0xa8] sm:$0xff]  ;;  %v2715_v40 = vpack.c.bf16 %v2298_v33, %v2295_v32  ;;  %v2311_v42 = vld [vmem:[%s3534_s1 + $0xe0] sm:$0xff] }
   0xa   :  { %2702 = vmatpush3.bf16.msra.mxu1 %v2699_v17  ;;  %2712 = vmatprep.subr.bf16.mxu0 %v2711_v27  ;;  %v2293_v36 = vld [vmem:[%s3534_s1 + $0x90] sm:$0xff]  ;;  %v2312_v39 = vld [vmem:[%s3534_s1 + $0xe8] sm:$0xff]  ;;  %v3015_v43 = vld [vmem:[%s3535_s0 + $0x18] sm:$0xff] }
   0xb   :  { %2704 = vmatprep.subr.bf16.mxu1 %v2703_v23  ;;  %v2309_v38 = vld [vmem:[%s3534_s1 + $0xd0] sm:$0xff]  ;;  %v2308_v41 = vld [vmem:[%s3534_s1 + $0xc8] sm:$0xff]  ;;  %v2709_v44 = vpack.c.bf16 %v2296_v37, %v2293_v36  ;;  %v2315_v47 = vld [vmem:[%s3534_s1 + $0x100] sm:$0xff] }
   0xc   :  { %2279 = vmatmul.mubr.msk.f32.vlgmr.msra.gmra.mrb[0].mxu0 %vm30_vm0, %v2943_v19  ;;  %v2727_v45 = vpack.c.bf16 %v2312_v39, %v2309_v38  ;;  %v2719_v46 = vpack.c.bf16 %v2311_v42, %v2308_v41  ;;  %v2318_v48 = vld [vmem:[%s3534_s1 + $0x118] sm:$0xff]  ;;  %v2328_v50 = vld [vmem:[%s3534_s1 + $0x128] sm:$0xff]  ;;  %v2331_v51 = vld [vmem:[%s3534_s1 + $0x140] sm:$0xff] }
   0xd   :  { %2556 = vmatmul.mubr.msk.f32.vlgmr.msra.gmra.mrb[0].mxu1 %vm30_vm0, %v2974_v30  ;;  %113 = vmatprep.mubr.f32.mxu0 %v2881_v3  ;;  %v2731_v49 = vpack.c.bf16 %v2318_v48, %v2315_v47  ;;  %v2307_v52 = vld [vmem:[%s3534_s1 + $0xc0] sm:$0xff]  ;;  %v2310_v53 = vld [vmem:[%s3534_s1 + $0xd8] sm:$0xff]  ;;  %v2735_v54 = vpack.c.bf16 %v2331_v51, %v2328_v50  ;;  %v2317_v56 = vld [vmem:[%s3534_s1 + $0x110] sm:$0xff] }
   0xe   :  { %2706 = vmatpush1.bf16.msra.mxu1 %v2705_v31  ;;  %2558 = vmatprep.mubr.msk.f32.mxu1 %vm30_vm0, %v2985_v34  ;;  %v2314_v55 = vld [vmem:[%s3534_s1 + $0xf8] sm:$0xff]  ;;  %v2721_v57 = vpack.c.bf16 %v2310_v53, %v2307_v52  ;;  %v2313_v58 = vld [vmem:[%s3534_s1 + $0xf0] sm:$0xff]  ;;  %v2316_v59 = vld [vmem:[%s3534_s1 + $0x108] sm:$0xff] }
   0xf   :  { %2708 = vmatprep.subr.bf16.mxu1 %v2707_v35  ;;  %2714 = vmatpush3.bf16.msra.mxu0 %v2711_v27  ;;  %v2723_v60 = vpack.c.bf16 %v2317_v56, %v2314_v55  ;;  %v2329_v61 = vld [vmem:[%s3534_s1 + $0x130] sm:$0xff]  ;;  %v2332_v62 = vld [vmem:[%s3534_s1 + $0x148] sm:$0xff]  ;;  %v2725_v63 = vpack.c.bf16 %v2316_v59, %v2313_v58  ;;  %v2327_v0 = vld [vmem:[%s3534_s1 + $0x120] sm:$0xff] }
  0x10   :  { %2280 = vmatmul.mubr.msk.f32.gmra.mrb[2].mxu0 %vm30_vm0, %v2974_v30  ;;  %2716 = vmatprep.subr.bf16.mxu0 %v2715_v40  ;;  %v2330_v1 = vld [vmem:[%s3534_s1 + $0x138] sm:$0xff]  ;;  %v2743_v2 = vpack.c.bf16 %v2332_v62, %v2329_v61  ;;  %v2337_v5 = vld [vmem:[%s3534_s1 + $0x170] sm:$0xff]  ;;  %v2335_v6 = vld [vmem:[%s3534_s1 + $0x160] sm:$0xff] }
  0x11   :  { %2559 = vmatmul.mubr.msk.f32.gmra.mrb[2].mxu1 %vm30_vm0, %v3015_v43  ;;  %117 = vmatprep.mubr.f32.mxu0 %v2881_v3  ;;  %v2334_v4 = vld [vmem:[%s3534_s1 + $0x158] sm:$0xff]  ;;  %v2737_v8 = vpack.c.bf16 %v2330_v1, %v2327_v0  ;;  %v2333_v10 = vld [vmem:[%s3534_s1 + $0x150] sm:$0xff]  ;;  %v2336_v11 = vld [vmem:[%s3534_s1 + $0x168] sm:$0xff] }
  0x12   :  { %2710 = vmatpush1.bf16.msra.mxu1 %v2709_v44  ;;  %288 = vmatprep.mubr.f32.mxu1 %v2881_v3  ;;  %v2338_v7 = vld [vmem:[%s3534_s1 + $0x178] sm:$0xff]  ;;  %v2739_v9 = vpack.c.bf16 %v2337_v5, %v2334_v4  ;;  %v2349_v12 = vld [vmem:[%s3534_s1 + $0x190] sm:$0xff]  ;;  %v2352_v13 = vld [vmem:[%s3534_s1 + $0x1a8] sm:$0xff]  ;;  %v2741_v17 = vpack.c.bf16 %v2336_v11, %v2333_v10 }
  0x13   :  { %2728 = vmatprep.subr.bf16.mxu1 %v2727_v45  ;;  %2718 = vmatpush3.bf16.msra.mxu0 %v2715_v40  ;;  %v2747_v14 = vpack.c.bf16 %v2338_v7, %v2335_v6  ;;  %v2348_v15 = vld [vmem:[%s3534_s1 + $0x188] sm:$0xff]  ;;  %v2351_v16 = vld [vmem:[%s3534_s1 + $0x1a0] sm:$0xff]  ;;  %v2759_v18 = vpack.c.bf16 %v2352_v13, %v2349_v12  ;;  %v2358_v22 = vld [vmem:[%s3534_s1 + $0x1d8] sm:$0xff] }
  0x14   :  { %2281 = vmatmul.mubr.msk.f32.gmra.mrb[4].mxu0 %vm30_vm0, %v2985_v34  ;;  %2720 = vmatprep.subr.bf16.mxu0 %v2719_v46  ;;  %v2751_v20 = vpack.c.bf16 %v2351_v16, %v2348_v15  ;;  %v2355_v21 = vld [vmem:[%s3534_s1 + $0x1c0] sm:$0xff]  ;;  %v2368_v24 = vld [vmem:[%s3534_s1 + $0x1e8] sm:$0xff]  ;;  %v2350_v27 = vld [vmem:[%s3534_s1 + $0x198] sm:$0xff] }
  0x15   :  { %2299 = vmatmul.mubr.msk.f32.vlgmr.msra.gmra.mrb[4].mxu1 %vm30_vm0, %v2943_v19  ;;  %123 = vmatprep.mubr.f32.mxu0 %v2881_v3  ;;  %v2763_v23 = vpack.c.bf16 %v2358_v22, %v2355_v21  ;;  %v2371_v25 = vld [vmem:[%s3534_s1 + $0x200] sm:$0xff]  ;;  %v2354_v29 = vld [vmem:[%s3534_s1 + $0x1b8] sm:$0xff]  ;;  %v2357_v31 = vld [vmem:[%s3534_s1 + $0x1d0] sm:$0xff] }
  0x16   :  { %2730 = vmatpush3.bf16.msra.mxu1 %v2727_v45  ;;  %294 = vmatprep.mubr.f32.mxu1 %v2881_v3  ;;  %v2347_v26 = vld [vmem:[%s3534_s1 + $0x180] sm:$0xff]  ;;  %v2767_v28 = vpack.c.bf16 %v2371_v25, %v2368_v24  ;;  %v2353_v33 = vld [vmem:[%s3534_s1 + $0x1b0] sm:$0xff]  ;;  %v2356_v35 = vld [vmem:[%s3534_s1 + $0x1c8] sm:$0xff]  ;;  %v2755_v36 = vpack.c.bf16 %v2357_v31, %v2354_v29 }
  0x17   :  { %2732 = vmatprep.subr.bf16.mxu1 %v2731_v49  ;;  %v2753_v32 = vpack.c.bf16 %v2350_v27, %v2347_v26  ;;  %v2369_v37 = vld [vmem:[%s3534_s1 + $0x1f0] sm:$0xff]  ;;  %v2372_v38 = vld [vmem:[%s3534_s1 + $0x208] sm:$0xff]  ;;  %v2757_v39 = vpack.c.bf16 %v2356_v35, %v2353_v33  ;;  %v2367_v40 = vld [vmem:[%s3534_s1 + $0x1e0] sm:$0xff] }
  0x18   :  { %2282 = vmatmul.mubr.msk.f32.gmra.mrb[6].mxu0 %vm30_vm0, %v3015_v43  ;;  %v2370_v41 = vld [vmem:[%s3534_s1 + $0x1f8] sm:$0xff]  ;;  %v2775_v42 = vpack.c.bf16 %v2372_v38, %v2369_v37  ;;  %v2377_v45 = vld [vmem:[%s3534_s1 + $0x230] sm:$0xff]  ;;  %v2375_v46 = vld [vmem:[%s3534_s1 + $0x220] sm:$0xff] }
  0x19   :  { %2300 = vmatmul.mubr.msk.f32.gmra.mrb[6].mxu1 %vm30_vm0, %v2974_v30  ;;  %2569 = vmatprep.mubr.msk.f32.mxu0 %vm30_vm0, %v2943_v19  ;;  %v2374_v44 = vld [vmem:[%s3534_s1 + $0x218] sm:$0xff]  ;;  %v2769_v48 = vpack.c.bf16 %v2370_v41, %v2367_v40  ;;  %v2373_v50 = vld [vmem:[%s3534_s1 + $0x210] sm:$0xff]  ;;  %v2376_v51 = vld [vmem:[%s3534_s1 + $0x228] sm:$0xff] }
  0x1a   :  { %298 = vmatprep.mubr.f32.mxu1 %v2881_v3  ;;  %2734 = vmatpush3.bf16.msra.mxu1 %v2731_v49  ;;  %v2378_v47 = vld [vmem:[%s3534_s1 + $0x238] sm:$0xff]  ;;  %v2771_v49 = vpack.c.bf16 %v2377_v45, %v2374_v44  ;;  %v2389_v52 = vld [vmem:[%s3534_s1 + $0x250] sm:$0xff]  ;;  %v2392_v53 = vld [vmem:[%s3534_s1 + $0x268] sm:$0xff] }
  0x1b   :  { %2736 = vmatprep.subr.bf16.mxu1 %v2735_v54  ;;  %v2779_v54 = vpack.c.bf16 %v2378_v47, %v2375_v46  ;;  %v2388_v55 = vld [vmem:[%s3534_s1 + $0x248] sm:$0xff]  ;;  %v2391_v56 = vld [vmem:[%s3534_s1 + $0x260] sm:$0xff]  ;;  %v2791_v58 = vpack.c.bf16 %v2392_v53, %v2389_v52  ;;  %v2398_v61 = vld [vmem:[%s3534_s1 + $0x298] sm:$0xff] }
  0x1c   :  { %2570 = vmatmul.mubr.msk.f32.vlgmr.msra.gmra.mrb[8].mxu0 %vm30_vm0, %v2974_v30  ;;  %v2783_v59 = vpack.c.bf16 %v2391_v56, %v2388_v55  ;;  %v2411_v0 = vld [vmem:[%s3534_s1 + $0x2c0] sm:$0xff]  ;;  %v2394_v5 = vld [vmem:[%s3534_s1 + $0x278] sm:$0xff]  ;;  %v2397_v6 = vld [vmem:[%s3534_s1 + $0x290] sm:$0xff] }
  0x1d   :  { %2301 = vmatmul.mubr.msk.f32.gmra.mrb[8].mxu1 %vm30_vm0, %v2985_v34  ;;  %2722 = vmatpush1.bf16.msra.mxu0 %v2721_v57  ;;  %v2773_v57 = vpack.c.bf16 %v2376_v51, %v2373_v50  ;;  %v2387_v1 = vld [vmem:[%s3534_s1 + $0x240] sm:$0xff]  ;;  %v2787_v10 = vpack.c.bf16 %v2397_v6, %v2394_v5  ;;  %v2409_v11 = vld [vmem:[%s3534_s1 + $0x2b0] sm:$0xff]  ;;  %v2412_v12 = vld [vmem:[%s3534_s1 + $0x2c8] sm:$0xff] }
  0x1e   :  { %304 = vmatprep.mubr.f32.mxu1 %v2881_v3  ;;  %2572 = vmatprep.mubr.msk.f32.mxu0 %vm30_vm0, %v2985_v34  ;;  %v2410_v15 = vld [vmem:[%s3534_s1 + $0x2b8] sm:$0xff]  ;;  %v2807_v16 = vpack.c.bf16 %v2412_v12, %v2409_v11  ;;  %v2413_v24 = vld [vmem:[%s3534_s1 + $0x2d0] sm:$0xff]  ;;  %v2416_v25 = vld [vmem:[%s3534_s1 + $0x2e8] sm:$0xff] }
  0x1f   :  { %2724 = vmatprep.subr.bf16.mxu0 %v2723_v60  ;;  %v2395_v60 = vld [vmem:[%s3534_s1 + $0x280] sm:$0xff]  ;;  %v2418_v21 = vld [vmem:[%s3534_s1 + $0x2f8] sm:$0xff]  ;;  %v2429_v26 = vld [vmem:[%s3534_s1 + $0x310] sm:$0xff] }
  0x20   :  { %2573 = vmatmul.mubr.msk.f32.gmra.mrb[10].mxu0 %vm30_vm0, %v3015_v43  ;;  %v2795_v62 = vpack.c.bf16 %v2398_v61, %v2395_v60  ;;  %v2432_v27 = vld [vmem:[%s3534_s1 + $0x328] sm:$0xff]  ;;  %v2431_v31 = vld [vmem:[%s3534_s1 + $0x320] sm:$0xff]  ;;  %v2438_v37 = vld [vmem:[%s3534_s1 + $0x358] sm:$0xff] }
  0x21   :  { %2302 = vmatmul.mubr.msk.f32.gmra.mrb[10].mxu1 %vm30_vm0, %v3015_v43  ;;  %2726 = vmatpush1.bf16.msra.mxu0 %v2725_v63  ;;  %v2408_v63 = vld [vmem:[%s3534_s1 + $0x2a8] sm:$0xff]  ;;  %v2823_v33 = vpack.c.bf16 %v2432_v27, %v2429_v26  ;;  %v2451_v40 = vld [vmem:[%s3534_s1 + $0x380] sm:$0xff]  ;;  %v2434_v45 = vld [vmem:[%s3534_s1 + $0x338] sm:$0xff] }
  0x22   :  { %493 = vmatprep.mubr.f32.mxu0 %v2881_v3  ;;  %2583 = vmatprep.mubr.msk.f32.mxu1 %vm30_vm0, %v2943_v19  ;;  %v2799_v4 = vpack.c.bf16 %v2411_v0, %v2408_v63  ;;  %v2428_v29 = vld [vmem:[%s3534_s1 + $0x308] sm:$0xff]  ;;  %v2427_v41 = vld [vmem:[%s3534_s1 + $0x300] sm:$0xff]  ;;  %v2437_v46 = vld [vmem:[%s3534_s1 + $0x350] sm:$0xff] }
  0x23   :  { %2744 = vmatprep.subr.bf16.mxu0 %v2743_v2  ;;  %v2815_v35 = vpack.c.bf16 %v2431_v31, %v2428_v29  ;;  %v2819_v50 = vpack.c.bf16 %v2437_v46, %v2434_v45  ;;  %v2449_v51 = vld [vmem:[%s3534_s1 + $0x370] sm:$0xff]  ;;  %v2452_v52 = vld [vmem:[%s3534_s1 + $0x388] sm:$0xff]  ;;  %v2450_v55 = vld [vmem:[%s3534_s1 + $0x378] sm:$0xff] }
  0x24   :  { %2319 = vmatmul.mubr.msk.f32.vlgmr.msra.gmra.mrb[12].mxu0 %vm30_vm0, %v2943_v19  ;;  %v2839_v56 = vpack.c.bf16 %v2452_v52, %v2449_v51  ;;  %v2458_v60 = vld [vmem:[%s3534_s1 + $0x3b8] sm:$0xff]  ;;  %v2453_v63 = vld [vmem:[%s3534_s1 + $0x390] sm:$0xff]  ;;  %v2456_v0 = vld [vmem:[%s3534_s1 + $0x3a8] sm:$0xff] }
  0x25   :  { %2584 = vmatmul.mubr.msk.f32.vlgmr.msra.gmra.mrb[12].mxu1 %vm30_vm0, %v2974_v30  ;;  %499 = vmatprep.mubr.f32.mxu0 %v2881_v3 }
  0x26   :  { %2738 = vmatpush1.bf16.msra.mxu1 %v2737_v8  ;;  %2586 = vmatprep.mubr.msk.f32.mxu1 %vm30_vm0, %v2985_v34  ;;  %v2393_v8 = vld [vmem:[%s3534_s1 + $0x270] sm:$0xff] }
  0x27   :  { %2740 = vmatprep.subr.bf16.mxu1 %v2739_v9  ;;  %2746 = vmatpush3.bf16.msra.mxu0 %v2743_v2  ;;  %v2390_v2 = vld [vmem:[%s3534_s1 + $0x258] sm:$0xff]  ;;  %v2396_v9 = vld [vmem:[%s3534_s1 + $0x288] sm:$0xff] }
  0x28   :  { %2320 = vmatmul.mubr.msk.f32.gmra.mrb[14].mxu0 %vm30_vm0, %v2974_v30  ;;  %2748 = vmatprep.subr.bf16.mxu0 %v2747_v14  ;;  %v2785_v7 = vpack.c.bf16 %v2390_v2, %v2387_v1  ;;  %v2789_v13 = vpack.c.bf16 %v2396_v9, %v2393_v8  ;;  %v2837_v2 = vpack.c.bf16 %v2456_v0, %v2453_v63 }
  0x29   :  { %2587 = vmatmul.mubr.msk.f32.gmra.mrb[14].mxu1 %vm30_vm0, %v3015_v43  ;;  %505 = vmatprep.mubr.f32.mxu0 %v2881_v3 }
  0x2a   :  { %2742 = vmatpush1.bf16.msra.mxu1 %v2741_v17  ;;  %723 = vmatprep.mubr.f32.mxu1 %v2881_v3  ;;  %v2414_v17 = vld [vmem:[%s3534_s1 + $0x2d8] sm:$0xff] }
  0x2b   :  { %2760 = vmatprep.subr.bf16.mxu1 %v2759_v18  ;;  %2750 = vmatpush3.bf16.msra.mxu0 %v2747_v14  ;;  %v2407_v14 = vld [vmem:[%s3534_s1 + $0x2a0] sm:$0xff] }
  0x2c   :  { %2321 = vmatmul.mubr.msk.f32.gmra.mrb[16].mxu0 %vm30_vm0, %v2985_v34  ;;  %2752 = vmatprep.subr.bf16.mxu0 %v2751_v20  ;;  %v2415_v20 = vld [vmem:[%s3534_s1 + $0x2e0] sm:$0xff]  ;;  %v2801_v22 = vpack.c.bf16 %v2410_v15, %v2407_v14 }
  0x2d   :  { %2339 = vmatmul.mubr.msk.f32.vlgmr.msra.gmra.mrb[16].mxu1 %vm30_vm0, %v2943_v19  ;;  %511 = vmatprep.mubr.f32.mxu0 %v2881_v3 }
  0x2e   :  { %2762 = vmatpush3.bf16.msra.mxu1 %v2759_v18  ;;  %729 = vmatprep.mubr.f32.mxu1 %v2881_v3  ;;  %v2417_v18 = vld [vmem:[%s3534_s1 + $0x2f0] sm:$0xff] }
  0x2f   :  { %2764 = vmatprep.subr.bf16.mxu1 %v2763_v23 }
  0x30   :  { %2322 = vmatmul.mubr.msk.f32.gmra.mrb[18].mxu0 %vm30_vm0, %v3015_v43 }
  0x31   :  { %2340 = vmatmul.mubr.msk.f32.gmra.mrb[18].mxu1 %vm30_vm0, %v2974_v30  ;;  %2597 = vmatprep.mubr.msk.f32.mxu0 %vm30_vm0, %v2943_v19 }
  0x32   :  { %735 = vmatprep.mubr.f32.mxu1 %v2881_v3  ;;  %2766 = vmatpush3.bf16.msra.mxu1 %v2763_v23  ;;  %v2803_v23 = vpack.c.bf16 %v2417_v18, %v2414_v17 }
  0x33   :  { %2768 = vmatprep.subr.bf16.mxu1 %v2767_v28  ;;  %v2811_v28 = vpack.c.bf16 %v2418_v21, %v2415_v20 }
  0x34   :  { %2598 = vmatmul.mubr.msk.f32.vlgmr.msra.gmra.mrb[20].mxu0 %vm30_vm0, %v2974_v30 }
  0x35   :  { %2341 = vmatmul.mubr.msk.f32.gmra.mrb[20].mxu1 %vm30_vm0, %v2985_v34  ;;  %2754 = vmatpush1.bf16.msra.mxu0 %v2753_v32  ;;  %v2805_v32 = vpack.c.bf16 %v2416_v25, %v2413_v24 }
  0x36   :  { %741 = vmatprep.mubr.f32.mxu1 %v2881_v3  ;;  %2600 = vmatprep.mubr.msk.f32.mxu0 %vm30_vm0, %v2985_v34 }
  0x37   :  { %2756 = vmatprep.subr.bf16.mxu0 %v2755_v36  ;;  %v2435_v36 = vld [vmem:[%s3534_s1 + $0x340] sm:$0xff] }
  0x38   :  { %2601 = vmatmul.mubr.msk.f32.gmra.mrb[22].mxu0 %vm30_vm0, %v3015_v43  ;;  %v2827_v38 = vpack.c.bf16 %v2438_v37, %v2435_v36 }
  0x39   :  { %2342 = vmatmul.mubr.msk.f32.gmra.mrb[22].mxu1 %vm30_vm0, %v3015_v43  ;;  %2758 = vmatpush1.bf16.msra.mxu0 %v2757_v39  ;;  %v2448_v39 = vld [vmem:[%s3534_s1 + $0x368] sm:$0xff] }
  0x3a   :  { %953 = vmatprep.mubr.f32.mxu0 %v2881_v3  ;;  %2611 = vmatprep.mubr.msk.f32.mxu1 %vm30_vm0, %v2943_v19  ;;  %v2831_v44 = vpack.c.bf16 %v2451_v40, %v2448_v39 }
  0x3b   :  { %2776 = vmatprep.subr.bf16.mxu0 %v2775_v42 }
  0x3c   :  { %2359 = vmatmul.mubr.msk.f32.vlgmr.msra.gmra.mrb[24].mxu0 %vm30_vm0, %v2943_v19 }
  0x3d   :  { %2612 = vmatmul.mubr.msk.f32.vlgmr.msra.gmra.mrb[24].mxu1 %vm30_vm0, %v2974_v30  ;;  %959 = vmatprep.mubr.f32.mxu0 %v2881_v3 }
  0x3e   :  { %2770 = vmatpush1.bf16.msra.mxu1 %v2769_v48  ;;  %2614 = vmatprep.mubr.msk.f32.mxu1 %vm30_vm0, %v2985_v34  ;;  %v2433_v48 = vld [vmem:[%s3534_s1 + $0x330] sm:$0xff] }
  0x3f   :  { %2772 = vmatprep.subr.bf16.mxu1 %v2771_v49  ;;  %2778 = vmatpush3.bf16.msra.mxu0 %v2775_v42  ;;  %v2430_v42 = vld [vmem:[%s3534_s1 + $0x318] sm:$0xff]  ;;  %v2436_v49 = vld [vmem:[%s3534_s1 + $0x348] sm:$0xff] }
  0x40   :  { %2360 = vmatmul.mubr.msk.f32.gmra.mrb[26].mxu0 %vm30_vm0, %v2974_v30  ;;  %2780 = vmatprep.subr.bf16.mxu0 %v2779_v54  ;;  %v2817_v47 = vpack.c.bf16 %v2430_v42, %v2427_v41  ;;  %v2821_v53 = vpack.c.bf16 %v2436_v49, %v2433_v48 }
  0x41   :  { %2615 = vmatmul.mubr.msk.f32.gmra.mrb[26].mxu1 %vm30_vm0, %v3015_v43  ;;  %965 = vmatprep.mubr.f32.mxu0 %v2881_v3 }
  0x42   :  { %2774 = vmatpush1.bf16.msra.mxu1 %v2773_v57  ;;  %1183 = vmatprep.mubr.f32.mxu1 %v2881_v3  ;;  %v2454_v57 = vld [vmem:[%s3534_s1 + $0x398] sm:$0xff] }
  0x43   :  { %2792 = vmatprep.subr.bf16.mxu1 %v2791_v58  ;;  %2782 = vmatpush3.bf16.msra.mxu0 %v2779_v54  ;;  %v2447_v54 = vld [vmem:[%s3534_s1 + $0x360] sm:$0xff] }
  0x44   :  { %2361 = vmatmul.mubr.msk.f32.gmra.mrb[28].mxu0 %vm30_vm0, %v2985_v34  ;;  %2784 = vmatprep.subr.bf16.mxu0 %v2783_v59  ;;  %v2455_v59 = vld [vmem:[%s3534_s1 + $0x3a0] sm:$0xff]  ;;  %v2833_v61 = vpack.c.bf16 %v2450_v55, %v2447_v54 }
  0x45   :  { %2379 = vmatmul.mubr.msk.f32.vlgmr.msra.gmra.mrb[28].mxu1 %vm30_vm0, %v2943_v19  ;;  %971 = vmatprep.mubr.f32.mxu0 %v2881_v3  ;;  %v2843_v1 = vpack.c.bf16 %v2458_v60, %v2455_v59 }
  0x46   :  { %2794 = vmatpush3.bf16.msra.mxu1 %v2791_v58  ;;  %1189 = vmatprep.mubr.f32.mxu1 %v2881_v3  ;;  %v2457_v58 = vld [vmem:[%s3534_s1 + $0x3b0] sm:$0xff] }
  0x47   :  { %2796 = vmatprep.subr.bf16.mxu1 %v2795_v62 }
  0x48   :  { %2362 = vmatmul.mubr.msk.f32.gmra.mrb[30].mxu0 %vm30_vm0, %v3015_v43 }
  0x49   :  { %2380 = vmatmul.mubr.msk.f32.gmra.mrb[30].mxu1 %vm30_vm0, %v2974_v30  ;;  %2625 = vmatprep.mubr.msk.f32.mxu0 %vm30_vm0, %v2943_v19 }
  0x4a   :  { %1195 = vmatprep.mubr.f32.mxu1 %v2881_v3  ;;  %2798 = vmatpush3.bf16.msra.mxu1 %v2795_v62  ;;  %v2835_v62 = vpack.c.bf16 %v2457_v58, %v2454_v57 }
  0x4b   :  { %2800 = vmatprep.subr.bf16.mxu1 %v2799_v4 }
  0x4c   :  { %2626 = vmatmul.mubr.msk.f32.vlgmr.msra.gmra.mrb[32].mxu0 %vm30_vm0, %v2974_v30 }
  0x4d   :  { %2381 = vmatmul.mubr.msk.f32.gmra.mrb[32].mxu1 %vm30_vm0, %v2985_v34  ;;  %2786 = vmatpush1.bf16.msra.mxu0 %v2785_v7 }
  0x4e   :  { %1201 = vmatprep.mubr.f32.mxu1 %v2881_v3  ;;  %2628 = vmatprep.mubr.msk.f32.mxu0 %vm30_vm0, %v2985_v34 }
  0x4f   :  { %2788 = vmatprep.subr.bf16.mxu0 %v2787_v10 }
  0x50   :  { %2629 = vmatmul.mubr.msk.f32.gmra.mrb[34].mxu0 %vm30_vm0, %v3015_v43 }
  0x51   :  { %2382 = vmatmul.mubr.msk.f32.gmra.mrb[34].mxu1 %vm30_vm0, %v3015_v43  ;;  %2790 = vmatpush1.bf16.msra.mxu0 %v2789_v13 }
  0x52   :  { %1413 = vmatprep.mubr.f32.mxu0 %v2881_v3  ;;  %2639 = vmatprep.mubr.msk.f32.mxu1 %vm30_vm0, %v2943_v19 }
  0x53   :  { %2808 = vmatprep.subr.bf16.mxu0 %v2807_v16 }
  0x54   :  { %2399 = vmatmul.mubr.msk.f32.vlgmr.msra.gmra.mrb[36].mxu0 %vm30_vm0, %v2943_v19 }
  0x55   :  { %2640 = vmatmul.mubr.msk.f32.vlgmr.msra.gmra.mrb[36].mxu1 %vm30_vm0, %v2974_v30  ;;  %1419 = vmatprep.mubr.f32.mxu0 %v2881_v3 }
  0x56   :  { %2802 = vmatpush1.bf16.msra.mxu1 %v2801_v22  ;;  %2642 = vmatprep.mubr.msk.f32.mxu1 %vm30_vm0, %v2985_v34 }
  0x57   :  { %2804 = vmatprep.subr.bf16.mxu1 %v2803_v23  ;;  %2810 = vmatpush3.bf16.msra.mxu0 %v2807_v16 }
  0x58   :  { %2400 = vmatmul.mubr.msk.f32.gmra.mrb[38].mxu0 %vm30_vm0, %v2974_v30  ;;  %2812 = vmatprep.subr.bf16.mxu0 %v2811_v28 }
  0x59   :  { %2643 = vmatmul.mubr.msk.f32.gmra.mrb[38].mxu1 %vm30_vm0, %v3015_v43  ;;  %1425 = vmatprep.mubr.f32.mxu0 %v2881_v3 }
  0x5a   :  { %2806 = vmatpush1.bf16.msra.mxu1 %v2805_v32  ;;  %1643 = vmatprep.mubr.f32.mxu1 %v2881_v3 }
  0x5b   :  { %2824 = vmatprep.subr.bf16.mxu1 %v2823_v33  ;;  %2814 = vmatpush3.bf16.msra.mxu0 %v2811_v28 }
  0x5c   :  { %2401 = vmatmul.mubr.msk.f32.gmra.mrb[40].mxu0 %vm30_vm0, %v2985_v34  ;;  %2816 = vmatprep.subr.bf16.mxu0 %v2815_v35 }
  0x5d   :  { %2419 = vmatmul.mubr.msk.f32.vlgmr.msra.gmra.mrb[40].mxu1 %vm30_vm0, %v2943_v19  ;;  %1431 = vmatprep.mubr.f32.mxu0 %v2881_v3 }
  0x5e   :  { %2826 = vmatpush3.bf16.msra.mxu1 %v2823_v33  ;;  %1649 = vmatprep.mubr.f32.mxu1 %v2881_v3 }
  0x5f   :  { %2828 = vmatprep.subr.bf16.mxu1 %v2827_v38 }
  0x60   :  { %2402 = vmatmul.mubr.msk.f32.gmra.mrb[42].mxu0 %vm30_vm0, %v3015_v43 }
  0x61   :  { %2420 = vmatmul.mubr.msk.f32.gmra.mrb[42].mxu1 %vm30_vm0, %v2974_v30  ;;  %2653 = vmatprep.mubr.msk.f32.mxu0 %vm30_vm0, %v2943_v19 }
  0x62   :  { %1655 = vmatprep.mubr.f32.mxu1 %v2881_v3  ;;  %2830 = vmatpush3.bf16.msra.mxu1 %v2827_v38 }
  0x63   :  { %2832 = vmatprep.subr.bf16.mxu1 %v2831_v44 }
  0x64   :  { %2654 = vmatmul.mubr.msk.f32.vlgmr.msra.gmra.mrb[44].mxu0 %vm30_vm0, %v2974_v30 }
  0x65   :  { %2421 = vmatmul.mubr.msk.f32.gmra.mrb[44].mxu1 %vm30_vm0, %v2985_v34  ;;  %2818 = vmatpush1.bf16.msra.mxu0 %v2817_v47 }
  0x66   :  { %1661 = vmatprep.mubr.f32.mxu1 %v2881_v3  ;;  %2656 = vmatprep.mubr.msk.f32.mxu0 %vm30_vm0, %v2985_v34 }
  0x67   :  { %2820 = vmatprep.subr.bf16.mxu0 %v2819_v50 }
  0x68   :  { %2657 = vmatmul.mubr.msk.f32.gmra.mrb[46].mxu0 %vm30_vm0, %v3015_v43 }
  0x69   :  { %2422 = vmatmul.mubr.msk.f32.gmra.mrb[46].mxu1 %vm30_vm0, %v3015_v43  ;;  %2822 = vmatpush1.bf16.msra.mxu0 %v2821_v53 }
  0x6a   :  { %1873 = vmatprep.mubr.f32.mxu0 %v2881_v3  ;;  %2667 = vmatprep.mubr.msk.f32.mxu1 %vm30_vm0, %v2943_v19 }
  0x6b   :  { %2840 = vmatprep.subr.bf16.mxu0 %v2839_v56 }
  0x6c   :  { %2439 = vmatmul.mubr.msk.f32.vlgmr.msra.gmra.mrb[48].mxu0 %vm30_vm0, %v2943_v19 }
  0x6d   :  { %2668 = vmatmul.mubr.msk.f32.vlgmr.msra.gmra.mrb[48].mxu1 %vm30_vm0, %v2974_v30  ;;  %1877 = vmatprep.mubr.f32.mxu0 %v2881_v3 }
  0x6e   :  { %2834 = vmatpush1.bf16.msra.mxu1 %v2833_v61  ;;  %2670 = vmatprep.mubr.msk.f32.mxu1 %vm30_vm0, %v2985_v34 }
  0x6f   :  { %2836 = vmatprep.subr.bf16.mxu1 %v2835_v62  ;;  %2842 = vmatpush3.bf16.msra.mxu0 %v2839_v56 }
  0x70   :  { %2440 = vmatmul.mubr.msk.f32.gmra.mrb[0].mxu0 %vm30_vm0, %v2974_v30  ;;  %2844 = vmatprep.subr.bf16.mxu0 %v2843_v1 }
  0x71   :  { %2671 = vmatmul.mubr.msk.f32.gmra.mrb[50].mxu1 %vm30_vm0, %v3015_v43  ;;  %1883 = vmatprep.mubr.f32.mxu0 %v2881_v3 }
  0x72   :  { %2838 = vmatpush1.bf16.msra.mxu1 %v2837_v2  ;;  %2060 = vmatprep.mubr.f32.mxu1 %v2881_v3 }
  0x73   :  { %2846 = vmatpush3.bf16.msra.mxu0 %v2843_v1 }
  0x74   :  { %2441 = vmatmul.mubr.msk.f32.gmra.mrb[50].mxu0 %vm30_vm0, %v2985_v34 }
  0x75   :  { %2459 = vmatmul.mubr.msk.f32.vlgmr.msra.gmra.mrb[52].mxu1 %vm30_vm0, %v2943_v19  ;;  %1887 = vmatprep.mubr.f32.mxu0 %v2881_v3 }
  0x76   :  { %2064 = vmatprep.mubr.f32.mxu1 %v2881_v3 }
  0x78   :  { %2442 = vmatmul.mubr.msk.f32.gmra.mrb[4].mxu0 %vm30_vm0, %v3015_v43 }
  0x79   :  { %2460 = vmatmul.mubr.msk.f32.gmra.mrb[54].mxu1 %vm30_vm0, %v2974_v30  ;;  %2681 = vmatprep.mubr.msk.f32.mxu0 %vm30_vm0, %v2943_v19 }
  0x7a   :  { %2070 = vmatprep.mubr.f32.mxu1 %v2881_v3 }
  0x7c   :  { %2682 = vmatmul.mubr.msk.f32.vlgmr.msra.gmra.mrb[52].mxu0 %vm30_vm0, %v2974_v30 }
  0x7d   :  { %2461 = vmatmul.mubr.msk.f32.gmra.mrb[56].mxu1 %vm30_vm0, %v2985_v34  ;;  %2684 = vmatprep.mubr.msk.f32.mxu0 %vm30_vm0, %v2985_v34 }
  0x7e   :  { %2074 = vmatprep.mubr.f32.mxu1 %v2881_v3 }
  0x80   :  { %2685 = vmatmul.mubr.msk.f32.gmra.mrb[54].mxu0 %vm30_vm0, %v3015_v43 }
  0x81   :  { %2462 = vmatmul.mubr.msk.f32.gmra.mrb[58].mxu1 %vm30_vm0, %v3015_v43 }
  0xe0   :  { %v2557_v19 = vpop.f32.mrb[0].mxu1 }
  0xe1   :  { %v194_v4 = vpop.f32.mrb[1].mxu1 }
  0xe3   :  { %v115_v5 = vpop.f32.mrb[2].mxu0 }
  0xe4   :  { %v2560_v6 = vpop.f32.mrb[2].mxu1  ;;  %v116_v7 = vpop.f32.mrb[3].mxu0 }
  0xe5   :  { %v203_v30 = vpop.f32.mrb[3].mxu1 }
  0xe8   :  { %v290_v8 = vpop.f32.mrb[4].mxu1 }
  0xe9   :  { %v292_v9 = vpop.f32.mrb[5].mxu1  ;;  %v395_v33 = vrot.slane %v290_v8, 1 }
  0xea   :  { %v396_v45 = vrot.slane %v292_v9, 1 }
  0xeb   :  { %v125_v10 = vpop.f32.mrb[6].mxu0 }
  0xec   :  { %v296_v11 = vpop.f32.mrb[6].mxu1  ;;  %v126_v12 = vpop.f32.mrb[7].mxu0 }
  0xed   :  { %v297_v34 = vpop.f32.mrb[7].mxu1 }
  0xef   :  { %v2571_v13 = vpop.f32.mrb[8].mxu0 }
  0xf0   :  { %v300_v3 = vpop.f32.mrb[8].mxu1  ;;  %v375_v14 = vpop.f32.mrb[9].mxu0 }
  0xf1   :  { %v302_v15 = vpop.f32.mrb[9].mxu1  ;;  %v397_v16 = vrot.slane %v375_v14, 1  ;;  %v407_v59 = vrot.slane %v300_v3, 1 }
  0xf3   :  { %v403_v17 = vadd.f32 %v397_v16, %v194_v4  ;;  %v2574_v18 = vpop.f32.mrb[10].mxu0  ;;  %v408_v4 = vrot.slane %v302_v15, 1 }
  0xf4   :  { %v306_v43 = vpop.f32.mrb[10].mxu1  ;;  %v384_v20 = vpop.f32.mrb[11].mxu0 }
  0xf5   :  { %v307_v21 = vpop.f32.mrb[11].mxu1  ;;  %v409_v22 = vrot.slane %v384_v20, 1 }
  0xf7   :  { %v415_v23 = vadd.f32 %v409_v22, %v203_v30  ;;  %v495_v24 = vpop.f32.mrb[12].mxu0 }
  0xf8   :  { %v2585_v25 = vpop.f32.mrb[12].mxu1  ;;  %v497_v26 = vpop.f32.mrb[13].mxu0  ;;  %v610_v31 = vrot.slane %v495_v24, 2 }
  0xf9   :  { %v617_v27 = vrot.slane %v2585_v25, 2  ;;  %v584_v28 = vpop.f32.mrb[13].mxu1  ;;  %v613_v40 = vrot.slane %v497_v26, 2 }
  0xfa   :  { %v616_v29 = vrot.slane %v584_v28, 2 }
  0xfb   :  { %v501_v32 = vpop.f32.mrb[14].mxu0 }
  0xfc   :  { %v618_v35 = vsel %vm609_vm1, %v616_v29, %v617_v27  ;;  %v611_v36 = vrot.slane %v501_v32, 2  ;;  %v2588_v37 = vpop.f32.mrb[14].mxu1  ;;  %v503_v38 = vpop.f32.mrb[15].mxu0 }
  0xfd   :  { %v624_v39 = vadd.f32 %v618_v35, %v403_v17  ;;  %v638_v41 = vrot.slane %v2588_v37, 2  ;;  %v614_v42 = vrot.slane %v503_v38, 2  ;;  %v594_v44 = vpop.f32.mrb[15].mxu1 }
  0xfe   :  { %v612_v46 = vsel %vm609_vm1, %v610_v31, %v611_v36  ;;  %v637_v47 = vrot.slane %v594_v44, 2 }
  0xff   :  { %v2847_v48 = vadd.f32 %v612_v46, %v395_v33  ;;  %v615_v49 = vsel %vm609_vm1, %v613_v40, %v614_v42  ;;  %v507_v50 = vpop.f32.mrb[16].mxu0 }
 0x100   :  { %v2854_v51 = vadd.f32 %v615_v49, %v396_v45  ;;  %v639_v52 = vsel %vm609_vm1, %v637_v47, %v638_v41  ;;  %v725_v53 = vpop.f32.mrb[16].mxu1  ;;  %v509_v54 = vpop.f32.mrb[17].mxu0  ;;  %v631_v57 = vrot.slane %v507_v50, 2 }
 0x101   :  { %v645_v55 = vadd.f32 %v639_v52, %v415_v23  ;;  %v727_v56 = vpop.f32.mrb[17].mxu1  ;;  %v840_v63 = vrot.slane %v725_v53, 3  ;;  %v634_v0 = vrot.slane %v509_v54, 2 }
 0x102   :  { %v843_v5 = vrot.slane %v727_v56, 3 }
 0x103   :  { %v513_v58 = vpop.f32.mrb[18].mxu0 }
 0x104   :  { %v632_v60 = vrot.slane %v513_v58, 2  ;;  %v731_v61 = vpop.f32.mrb[18].mxu1  ;;  %v515_v62 = vpop.f32.mrb[19].mxu0 }
 0x105   :  { %v841_v1 = vrot.slane %v731_v61, 3  ;;  %v635_v2 = vrot.slane %v515_v62, 2  ;;  %v733_v19 = vpop.f32.mrb[19].mxu1 }
 0x106   :  { %v633_v6 = vsel %vm609_vm1, %v631_v57, %v632_v60  ;;  %v844_v7 = vrot.slane %v733_v19, 3 }
 0x107   :  { %v2861_v30 = vadd.f32 %v633_v6, %v407_v59  ;;  %v842_v8 = vsel %vm839_vm2, %v840_v63, %v841_v1  ;;  %v636_v9 = vsel %vm609_vm1, %v634_v0, %v635_v2  ;;  %v2599_v10 = vpop.f32.mrb[20].mxu0 }
 0x108   :  { %v2848_v11 = vadd.f32 %v2847_v48, %v842_v8  ;;  %v2868_v12 = vadd.f32 %v636_v9, %v408_v4  ;;  %v845_v34 = vsel %vm839_vm2, %v843_v5, %v844_v7  ;;  %v737_v13 = vpop.f32.mrb[20].mxu1  ;;  %v847_v3 = vrot.slane %v2599_v10, 3  ;;  %v814_v14 = vpop.f32.mrb[21].mxu0 }
 0x109   :  { %v2855_v16 = vadd.f32 %v2854_v51, %v845_v34  ;;  %v739_v17 = vpop.f32.mrb[21].mxu1  ;;  %v846_v15 = vrot.slane %v814_v14, 3  ;;  %v861_v24 = vrot.slane %v737_v13, 3 }
 0x10a   :  { %v864_v28 = vrot.slane %v739_v17, 3 }
 0x10b   :  { %v848_v18 = vsel %vm839_vm2, %v846_v15, %v847_v3  ;;  %v2602_v43 = vpop.f32.mrb[22].mxu0 }
 0x10c   :  { %v854_v20 = vadd.f32 %v848_v18, %v624_v39  ;;  %v743_v21 = vpop.f32.mrb[22].mxu1  ;;  %v868_v22 = vrot.slane %v2602_v43, 3  ;;  %v824_v23 = vpop.f32.mrb[23].mxu0 }
 0x10d   :  { %v862_v25 = vrot.slane %v743_v21, 3  ;;  %v745_v26 = vpop.f32.mrb[23].mxu1  ;;  %v867_v27 = vrot.slane %v824_v23, 3 }
 0x10e   :  { %v865_v29 = vrot.slane %v745_v26, 3 }
 0x10f   :  { %v863_v31 = vsel %vm839_vm2, %v861_v24, %v862_v25  ;;  %v869_v32 = vsel %vm839_vm2, %v867_v27, %v868_v22  ;;  %v955_v33 = vpop.f32.mrb[24].mxu0 }
 0x110   :  { %v2862_v35 = vadd.f32 %v2861_v30, %v863_v31  ;;  %v866_v36 = vsel %vm839_vm2, %v864_v28, %v865_v29  ;;  %v875_v37 = vadd.f32 %v869_v32, %v645_v55  ;;  %v2613_v38 = vpop.f32.mrb[24].mxu1  ;;  %v957_v39 = vpop.f32.mrb[25].mxu0  ;;  %v1070_v45 = vrot.slane %v955_v33, 4 }
 0x111   :  { %v2869_v40 = vadd.f32 %v2868_v12, %v866_v36  ;;  %v1077_v41 = vrot.slane %v2613_v38, 4  ;;  %v1044_v42 = vpop.f32.mrb[25].mxu1  ;;  %v1073_v52 = vrot.slane %v957_v39, 4 }
 0x112   :  { %v1076_v44 = vrot.slane %v1044_v42, 4 }
 0x113   :  { %v961_v46 = vpop.f32.mrb[26].mxu0 }
 0x114   :  { %v1078_v47 = vsel %vm1069_vm3, %v1076_v44, %v1077_v41  ;;  %v1071_v48 = vrot.slane %v961_v46, 4  ;;  %v2616_v49 = vpop.f32.mrb[26].mxu1  ;;  %v963_v50 = vpop.f32.mrb[27].mxu0 }
 0x115   :  { %v1084_v51 = vadd.f32 %v1078_v47, %v854_v20  ;;  %v1098_v53 = vrot.slane %v2616_v49, 4  ;;  %v1074_v54 = vrot.slane %v963_v50, 4  ;;  %v1054_v56 = vpop.f32.mrb[27].mxu1 }
 0x116   :  { %v1072_v55 = vsel %vm1069_vm3, %v1070_v45, %v1071_v48  ;;  %v1097_v57 = vrot.slane %v1054_v56, 4 }
 0x117   :  { %v2849_v58 = vadd.f32 %v2848_v11, %v1072_v55  ;;  %v1075_v59 = vsel %vm1069_vm3, %v1073_v52, %v1074_v54  ;;  %v967_v60 = vpop.f32.mrb[28].mxu0 }
 0x118   :  { %v2856_v61 = vadd.f32 %v2855_v16, %v1075_v59  ;;  %v1099_v62 = vsel %vm1069_vm3, %v1097_v57, %v1098_v53  ;;  %v1185_v63 = vpop.f32.mrb[28].mxu1  ;;  %v969_v0 = vpop.f32.mrb[29].mxu0  ;;  %v1091_v19 = vrot.slane %v967_v60, 4 }
 0x119   :  { %v1105_v1 = vadd.f32 %v1099_v62, %v875_v37  ;;  %v1187_v2 = vpop.f32.mrb[29].mxu1  ;;  %v1300_v30 = vrot.slane %v1185_v63, 5  ;;  %v1094_v8 = vrot.slane %v969_v0, 4 }
 0x11a   :  { %v1303_v12 = vrot.slane %v1187_v2, 5 }
 0x11b   :  { %v973_v4 = vpop.f32.mrb[30].mxu0 }
 0x11c   :  { %v1092_v5 = vrot.slane %v973_v4, 4  ;;  %v1191_v6 = vpop.f32.mrb[30].mxu1  ;;  %v975_v7 = vpop.f32.mrb[31].mxu0 }
 0x11d   :  { %v1301_v9 = vrot.slane %v1191_v6, 5  ;;  %v1095_v10 = vrot.slane %v975_v7, 4  ;;  %v1193_v11 = vpop.f32.mrb[31].mxu1 }
 0x11e   :  { %v1093_v34 = vsel %vm1069_vm3, %v1091_v19, %v1092_v5  ;;  %v1304_v13 = vrot.slane %v1193_v11, 5 }
 0x11f   :  { %v2863_v3 = vadd.f32 %v2862_v35, %v1093_v34  ;;  %v1302_v14 = vsel %vm1299_vm4, %v1300_v30, %v1301_v9  ;;  %v1096_v16 = vsel %vm1069_vm3, %v1094_v8, %v1095_v10  ;;  %v2627_v17 = vpop.f32.mrb[32].mxu0 }
 0x120   :  { %v2850_v15 = vadd.f32 %v2849_v58, %v1302_v14  ;;  %v2870_v18 = vadd.f32 %v2869_v40, %v1096_v16  ;;  %v1305_v43 = vsel %vm1299_vm4, %v1303_v12, %v1304_v13  ;;  %v1197_v20 = vpop.f32.mrb[32].mxu1  ;;  %v1307_v21 = vrot.slane %v2627_v17, 5  ;;  %v1274_v22 = vpop.f32.mrb[33].mxu0 }
 0x121   :  { %v2857_v23 = vadd.f32 %v2856_v61, %v1305_v43  ;;  %v1199_v24 = vpop.f32.mrb[33].mxu1  ;;  %v1306_v25 = vrot.slane %v1274_v22, 5  ;;  %v1321_v33 = vrot.slane %v1197_v20, 5 }
 0x122   :  { %v1324_v38 = vrot.slane %v1199_v24, 5 }
 0x123   :  { %v1308_v26 = vsel %vm1299_vm4, %v1306_v25, %v1307_v21  ;;  %v2630_v27 = vpop.f32.mrb[34].mxu0 }
 0x124   :  { %v1314_v28 = vadd.f32 %v1308_v26, %v1084_v51  ;;  %v1203_v29 = vpop.f32.mrb[34].mxu1  ;;  %v1328_v31 = vrot.slane %v2630_v27, 5  ;;  %v1284_v32 = vpop.f32.mrb[35].mxu0 }
 0x125   :  { %v1322_v35 = vrot.slane %v1203_v29, 5  ;;  %v1205_v36 = vpop.f32.mrb[35].mxu1  ;;  %v1327_v37 = vrot.slane %v1284_v32, 5 }
 0x126   :  { %v1325_v39 = vrot.slane %v1205_v36, 5 }
 0x127   :  { %v1323_v40 = vsel %vm1299_vm4, %v1321_v33, %v1322_v35  ;;  %v1329_v41 = vsel %vm1299_vm4, %v1327_v37, %v1328_v31  ;;  %v1415_v42 = vpop.f32.mrb[36].mxu0 }
 0x128   :  { %v2864_v44 = vadd.f32 %v2863_v3, %v1323_v40  ;;  %v1326_v45 = vsel %vm1299_vm4, %v1324_v38, %v1325_v39  ;;  %v1335_v46 = vadd.f32 %v1329_v41, %v1105_v1  ;;  %v2641_v47 = vpop.f32.mrb[36].mxu1  ;;  %v1417_v48 = vpop.f32.mrb[37].mxu0  ;;  %v1530_v53 = vrot.slane %v1415_v42, 6 }
 0x129   :  { %v2871_v49 = vadd.f32 %v2870_v18, %v1326_v45  ;;  %v1537_v50 = vrot.slane %v2641_v47, 6  ;;  %v1504_v51 = vpop.f32.mrb[37].mxu1  ;;  %v1533_v59 = vrot.slane %v1417_v48, 6 }
 0x12a   :  { %v1536_v52 = vrot.slane %v1504_v51, 6 }
 0x12b   :  { %v1421_v54 = vpop.f32.mrb[38].mxu0 }
 0x12c   :  { %v1538_v56 = vsel %vm1529_vm5, %v1536_v52, %v1537_v50  ;;  %v1531_v55 = vrot.slane %v1421_v54, 6  ;;  %v2644_v57 = vpop.f32.mrb[38].mxu1  ;;  %v1423_v58 = vpop.f32.mrb[39].mxu0 }
 0x12d   :  { %v1558_v60 = vrot.slane %v2644_v57, 6  ;;  %v1534_v61 = vrot.slane %v1423_v58, 6  ;;  %v1514_v62 = vpop.f32.mrb[39].mxu1  ;;  %v1544_v63 = vadd.f32 %v1538_v56, %v1314_v28 }
 0x12e   :  { %v1532_v0 = vsel %vm1529_vm5, %v1530_v53, %v1531_v55  ;;  %v1557_v1 = vrot.slane %v1514_v62, 6 }
 0x12f   :  { %v1535_v2 = vsel %vm1529_vm5, %v1533_v59, %v1534_v61  ;;  %v1427_v19 = vpop.f32.mrb[40].mxu0  ;;  %v2851_v4 = vadd.f32 %v2850_v15, %v1532_v0 }
 0x130   :  { %v1559_v5 = vsel %vm1529_vm5, %v1557_v1, %v1558_v60  ;;  %v1645_v6 = vpop.f32.mrb[40].mxu1  ;;  %v1429_v7 = vpop.f32.mrb[41].mxu0  ;;  %v2858_v30 = vadd.f32 %v2857_v23, %v1535_v2  ;;  %v1551_v10 = vrot.slane %v1427_v19, 6 }
 0x131   :  { %v1647_v8 = vpop.f32.mrb[41].mxu1  ;;  %v1565_v9 = vadd.f32 %v1559_v5, %v1335_v46  ;;  %v1760_v3 = vrot.slane %v1645_v6, 7  ;;  %v1554_v14 = vrot.slane %v1429_v7, 6 }
 0x132   :  { %v1763_v43 = vrot.slane %v1647_v8, 7 }
 0x133   :  { %v1433_v11 = vpop.f32.mrb[42].mxu0 }
 0x134   :  { %v1552_v12 = vrot.slane %v1433_v11, 6  ;;  %v1651_v34 = vpop.f32.mrb[42].mxu1  ;;  %v1435_v13 = vpop.f32.mrb[43].mxu0 }
 0x135   :  { %v1761_v16 = vrot.slane %v1651_v34, 7  ;;  %v1555_v17 = vrot.slane %v1435_v13, 6  ;;  %v1653_v18 = vpop.f32.mrb[43].mxu1 }
 0x136   :  { %v1553_v15 = vsel %vm1529_vm5, %v1551_v10, %v1552_v12  ;;  %v1764_v20 = vrot.slane %v1653_v18, 7 }
 0x137   :  { %v1556_v21 = vsel %vm1529_vm5, %v1554_v14, %v1555_v17  ;;  %v2655_v22 = vpop.f32.mrb[44].mxu0  ;;  %v1762_v23 = vsel %vm1759_vm6, %v1760_v3, %v1761_v16  ;;  %v2865_v24 = vadd.f32 %v2864_v44, %v1553_v15 }
 0x138   :  { %v1657_v25 = vpop.f32.mrb[44].mxu1  ;;  %v1767_v26 = vrot.slane %v2655_v22, 7  ;;  %v1734_v27 = vpop.f32.mrb[45].mxu0  ;;  %v2852_v28 = vadd.f32 %v2851_v4, %v1762_v23  ;;  %v1765_v29 = vsel %vm1759_vm6, %v1763_v43, %v1764_v20  ;;  %v2872_v31 = vadd.f32 %v2871_v49, %v1556_v21 }
 0x139   :  { %v1659_v32 = vpop.f32.mrb[45].mxu1  ;;  %v1766_v33 = vrot.slane %v1734_v27, 7  ;;  %v2859_v35 = vadd.f32 %v2858_v30, %v1765_v29  ;;  %v1781_v42 = vrot.slane %v1657_v25, 7 }
 0x13a   :  { %v1784_v47 = vrot.slane %v1659_v32, 7 }
 0x13b   :  { %v2658_v36 = vpop.f32.mrb[46].mxu0  ;;  %v1768_v37 = vsel %vm1759_vm6, %v1766_v33, %v1767_v26 }
 0x13c   :  { %v1663_v38 = vpop.f32.mrb[46].mxu1  ;;  %v1788_v39 = vrot.slane %v2658_v36, 7  ;;  %v1744_v40 = vpop.f32.mrb[47].mxu0  ;;  %v1774_v41 = vadd.f32 %v1768_v37, %v1544_v63  ;;  %v2236_v36 = vlaneseq }
 0x13d   :  { %v1782_v45 = vrot.slane %v1663_v38, 7  ;;  %v1665_v44 = vpop.f32.mrb[47].mxu1  ;;  %v1787_v46 = vrot.slane %v1744_v40, 7 }
 0x13e   :  { %v1785_v48 = vrot.slane %v1665_v44, 7 }
 0x13f   :  { %v1875_v50 = vpop.f32.mrb[48].mxu0  ;;  %v1789_v51 = vsel %vm1759_vm6, %v1787_v46, %v1788_v39  ;;  %v1783_v49 = vsel %vm1759_vm6, %v1781_v42, %v1782_v45 }
 0x140   :  { %v2669_v52 = vpop.f32.mrb[48].mxu1  ;;  %v1876_v53 = vpop.f32.mrb[49].mxu0  ;;  %v1795_v54 = vadd.f32 %v1789_v51, %v1565_v9  ;;  %v2866_v56 = vadd.f32 %v2865_v24, %v1783_v49  ;;  %v1786_v55 = vsel %vm1759_vm6, %v1784_v47, %v1785_v48  ;;  %v2237_v51 = vshrl.u32 %v2236_v36, 7 }
 0x141   :  { %v1979_v57 = vadd.f32 %v2669_v52, %v1774_v41  ;;  %v1960_v58 = vpop.f32.mrb[49].mxu1  ;;  %v2873_v59 = vadd.f32 %v2872_v31, %v1786_v55 }
 0x143   :  { %v1879_v60 = vpop.f32.mrb[0].mxu0 }
 0x144   :  { %v2853_v61 = vadd.f32 %v2852_v28, %v1879_v60  ;;  %v2672_v62 = vpop.f32.mrb[50].mxu1  ;;  %v1881_v63 = vpop.f32.mrb[1].mxu0 }
 0x145   :  { %v1982_v0 = vadd.f32 %v2672_v62, %v1795_v54  ;;  %v2860_v1 = vadd.f32 %v2859_v35, %v1881_v63  ;;  %v1969_v2 = vpop.f32.mrb[51].mxu1  ;;  %v2234_v63 = vld [vmem:[%s3536_s2] sm:$0x7] }
 0x147   :  { %v1885_v19 = vpop.f32.mrb[50].mxu0 }
 0x148   :  { %v2062_v4 = vpop.f32.mrb[52].mxu1  ;;  %v1886_v5 = vpop.f32.mrb[51].mxu0 }
 0x149   :  { %v2063_v6 = vpop.f32.mrb[53].mxu1  ;;  %v2882_v5 = vmov 1983009808  }
 0x14a   :  { %v2259_v6 = vunpack.c.l.s4 %v2882_v5 }
 0x14b   :  { %v1889_v7 = vpop.f32.mrb[4].mxu0 }
 0x14c   :  { %v2867_v30 = vadd.f32 %v2866_v56, %v1889_v7  ;;  %v2066_v8 = vpop.f32.mrb[54].mxu1  ;;  %v1891_v9 = vpop.f32.mrb[5].mxu0  ;;  %v2242_v7 = vsub.s32 1, %v2237_v51 }
 0x14d   :  { %v2167_v10 = vrot.slane %v2066_v8, 1  ;;  %v2874_v11 = vadd.f32 %v2873_v59, %v1891_v9  ;;  %v2068_v12 = vpop.f32.mrb[55].mxu1 }
 0x14e   :  { %v2168_v34 = vrot.slane %v2068_v12, 1 }
 0x14f   :  { %v2173_v13 = vadd.f32 %v2853_v61, %v2167_v10  ;;  %v2683_v3 = vpop.f32.mrb[52].mxu0  ;;  %v2238_v61 = vsub.s32 0, %v2237_v51 }
 0x150   :  { %v2174_v14 = vadd.f32 %v2860_v1, %v2168_v34  ;;  %v2072_v16 = vpop.f32.mrb[56].mxu1  ;;  %v2169_v17 = vrot.slane %v2683_v3, 1  ;;  %v2147_v18 = vpop.f32.mrb[53].mxu0  ;;  %v2246_v1 = vsub.s32 2, %v2237_v51 }
 0x151   :  { %v2189_v43 = vsel %vm2188_vm7, %v2173_v13, -inf  ;;  %v2073_v15 = vpop.f32.mrb[57].mxu1  ;;  %v2243_v18 = vrot.slane %v2234_v63, %v2242_v7 }
 0x152   :  { %v2190_v20 = vrot.slane %v2189_v43, 4  ;;  %v2196_v21 = vsel %vm2188_vm7, %v2174_v14, -inf  ;;  %v2175_v22 = vadd.f32 %v2169_v17, %v1979_v57  ;;  %v2247_v13 = vrot.slane %v2234_v63, %v2246_v1 }
 0x153   :  { %v2197_v23 = vrot.slane %v2196_v21, 4  ;;  %v2686_v24 = vpop.f32.mrb[54].mxu0  ;;  %v2260_v17 = vunpack.c.0.s8 %v2259_v6 }
 0x154   :  { %v2191_v25 = vmax.f32 %v2189_v43, %v2190_v20  ;;  %v2203_v26 = vsel %vm2188_vm7, %v2175_v22, -inf  ;;  %v2076_v27 = vpop.f32.mrb[58].mxu1  ;;  %v2181_v28 = vrot.slane %v2686_v24, 1  ;;  %v2156_v29 = vpop.f32.mrb[55].mxu0 }
 0x155   :  { %v2198_v31 = vmax.f32 %v2196_v21, %v2197_v23  ;;  %v2204_v32 = vrot.slane %v2203_v26, 4  ;;  %v2179_v33 = vrot.slane %v2076_v27, 1  ;;  %v2078_v35 = vpop.f32.mrb[59].mxu1 }
 0x156   :  { %v2187_v37 = vadd.f32 %v2181_v28, %v1982_v0  ;;  %v2180_v38 = vrot.slane %v2078_v35, 1  ;;  %v2192_v41 = vrot.slane %v2191_v25, 2 }
 0x157   :  { %v2205_v39 = vmax.f32 %v2203_v26, %v2204_v32  ;;  %v2185_v40 = vadd.f32 %v2867_v30, %v2179_v33  ;;  %v2199_v44 = vrot.slane %v2198_v31, 2 }
 0x158   :  { %v2224_v42 = vsel %vm2188_vm7, %v2187_v37, -inf  ;;  %v2186_v45 = vadd.f32 %v2874_v11, %v2180_v38  ;;  %v2193_v56 = vmax.f32 %v2191_v25, %v2192_v41  ;;  %v2239_v11 = vrot.slane %v2234_v63, %v2238_v61 }
 0x159   :  { %v2206_v46 = vrot.slane %v2205_v39, 2  ;;  %v2210_v47 = vsel %vm2188_vm7, %v2185_v40, -inf  ;;  %v2225_v48 = vrot.slane %v2224_v42, 4  ;;  %v2200_v57 = vmax.f32 %v2198_v31, %v2199_v44 }
 0x15a   :  { %v2211_v50 = vrot.slane %v2210_v47, 4  ;;  %v2217_v49 = vsel %vm2188_vm7, %v2186_v45, -inf  ;;  %v2194_v19 = vrot.slane %v2193_v56, 1  ;;  %v2263_v25 = vsub.s32 %v2260_v17, %v2237_v51 }
 0x15b   :  { %v2207_v52 = vmax.f32 %v2205_v39, %v2206_v46  ;;  %v2226_v53 = vmax.f32 %v2224_v42, %v2225_v48  ;;  %v2218_v54 = vrot.slane %v2217_v49, 4  ;;  %v2201_v30 = vrot.slane %v2200_v57, 1 }
 0x15c   :  { %v2212_v55 = vmax.f32 %v2210_v47, %v2211_v50  ;;  %v2195_v14 = vmax.f32 %v2193_v56, %v2194_v19 }
 0x15d   :  { %v2227_v58 = vrot.slane %v2226_v53, 2  ;;  %v2219_v59 = vmax.f32 %v2217_v49, %v2218_v54  ;;  %v2208_v62 = vrot.slane %v2207_v52, 1  ;;  %v2202_v43 = vmax.f32 %v2200_v57, %v2201_v30 }
 0x15e   :  { %v2213_v60 = vrot.slane %v2212_v55, 2 }
 0x15f   :  { %v2228_v0 = vmax.f32 %v2226_v53, %v2227_v58  ;;  %v2220_v2 = vrot.slane %v2219_v59, 2  ;;  %v2209_v12 = vmax.f32 %v2207_v52, %v2208_v62 }
 0x160   :  { %v2214_v4 = vmax.f32 %v2212_v55, %v2213_v60 }
 0x161   :  { %v2229_v8 = vrot.slane %v2228_v0, 1  ;;  %v2221_v9 = vmax.f32 %v2219_v59, %v2220_v2 }
 0x162   :  { %v2215_v10 = vrot.slane %v2214_v4, 1 }
 0x163   :  { %v2230_v34 = vmax.f32 %v2228_v0, %v2229_v8  ;;  %v2222_v3 = vrot.slane %v2221_v9, 1 }
 0x164   :  { %v2216_v16 = vmax.f32 %v2214_v4, %v2215_v10 }
 0x165   :  { %v2233_v15 = vsel %vm1759_vm6, %v2209_v12, %v2230_v34  ;;  %v2223_v20 = vmax.f32 %v2221_v9, %v2222_v3 }
 0x166   :  { %v2231_v21 = vsel %vm1759_vm6, %v2195_v14, %v2216_v16  ;;  %v2253_v24 = vadd.f32 %v2247_v13, %v2233_v15 }
 0x167   :  { %v2251_v22 = vadd.f32 %v2239_v11, %v2231_v21  ;;  %v2232_v23 = vsel %vm1759_vm6, %v2202_v43, %v2223_v20 }
 0x168   :  { %v2252_v26 = vadd.f32 %v2243_v18, %v2232_v23  ;;  %v2271_v28 = vrot.slane %v2253_v24, %v2263_v25 }
 0x16a   :  { %v2257_v27 = vcombine.low %v2251_v22, %v2252_v26 }
 0x16c   :  { %v2264_v29 = vrot.slane %v2257_v27, %v2263_v25 }
 0x16e   :  { %v2272_v31 = vcombine.low %v2264_v29, %v2271_v28 }
 0x170   :  { %2274 = vst [vmem:[%s3537_s3] sm:$0x3f] %v2272_v31 }

// kernel: model_forward.27
= control target key start
LH: loop header
LB: loop body
LE: loop exit
PB: predicated region body
PF: predicated region fallthrough
CT: control target
= control target key end

     0   :  { %v486_v3 = vmov 0.0|0.0   ;;  %v487_v8 = vmov 1983009808   ;;  %v81_v10 = vlaneseq  ;;  %vm488_vm0 = vmmov 0   ;;  %s690_s1 = inlined_call_operand.vmem [shape: f32[320,32], index: 1, kind: input, shape index: {}]   ;;  %s691_s0 = inlined_call_operand.vmem [shape: f32[2,320], index: 0, kind: input, shape index: {}]   ;;  %s692_s5 = inlined_call_operand.vmem [shape: f32[32,1], index: 5, kind: input, shape index: {}]   ;;  %s693_s6 = inlined_call_operand.<no memory space> [shape: f32[1,1], index: 6, kind: input, shape index: {}]   ;;  %s694_s2 = inlined_call_operand.vmem [shape: f32[1,32], index: 2, kind: input, shape index: {}]   ;;  %s695_s3 = inlined_call_operand.vmem [shape: f32[1,32], index: 3, kind: input, shape index: {}]   ;;  %s696_s4 = inlined_call_operand.vmem [shape: f32[1,32], index: 4, kind: input, shape index: {}]   ;;  %s697_s7 = inlined_call_operand.vmem [shape: f32[2,1], index: 7, kind: output, shape index: {}]  }
   0x1   :  { %v45_v0 = vld [vmem:[%s690_s1 + $0x80] sm:$0xff]  ;;  %v46_v1 = vld [vmem:[%s690_s1 + $0x88] sm:$0xff]  ;;  %463 = vmatprep.subr.bf16.mxu1 %v486_v3  ;;  %v47_v6 = vld [vmem:[%s690_s1 + $0x90] sm:$0xff]  ;;  %v79_v9 = vunpack.c.l.s4 %v487_v8  ;;  %v489_v11 = vmov 0.0   ;;  %vm95_vm1 = vcmask 523264   ;;  %vm266_vm2 = vcmask 261120  }
   0x2   :  { %v29_v2 = vld [vmem:[%s690_s1] sm:$0xff]  ;;  %v431_v4 = vpack.c.bf16 %v46_v1, %v45_v0  ;;  %v30_v5 = vld [vmem:[%s690_s1 + $0x8] sm:$0xff]  ;;  %v48_v7 = vld [vmem:[%s690_s1 + $0x98] sm:$0xff]  ;;  %417 = vmatprep.mubr.msk.f32.mxu1 %vm488_vm0, %v489_v11  ;;  %v82_v23 = vshrl.u32 %v81_v10, 7  ;;  %vm340_vm3 = vcmask 1024  }
   0x3   :  { %v433_v12 = vpack.c.bf16 %v30_v5, %v29_v2  ;;  %v435_v13 = vpack.c.bf16 %v48_v7, %v47_v6  ;;  %v31_v14 = vld [vmem:[%s690_s1 + $0x10] sm:$0xff]  ;;  %v32_v15 = vld [vmem:[%s690_s1 + $0x18] sm:$0xff]  ;;  %v49_v16 = vld [vmem:[%s690_s1 + $0xa0] sm:$0xff]  ;;  %v80_v22 = vunpack.c.0.s8 %v79_v9 }
   0x4   :  { %432 = vmatprep.subr.bf16.mxu0 %v431_v4  ;;  %v50_v17 = vld [vmem:[%s690_s1 + $0xa8] sm:$0xff]  ;;  %v437_v18 = vpack.c.bf16 %v32_v15, %v31_v14  ;;  %v33_v20 = vld [vmem:[%s690_s1 + $0x20] sm:$0xff]  ;;  %v51_v24 = vld [vmem:[%s690_s1 + $0xb0] sm:$0xff] }
   0x5   :  { %434 = vmatpush3.bf16.msra.mxu0 %v433_v12  ;;  %v439_v19 = vpack.c.bf16 %v50_v17, %v49_v16  ;;  %v34_v21 = vld [vmem:[%s690_s1 + $0x28] sm:$0xff]  ;;  %v52_v25 = vld [vmem:[%s690_s1 + $0xb8] sm:$0xff]  ;;  %v61_v27 = vld [vmem:[%s690_s1 + $0x100] sm:$0xff]  ;;  %v83_v34 = vsub.s32 %v80_v22, %v82_v23  ;;  %v12_v16 = vstv %s693_s6 }
   0x6   :  { %436 = vmatprep.subr.bf16.mxu0 %v435_v13  ;;  %v441_v26 = vpack.c.bf16 %v34_v21, %v33_v20  ;;  %v62_v28 = vld [vmem:[%s690_s1 + $0x108] sm:$0xff]  ;;  %v443_v29 = vpack.c.bf16 %v52_v25, %v51_v24  ;;  %v35_v30 = vld [vmem:[%s690_s1 + $0x30] sm:$0xff]  ;;  %v36_v31 = vld [vmem:[%s690_s1 + $0x38] sm:$0xff]  ;;  %13 = vst [vmem:[#allocation2] sm:$0x1] %v12_v16 }
   0x7   :  { %v53_v32 = vld [vmem:[%s690_s1 + $0xc0] sm:$0xff]  ;;  %v464_v33 = vpack.c.bf16 %v62_v28, %v61_v27  ;;  %v54_v35 = vld [vmem:[%s690_s1 + $0xc8] sm:$0xff]  ;;  %v63_v36 = vld [vmem:[%s690_s1 + $0x110] sm:$0xff]  ;;  %v445_v39 = vpack.c.bf16 %v36_v31, %v35_v30 }
   0x8   :  { %v64_v37 = vld [vmem:[%s690_s1 + $0x118] sm:$0xff]  ;;  %v65_v40 = vld [vmem:[%s690_s1 + $0x120] sm:$0xff]  ;;  %v66_v41 = vld [vmem:[%s690_s1 + $0x128] sm:$0xff]  ;;  %v447_v43 = vpack.c.bf16 %v54_v35, %v53_v32 }
   0x9   :  { %438 = vmatpush3.bf16.msra.mxu0 %v437_v18  ;;  %465 = vmatpush3.bf16.msra.mxu1 %v464_v33  ;;  %v467_v38 = vpack.c.bf16 %v64_v37, %v63_v36  ;;  %v28_v42 = vld [vmem:[%s691_s0] sm:$0x3f]  ;;  %v38_v45 = vld [vmem:[%s690_s1 + $0x48] sm:$0xff]  ;;  %v55_v47 = vld [vmem:[%s690_s1 + $0xd0] sm:$0xff]  ;;  %v470_v49 = vpack.c.bf16 %v66_v41, %v65_v40 }
   0xa   :  { %440 = vmatprep.subr.bf16.mxu0 %v439_v19  ;;  %466 = vmatprep.subr.bf16.mxu1 %v486_v3  ;;  %v37_v44 = vld [vmem:[%s690_s1 + $0x40] sm:$0xff]  ;;  %v84_v46 = vrot.slane %v28_v42, %v83_v34  ;;  %v56_v48 = vld [vmem:[%s690_s1 + $0xd8] sm:$0xff]  ;;  %v67_v52 = vld [vmem:[%s690_s1 + $0x130] sm:$0xff]  ;;  %v77_v59 = vcombine.high %v28_v42, %v28_v42 }
   0xb   :  { %v449_v51 = vpack.c.bf16 %v38_v45, %v37_v44  ;;  %v68_v53 = vld [vmem:[%s690_s1 + $0x138] sm:$0xff]  ;;  %v451_v54 = vpack.c.bf16 %v56_v48, %v55_v47  ;;  %v39_v55 = vld [vmem:[%s690_s1 + $0x50] sm:$0xff]  ;;  %v57_v57 = vld [vmem:[%s690_s1 + $0xe0] sm:$0xff] }
   0xc   :  { %v92_v50 = vcombine.high %v84_v46, %v84_v46  ;;  %v40_v56 = vld [vmem:[%s690_s1 + $0x58] sm:$0xff]  ;;  %v58_v58 = vld [vmem:[%s690_s1 + $0xe8] sm:$0xff]  ;;  %v473_v60 = vpack.c.bf16 %v68_v53, %v67_v52  ;;  %v41_v63 = vld [vmem:[%s690_s1 + $0x60] sm:$0xff]  ;;  %v91_v4 = vrot.slane %v77_v59, %v83_v34 }
   0xd   :  { %442 = vmatpush3.bf16.msra.mxu0 %v441_v26  ;;  %468 = vmatpush3.bf16.msra.mxu1 %v467_v38  ;;  %v453_v61 = vpack.c.bf16 %v40_v56, %v39_v55  ;;  %v455_v62 = vpack.c.bf16 %v58_v58, %v57_v57  ;;  %v42_v0 = vld [vmem:[%s690_s1 + $0x68] sm:$0xff]  ;;  %v59_v1 = vld [vmem:[%s690_s1 + $0xf0] sm:$0xff]  ;;  %v60_v2 = vld [vmem:[%s690_s1 + $0xf8] sm:$0xff] }
   0xe   :  { %444 = vmatprep.subr.bf16.mxu0 %v443_v29  ;;  %469 = vmatprep.subr.bf16.mxu1 %v486_v3  ;;  %v457_v5 = vpack.c.bf16 %v42_v0, %v41_v63  ;;  %v459_v6 = vpack.c.bf16 %v60_v2, %v59_v1  ;;  %v43_v7 = vld [vmem:[%s690_s1 + $0x70] sm:$0xff]  ;;  %v44_v8 = vld [vmem:[%s690_s1 + $0x78] sm:$0xff]  ;;  %v255_v10 = vld [vmem:[%s692_s5] sm:$0xff] }
   0xf   :  { %162 = vmatprep.mubr.f32.mxu0 %v92_v50  ;;  %v461_v9 = vpack.c.bf16 %v44_v8, %v43_v7  ;;  %v256_v12 = vld [vmem:[%s692_s5 + $0x8] sm:$0xff]  ;;  %v258_v14 = vld [vmem:[%s692_s5 + $0x18] sm:$0xff]  ;;  %v348_v23 = vld [vmem:[%s695_s3] ss:$0 sm:$0xff] }
  0x10   :  { %v476_v13 = vpack.c.bf16 %v256_v12, %v255_v10  ;;  %v349_v25 = vld [vmem:[%s696_s4] ss:$0 sm:$0xff] }
  0x11   :  { %446 = vmatpush3.bf16.msra.mxu0 %v445_v39  ;;  %471 = vmatpush3.bf16.msra.mxu1 %v470_v49  ;;  %v350_v29 = vld [vmem:[#allocation2] ss:$0 sm:$0xff] }
  0x12   :  { %448 = vmatprep.subr.bf16.mxu0 %v447_v43  ;;  %472 = vmatprep.subr.bf16.mxu1 %v486_v3 }
  0x15   :  { %450 = vmatpush3.bf16.msra.mxu0 %v449_v51  ;;  %474 = vmatpush3.bf16.msra.mxu1 %v473_v60 }
  0x16   :  { %452 = vmatprep.subr.bf16.mxu0 %v451_v54  ;;  %475 = vmatprep.subr.bf16.mxu1 %v486_v3 }
  0x18   :  { %418 = vmatmul.mubr.msk.f32.vlgmr.msra.gmra.mrb[0].mxu1 %vm95_vm1, %v91_v4 }
  0x19   :  { %454 = vmatpush3.bf16.msra.mxu0 %v453_v61  ;;  %428 = vmatprep.mubr.msk.f32.mxu1 %vm488_vm0, %v489_v11  ;;  %v257_v11 = vld [vmem:[%s692_s5 + $0x10] sm:$0xff] }
  0x1a   :  { %456 = vmatprep.subr.bf16.mxu0 %v455_v62  ;;  %477 = vmatpush3.bf16.msra.mxu1 %v476_v13  ;;  %v479_v15 = vpack.c.bf16 %v258_v14, %v257_v11 }
  0x1b   :  { %478 = vmatprep.subr.bf16.mxu1 %v486_v3  ;;  %v346_v3 = vld [vmem:[%s694_s2] ss:$0 sm:$0xff] }
  0x1d   :  { %458 = vmatpush3.bf16.msra.mxu0 %v457_v5 }
  0x1e   :  { %460 = vmatprep.subr.bf16.mxu0 %v459_v6  ;;  %480 = vmatpush3.bf16.msra.mxu1 %v479_v15 }
  0x21   :  { %462 = vmatpush3.bf16.msra.mxu0 %v461_v9 }
  0x24   :  { %163 = vmatmul.mubr.f32.vlgmr.msra.gmra.mrb[0].mxu0 %v84_v46 }
  0xeb   :  { %v234_v17 = vpop.f32.mrb[0].mxu1 }
  0xec   :  { %v419_v18 = vpop.f32.mrb[1].mxu1 }
  0xf7   :  { %v384_v19 = vpop.f32.mrb[0].mxu0 }
  0xf8   :  { %v385_v20 = vpop.f32.mrb[1].mxu0 }
  0xf9   :  { %v386_v21 = vadd.f32 %v385_v20, %v384_v19 }
  0xfb   :  { %v165_v22 = vadd.f32 %v386_v21, %v346_v3 }
  0xfd   :  { %v235_v24 = vadd.f32 %v234_v17, %v165_v22 }
  0xff   :  { %v245_v26 = vmul.f32 %v348_v23, %v235_v24 }
 0x101   :  { %v253_v27 = vadd.f32 %v349_v25, %v245_v26 }
 0x103   :  { %v254_v28 = vmax.f32 %v253_v27, 0.0 }
 0x105   :  { %429 = vmatmul.mubr.msk.f32.vlgmr.msra.gmra.mrb[2].mxu1 %vm266_vm2, %v254_v28 }
 0x1d8   :  { %v336_v30 = vpop.f32.mrb[2].mxu1 }
 0x1d9   :  { %v337_v31 = vadd.f32 %v350_v29, %v336_v30  ;;  %v430_v32 = vpop.f32.mrb[3].mxu1 }
 0x1db   :  { %341 = vst.msk [vmem:[%s697_s7] sm:$0x3] %vm340_vm3, %v337_v31 }

</bundles_post_ra>
